<compile_context>
chip_gen: v7x
topology: tpu7x:2x2x1
jax: 0.10.0
libtpu: 0.0.40
codegen_flags: <defaults>
</compile_context>

<pallas_src>
import functools

import numpy as np

import jax
import jax.numpy as jnp
from jax.experimental import pallas as pl
from jax.experimental.pallas import tpu as pltpu


# ----------------------------------------------------------------------------
# Trace-time weight preparation (BN folding, Toeplitz expansion, shift matrices)
# ----------------------------------------------------------------------------
def _bn_fold(bn, eps=1e-5):
    gamma, beta, mean, var = bn
    scale = gamma / jnp.sqrt(var + eps)
    shift = beta - mean * scale
    return scale, shift


def _prepare_operands(p, C, H, W, emb, BB, ncol):
    I = 24
    HW = H * W
    D1 = (C + 2 * 1 - 7) // 2 + 1
    f32, bf16 = jnp.float32, jnp.bfloat16

    col = lambda v: jnp.asarray(v, f32).reshape(-1, 1)

    # ---- spectral -----------------------------------------------------------
    s1, t1 = _bn_fold(p['bn1'])
    w1 = p['conv1_w'].reshape(I, 7) * s1[:, None]
    w1e = jnp.zeros((I, D1, C + 2), f32)
    for d in range(D1):                    # row (c, d): stride-2 taps at 2d..2d+6
        w1e = w1e.at[:, d, 2 * d:2 * d + 7].set(w1)
    w1e = w1e.reshape(I * D1, C + 2)
    b1e = col(jnp.repeat(s1 * p['conv1_b'] + t1, D1))

    def depth_toeplitz(w_raw, scale):
        # depth-7 / pad-3 / stride-1 conv acting on a (c*D1+d, pixel) activation
        w = w_raw * scale[:, None, None]                       # (I, I, 7)
        T = jnp.zeros((I, D1, I, D1), f32)
        for do in range(D1):
            for di in range(max(0, do - 3), min(D1, do + 4)):
                T = T.at[:, do, :, di].set(w[:, :, di - do + 3])
        return T.reshape(I * D1, I * D1)

    s2, t2 = _bn_fold(p['bn2'])
    T2 = depth_toeplitz(p['conv2_w'][:, :, :, 0, 0], s2)
    b2e = col(jnp.repeat(s2 * p['conv2_b'] + t2, D1))

    s3, t3 = _bn_fold(p['bn3'])
    T3 = depth_toeplitz(p['conv3_w'][:, :, :, 0, 0], s3)
    b3e = col(jnp.repeat(s3 * p['conv3_b'] + t3, D1))
    s3e = col(jnp.repeat(s3, D1))                              # BN3 scale on residual

    s4, t4 = _bn_fold(p['bn4'])
    w4 = p['conv4_w'][:, :, :, 0, 0].reshape(emb, I * D1) * s4[:, None]
    b4e = col(s4 * p['conv4_b'] + t4)

    # ---- spatial ------------------------------------------------------------
    s5, t5 = _bn_fold(p['bn5'])
    w5 = p['conv5_w'].reshape(I, C) * s5[:, None]
    w5e = jnp.pad(w5, ((0, 0), (1, 1)))                        # align with depth-padded x
    b5e = col(s5 * p['conv5_b'] + t5)

    w8 = p['conv8_w'].reshape(I, I)
    b8e = col(p['conv8_b'])

    def spatial_taps(w_raw, scale):
        # vstack of the 9 per-tap (I, I) matrices, BN scale folded in
        w = w_raw[:, :, 0] * scale[:, None, None, None]        # (I, I, 3, 3)
        return jnp.transpose(w, (2, 3, 0, 1)).reshape(9 * I, I)  # row t*I+co, col ci

    s6, t6 = _bn_fold(p['bn6'])
    w6t = spatial_taps(p['conv6_w'], s6)
    b6e = col(s6 * p['conv6_b'] + t6)

    s7, t7 = _bn_fold(p['bn7'])
    w7t = spatial_taps(p['conv7_w'], s7)
    b7e = col(s7 * p['conv7_b'] + t7)
    s7e = col(s7)                                              # BN7 scale on residual

    wfc = 0.5 * p['fc_w']                                      # fold the 0.5 fusion
    bfc = col(0.5 * p['fc_b'])

    # ---- 3x3 zero-padded shift matrices, block-diagonal over BB packed images ----
    S_img = np.zeros((9, HW, HW), np.float32)
    for kh in range(3):
        for kw in range(3):
            t = kh * 3 + kw
            for h in range(H):
                for w_ in range(W):
                    hh, ww = h + kh - 1, w_ + kw - 1
                    if 0 <= hh < H and 0 <= ww < W:
                        S_img[t, hh * W + ww, h * W + w_] = 1.0
    eye = np.eye(BB, dtype=np.float32)
    shifts = jnp.asarray(np.stack([np.kron(eye, S_img[t]) for t in range(9)]), bf16)

    # per-image sum pooling; lane-dense output (ncol columns, first BB are live)
    P = np.zeros((BB * HW, ncol), np.float32)
    for b in range(BB):
        P[b * HW:(b + 1) * HW, b] = 1.0
    pool = jnp.asarray(P, bf16)

    to16 = lambda a: a.astype(bf16)
    return (to16(w1e), b1e, to16(T2), b2e, to16(T3), b3e, s3e,
            to16(w4), b4e,
            to16(w5e), b5e, to16(w8), b8e,
            to16(w6t), b6e, to16(w7t), b7e, s7e,
            to16(wfc), bfc, shifts, pool)


# ----------------------------------------------------------------------------
# Encoder forward (matches the PyTorch module semantics, eval mode)
# ----------------------------------------------------------------------------
def encoder_forward(x, params, emb):
    """Default path of Encoder.forward (s_or_q='query'):
         0.5 * spatial_encoder(x) + 0.5 * spectral_encoder(x)."""
    B, C, H, W = x.shape
    HW = H * W
    I = 24
    NCOL = 128                                      # lane-dense output width

    # images packed per grid step (aim for >= 128 lanes)
    BB = max(1, min(B, max(1, 128 // HW)))
    nb = -(-B // BB)
    Bp = nb * BB
    LW = BB * HW
    inv_hw = 1.0 / HW

    operands = _prepare_operands(params, C, H, W, emb, BB, NCOL)

    # (nb, C+2, BB*HW): spectral axis zero-padded once (conv1's pad=1; conv5's
    # weight is zero-padded to match), BB images packed contiguously on lanes.
    xp = x.astype(jnp.float32).reshape(B, C, HW)
    if Bp != B:
        xp = jnp.pad(xp, ((0, Bp - B), (0, 0), (0, 0)))
    xp = xp.reshape(nb, BB, C, HW).transpose(0, 2, 1, 3).reshape(nb, C, LW)
    xp = jnp.pad(xp, ((0, 0), (1, 1), (0, 0)))

    def kernel(x_ref,
               w1_ref, b1_ref, t2_ref, b2_ref, t3_ref, b3_ref, s3_ref,
               w4_ref, b4_ref,
               w5_ref, b5_ref, w8_ref, b8_ref,
               w6_ref, b6_ref, w7_ref, b7_ref, s7_ref,
               wfc_ref, bfc_ref, sh_ref, pool_ref,
               o_ref):
        f32, bf16 = jnp.float32, jnp.bfloat16

        def mm(w_ref_, act):
            # weights arrive pre-cast to bf16; cast activations at the MXU
            # boundary, accumulate in f32.
            return jnp.dot(w_ref_[...], act.astype(bf16), preferred_element_type=f32)

        x_ = x_ref[0]                                          # (C+2, LW) f32

        # -------- Spectral branch: conv1..conv4 as VMEM-resident matmuls -----
        a1 = jnp.maximum(mm(w1_ref, x_) + b1_ref[...], 0.0)   # (24*D1, LW)
        a2 = jnp.maximum(mm(t2_ref, a1) + b2_ref[...], 0.0)   # (24*D1, LW)
        a3 = jnp.maximum(mm(t3_ref, a2) + s3_ref[...] * a1 + b3_ref[...], 0.0)
        a4 = jnp.maximum(mm(w4_ref, a3) + b4_ref[...], 0.0)   # (emb, LW)

        # -------- Spatial branch: conv5, conv8, conv6, conv7 ------------------
        a5 = jnp.maximum(mm(w5_ref, x_) + b5_ref[...], 0.0)   # (24, LW)
        res = mm(w8_ref, a5) + b8_ref[...]                    # (24, LW)

        def conv3x3(act, w_stack_ref):
            # g[t*I:(t+1)*I] = W_t @ act, computed as one stacked matmul;
            # conv = sum_t (W_t @ act) @ S_t, with S_4 == identity skipped.
            g = jnp.dot(w_stack_ref[...], act.astype(bf16),
                        preferred_element_type=f32)           # (9*I, LW)
            acc = g[4 * I:5 * I, :]
            for t in range(9):
                if t == 4:
                    continue
                acc = acc + jnp.dot(g[t * I:(t + 1) * I, :].astype(bf16),
                                    sh_ref[t], preferred_element_type=f32)
            return acc

        a6 = jnp.maximum(conv3x3(a5, w6_ref) + b6_ref[...], 0.0)
        a7 = jnp.maximum(conv3x3(a6, w7_ref) + s7_ref[...] * res + b7_ref[...], 0.0)

        # fc(mean(a7)) + 0.5*mean(a4) per packed image, as ONE lane-dense matmul
        fused = mm(wfc_ref, a7) + 0.5 * a4                    # (emb, LW)
        cols = jnp.dot(fused.astype(bf16), pool_ref[...],
                       preferred_element_type=f32) * inv_hw + bfc_ref[...]
        o_ref[0] = cols                                       # (emb, NCOL)

    def full_spec(a):
        zeros = (0,) * a.ndim
        return pl.BlockSpec(a.shape, lambda i, z=zeros: z)

    out = pl.pallas_call(
        kernel,
        out_shape=jax.ShapeDtypeStruct((nb, emb, NCOL), jnp.float32),
        grid=(nb,),
        in_specs=[pl.BlockSpec((1, C + 2, LW), lambda i: (i, 0, 0))]
                 + [full_spec(a) for a in operands],
        out_specs=pl.BlockSpec((1, emb, NCOL), lambda i: (i, 0, 0)),
        compiler_params=pltpu.CompilerParams(
            dimension_semantics=("parallel",)),
    )(xp, *operands)

    out = out[:, :, :BB].transpose(0, 2, 1).reshape(Bp, emb)
    # TODO(synk): WordEmbTransformers branch (s_or_q == 'support') is unused with default args.
    return out[:B]


# ----------------------------------------------------------------------------
# Pure-JAX (XLA) reference mirroring the PyTorch module, for validation
# ----------------------------------------------------------------------------
def _conv3d(x, w, b, stride=(1, 1, 1), padding=((0, 0), (0, 0), (0, 0))):
    out = jax.lax.conv_general_dilated(
        x, w, window_strides=stride, padding=padding,
        dimension_numbers=('NCDHW', 'OIDHW', 'NCDHW'),
        precision=jax.lax.Precision.HIGHEST)
    return out + b.reshape(1, -1, 1, 1, 1)


def _bn_eval(x, bn, eps=1e-5):
    gamma, beta, mean, var = bn
    sh = (1, -1, 1, 1, 1)
    return (x - mean.reshape(sh)) * (gamma.reshape(sh)
                                     / jnp.sqrt(var.reshape(sh) + eps)) + beta.reshape(sh)


def encoder_reference(x, p, emb):
    relu = jax.nn.relu
    x5 = x[:, None]                                                     # (B,1,C,H,W)
    # SpatialEncoder
    a = relu(_bn_eval(_conv3d(x5, p['conv5_w'], p['conv5_b']), p['bn5']))
    res = _conv3d(a, p['conv8_w'], p['conv8_b'])
    a = relu(_bn_eval(_conv3d(a, p['conv6_w'], p['conv6_b'],
                              padding=((0, 0), (1, 1), (1, 1))), p['bn6']))
    a = _conv3d(a, p['conv7_w'], p['conv7_b'], padding=((0, 0), (1, 1), (1, 1)))
    a = relu(_bn_eval(res + a, p['bn7']))
    pooled = a[:, :, 0].mean(axis=(2, 3))                               # (B, 24)
    spatial = pooled @ p['fc_w'].T + p['fc_b']                          # Dropout == id
    # SpectralEncoder
    a = relu(_bn_eval(_conv3d(x5, p['conv1_w'], p['conv1_b'], stride=(2, 1, 1),
                              padding=((1, 1), (0, 0), (0, 0))), p['bn1']))
    res = a
    a = relu(_bn_eval(_conv3d(a, p['conv2_w'], p['conv2_b'],
                              padding=((3, 3), (0, 0), (0, 0))), p['bn2']))
    a = _conv3d(a, p['conv3_w'], p['conv3_b'], padding=((3, 3), (0, 0), (0, 0)))
    a = relu(_bn_eval(res + a, p['bn3']))
    a = relu(_bn_eval(_conv3d(a, p['conv4_w'], p['conv4_b']), p['bn4']))
    spectral = a[:, :, 0].mean(axis=(2, 3))                             # (B, emb)
    return 0.5 * spatial + 0.5 * spectral


# ----------------------------------------------------------------------------
# Deterministic parameter init (PyTorch-layout tensors, converted above)
# ----------------------------------------------------------------------------
def init_params(key, n_dim, emb):
    D1 = (n_dim + 2 * 1 - 7) // 2 + 1
    keys = iter(jax.random.split(key, 64))

    def w(shape, scale=0.1):
        return (scale * jax.random.normal(next(keys), shape)).astype(jnp.float32)

    def bn(c):
        gamma = 1.0 + 0.1 * jax.random.normal(next(keys), (c,))
        beta = 0.1 * jax.random.normal(next(keys), (c,))
        mean = 0.1 * jax.random.normal(next(keys), (c,))
        var = 1.0 + 0.1 * jnp.abs(jax.random.normal(next(keys), (c,)))
        return (gamma.astype(jnp.float32), beta.astype(jnp.float32),
                mean.astype(jnp.float32), var.astype(jnp.float32))

    return dict(
        # SpatialEncoder
        conv5_w=w((24, 1, n_dim, 1, 1)), conv5_b=w((24,)), bn5=bn(24),
        conv8_w=w((24, 24, 1, 1, 1)), conv8_b=w((24,)),
        conv6_w=w((24, 24, 1, 3, 3)), conv6_b=w((24,)), bn6=bn(24),
        conv7_w=w((24, 24, 1, 3, 3)), conv7_b=w((24,)), bn7=bn(24),
        fc_w=w((emb, 24)), fc_b=w((emb,)),
        # SpectralEncoder
        conv1_w=w((24, 1, 7, 1, 1)), conv1_b=w((24,)), bn1=bn(24),
        conv2_w=w((24, 24, 7, 1, 1)), conv2_b=w((24,)), bn2=bn(24),
        conv3_w=w((24, 24, 7, 1, 1)), conv3_b=w((24,)), bn3=bn(24),
        conv4_w=w((emb, 24, D1, 1, 1)), conv4_b=w((emb,)), bn4=bn(emb),
    )


if __name__ == "__main__":
    B, C, H, emb = 2, 16, 8, 32        # batch, n_dimension, patch_size, emb_size
    key = jax.random.PRNGKey(0)
    kx, kp = jax.random.split(key)
    x = jax.random.normal(kx, (B, C, H, H), jnp.float32)   # NCHW, like the PyTorch module
    params = init_params(kp, C, emb)

    fwd = jax.jit(functools.partial(encoder_forward, emb=emb))
    out = jax.block_until_ready(fwd(x, params))
    assert out.shape == (B, emb) and out.dtype == jnp.float32
    assert bool(jnp.all(jnp.isfinite(out)))

    # check against a pure-JAX reference of the PyTorch module (bf16 MXU tolerance)
    ref = encoder_reference(x, params, emb)
    diff = float(jnp.max(jnp.abs(out - ref)))
    scale = float(jnp.max(jnp.abs(ref)))
    assert diff <= 5e-2 + 5e-2 * scale, (diff, scale)

    print("KERNEL_OK")
</pallas_src>

<mosaic_0001>
module attributes {stable_mosaic.version = 11 : i64} {
  func.func @kernel(%arg0: i32, %arg1: memref<1x18x128xf32, #tpu.memory_space<vmem>>, %arg2: memref<144x18xbf16, #tpu.memory_space<vmem>>, %arg3: memref<144x1xf32, #tpu.memory_space<vmem>>, %arg4: memref<144x144xbf16, #tpu.memory_space<vmem>>, %arg5: memref<144x1xf32, #tpu.memory_space<vmem>>, %arg6: memref<144x144xbf16, #tpu.memory_space<vmem>>, %arg7: memref<144x1xf32, #tpu.memory_space<vmem>>, %arg8: memref<144x1xf32, #tpu.memory_space<vmem>>, %arg9: memref<32x144xbf16, #tpu.memory_space<vmem>>, %arg10: memref<32x1xf32, #tpu.memory_space<vmem>>, %arg11: memref<24x18xbf16, #tpu.memory_space<vmem>>, %arg12: memref<24x1xf32, #tpu.memory_space<vmem>>, %arg13: memref<24x24xbf16, #tpu.memory_space<vmem>>, %arg14: memref<24x1xf32, #tpu.memory_space<vmem>>, %arg15: memref<216x24xbf16, #tpu.memory_space<vmem>>, %arg16: memref<24x1xf32, #tpu.memory_space<vmem>>, %arg17: memref<216x24xbf16, #tpu.memory_space<vmem>>, %arg18: memref<24x1xf32, #tpu.memory_space<vmem>>, %arg19: memref<24x1xf32, #tpu.memory_space<vmem>>, %arg20: memref<32x24xbf16, #tpu.memory_space<vmem>>, %arg21: memref<32x1xf32, #tpu.memory_space<vmem>>, %arg22: memref<9x128x128xbf16, #tpu.memory_space<vmem>>, %arg23: memref<128x128xbf16, #tpu.memory_space<vmem>>, %arg24: memref<1x32x128xf32, #tpu.memory_space<vmem>>) attributes {dimension_semantics = [#tpu.dimension_semantics<parallel>], iteration_bounds = array<i64: 1>, scalar_prefetch = 0 : i64, scratch_operands = 0 : i64, tpu.core_type = #tpu.core_type<tc>, window_params = [{transform_indices = @transform_0, window_bounds = array<i64: 1, 18, 128>}, {pipeline_mode = #tpu.pipeline_mode<synchronous>, transform_indices = @transform_1, window_bounds = array<i64: 144, 18>}, {pipeline_mode = #tpu.pipeline_mode<synchronous>, transform_indices = @transform_2, window_bounds = array<i64: 144, 1>}, {pipeline_mode = #tpu.pipeline_mode<synchronous>, transform_indices = @transform_3, window_bounds = array<i64: 144, 144>}, {pipeline_mode = #tpu.pipeline_mode<synchronous>, transform_indices = @transform_4, window_bounds = array<i64: 144, 1>}, {pipeline_mode = #tpu.pipeline_mode<synchronous>, transform_indices = @transform_5, window_bounds = array<i64: 144, 144>}, {pipeline_mode = #tpu.pipeline_mode<synchronous>, transform_indices = @transform_6, window_bounds = array<i64: 144, 1>}, {pipeline_mode = #tpu.pipeline_mode<synchronous>, transform_indices = @transform_7, window_bounds = array<i64: 144, 1>}, {pipeline_mode = #tpu.pipeline_mode<synchronous>, transform_indices = @transform_8, window_bounds = array<i64: 32, 144>}, {pipeline_mode = #tpu.pipeline_mode<synchronous>, transform_indices = @transform_9, window_bounds = array<i64: 32, 1>}, {pipeline_mode = #tpu.pipeline_mode<synchronous>, transform_indices = @transform_10, window_bounds = array<i64: 24, 18>}, {pipeline_mode = #tpu.pipeline_mode<synchronous>, transform_indices = @transform_11, window_bounds = array<i64: 24, 1>}, {pipeline_mode = #tpu.pipeline_mode<synchronous>, transform_indices = @transform_12, window_bounds = array<i64: 24, 24>}, {pipeline_mode = #tpu.pipeline_mode<synchronous>, transform_indices = @transform_13, window_bounds = array<i64: 24, 1>}, {pipeline_mode = #tpu.pipeline_mode<synchronous>, transform_indices = @transform_14, window_bounds = array<i64: 216, 24>}, {pipeline_mode = #tpu.pipeline_mode<synchronous>, transform_indices = @transform_15, window_bounds = array<i64: 24, 1>}, {pipeline_mode = #tpu.pipeline_mode<synchronous>, transform_indices = @transform_16, window_bounds = array<i64: 216, 24>}, {pipeline_mode = #tpu.pipeline_mode<synchronous>, transform_indices = @transform_17, window_bounds = array<i64: 24, 1>}, {pipeline_mode = #tpu.pipeline_mode<synchronous>, transform_indices = @transform_18, window_bounds = array<i64: 24, 1>}, {pipeline_mode = #tpu.pipeline_mode<synchronous>, transform_indices = @transform_19, window_bounds = array<i64: 32, 24>}, {pipeline_mode = #tpu.pipeline_mode<synchronous>, transform_indices = @transform_20, window_bounds = array<i64: 32, 1>}, {pipeline_mode = #tpu.pipeline_mode<synchronous>, transform_indices = @transform_21, window_bounds = array<i64: 9, 128, 128>}, {pipeline_mode = #tpu.pipeline_mode<synchronous>, transform_indices = @transform_22, window_bounds = array<i64: 128, 128>}, {transform_indices = @transform_23, window_bounds = array<i64: 1, 32, 128>}]} {
    %c0 = arith.constant 0 : index
    %c0_0 = arith.constant 0 : index
    %c0_1 = arith.constant 0 : index
    %0 = vector.load %arg1[%c0, %c0_0, %c0_1] : memref<1x18x128xf32, #tpu.memory_space<vmem>>, vector<1x18x128xf32>
    %1 = vector.shape_cast %0 : vector<1x18x128xf32> to vector<18x128xf32>
    %c0_2 = arith.constant 0 : index
    %c0_3 = arith.constant 0 : index
    %2 = vector.load %arg2[%c0_2, %c0_3] : memref<144x18xbf16, #tpu.memory_space<vmem>>, vector<144x18xbf16>
    %3 = arith.truncf %1 : vector<18x128xf32> to vector<18x128xbf16>
    %cst = arith.constant dense<0.000000e+00> : vector<144x128xf32>
    %4 = tpu.matmul %2, %3, %cst {dimension_numbers = #tpu.dot_dimension_numbers<[1], [0], [0], [1], [0, 0, 1, 1], [], []>} : vector<144x18xbf16>, vector<18x128xbf16>, vector<144x128xf32> -> vector<144x128xf32>
    %c0_4 = arith.constant 0 : index
    %c0_5 = arith.constant 0 : index
    %5 = vector.load %arg3[%c0_4, %c0_5] : memref<144x1xf32, #tpu.memory_space<vmem>>, vector<144x1xf32>
    %6 = vector.broadcast %5 : vector<144x1xf32> to vector<144x128xf32>
    %7 = arith.addf %4, %6 : vector<144x128xf32>
    %cst_6 = arith.constant 0.000000e+00 : f32
    %8 = vector.broadcast %cst_6 : f32 to vector<144x128xf32>
    %9 = arith.maximumf %7, %8 : vector<144x128xf32>
    %c0_7 = arith.constant 0 : index
    %c0_8 = arith.constant 0 : index
    %10 = vector.load %arg4[%c0_7, %c0_8] : memref<144x144xbf16, #tpu.memory_space<vmem>>, vector<144x144xbf16>
    %11 = arith.truncf %9 : vector<144x128xf32> to vector<144x128xbf16>
    %cst_9 = arith.constant dense<0.000000e+00> : vector<144x128xf32>
    %12 = tpu.matmul %10, %11, %cst_9 {dimension_numbers = #tpu.dot_dimension_numbers<[1], [0], [0], [1], [0, 0, 1, 1], [], []>} : vector<144x144xbf16>, vector<144x128xbf16>, vector<144x128xf32> -> vector<144x128xf32>
    %c0_10 = arith.constant 0 : index
    %c0_11 = arith.constant 0 : index
    %13 = vector.load %arg5[%c0_10, %c0_11] : memref<144x1xf32, #tpu.memory_space<vmem>>, vector<144x1xf32>
    %14 = vector.broadcast %13 : vector<144x1xf32> to vector<144x128xf32>
    %15 = arith.addf %12, %14 : vector<144x128xf32>
    %cst_12 = arith.constant 0.000000e+00 : f32
    %16 = vector.broadcast %cst_12 : f32 to vector<144x128xf32>
    %17 = arith.maximumf %15, %16 : vector<144x128xf32>
    %c0_13 = arith.constant 0 : index
    %c0_14 = arith.constant 0 : index
    %18 = vector.load %arg6[%c0_13, %c0_14] : memref<144x144xbf16, #tpu.memory_space<vmem>>, vector<144x144xbf16>
    %19 = arith.truncf %17 : vector<144x128xf32> to vector<144x128xbf16>
    %cst_15 = arith.constant dense<0.000000e+00> : vector<144x128xf32>
    %20 = tpu.matmul %18, %19, %cst_15 {dimension_numbers = #tpu.dot_dimension_numbers<[1], [0], [0], [1], [0, 0, 1, 1], [], []>} : vector<144x144xbf16>, vector<144x128xbf16>, vector<144x128xf32> -> vector<144x128xf32>
    %c0_16 = arith.constant 0 : index
    %c0_17 = arith.constant 0 : index
    %21 = vector.load %arg8[%c0_16, %c0_17] : memref<144x1xf32, #tpu.memory_space<vmem>>, vector<144x1xf32>
    %22 = vector.broadcast %21 : vector<144x1xf32> to vector<144x128xf32>
    %23 = arith.mulf %22, %9 : vector<144x128xf32>
    %24 = arith.addf %20, %23 : vector<144x128xf32>
    %c0_18 = arith.constant 0 : index
    %c0_19 = arith.constant 0 : index
    %25 = vector.load %arg7[%c0_18, %c0_19] : memref<144x1xf32, #tpu.memory_space<vmem>>, vector<144x1xf32>
    %26 = vector.broadcast %25 : vector<144x1xf32> to vector<144x128xf32>
    %27 = arith.addf %24, %26 : vector<144x128xf32>
    %cst_20 = arith.constant 0.000000e+00 : f32
    %28 = vector.broadcast %cst_20 : f32 to vector<144x128xf32>
    %29 = arith.maximumf %27, %28 : vector<144x128xf32>
    %c0_21 = arith.constant 0 : index
    %c0_22 = arith.constant 0 : index
    %30 = vector.load %arg9[%c0_21, %c0_22] : memref<32x144xbf16, #tpu.memory_space<vmem>>, vector<32x144xbf16>
    %31 = arith.truncf %29 : vector<144x128xf32> to vector<144x128xbf16>
    %cst_23 = arith.constant dense<0.000000e+00> : vector<32x128xf32>
    %32 = tpu.matmul %30, %31, %cst_23 {dimension_numbers = #tpu.dot_dimension_numbers<[1], [0], [0], [1], [0, 0, 1, 1], [], []>} : vector<32x144xbf16>, vector<144x128xbf16>, vector<32x128xf32> -> vector<32x128xf32>
    %c0_24 = arith.constant 0 : index
    %c0_25 = arith.constant 0 : index
    %33 = vector.load %arg10[%c0_24, %c0_25] : memref<32x1xf32, #tpu.memory_space<vmem>>, vector<32x1xf32>
    %34 = vector.broadcast %33 : vector<32x1xf32> to vector<32x128xf32>
    %35 = arith.addf %32, %34 : vector<32x128xf32>
    %cst_26 = arith.constant 0.000000e+00 : f32
    %36 = vector.broadcast %cst_26 : f32 to vector<32x128xf32>
    %37 = arith.maximumf %35, %36 : vector<32x128xf32>
    %c0_27 = arith.constant 0 : index
    %c0_28 = arith.constant 0 : index
    %38 = vector.load %arg11[%c0_27, %c0_28] : memref<24x18xbf16, #tpu.memory_space<vmem>>, vector<24x18xbf16>
    %39 = arith.truncf %1 : vector<18x128xf32> to vector<18x128xbf16>
    %cst_29 = arith.constant dense<0.000000e+00> : vector<24x128xf32>
    %40 = tpu.matmul %38, %39, %cst_29 {dimension_numbers = #tpu.dot_dimension_numbers<[1], [0], [0], [1], [0, 0, 1, 1], [], []>} : vector<24x18xbf16>, vector<18x128xbf16>, vector<24x128xf32> -> vector<24x128xf32>
    %c0_30 = arith.constant 0 : index
    %c0_31 = arith.constant 0 : index
    %41 = vector.load %arg12[%c0_30, %c0_31] : memref<24x1xf32, #tpu.memory_space<vmem>>, vector<24x1xf32>
    %42 = vector.broadcast %41 : vector<24x1xf32> to vector<24x128xf32>
    %43 = arith.addf %40, %42 : vector<24x128xf32>
    %cst_32 = arith.constant 0.000000e+00 : f32
    %44 = vector.broadcast %cst_32 : f32 to vector<24x128xf32>
    %45 = arith.maximumf %43, %44 : vector<24x128xf32>
    %c0_33 = arith.constant 0 : index
    %c0_34 = arith.constant 0 : index
    %46 = vector.load %arg13[%c0_33, %c0_34] : memref<24x24xbf16, #tpu.memory_space<vmem>>, vector<24x24xbf16>
    %47 = arith.truncf %45 : vector<24x128xf32> to vector<24x128xbf16>
    %cst_35 = arith.constant dense<0.000000e+00> : vector<24x128xf32>
    %48 = tpu.matmul %46, %47, %cst_35 {dimension_numbers = #tpu.dot_dimension_numbers<[1], [0], [0], [1], [0, 0, 1, 1], [], []>} : vector<24x24xbf16>, vector<24x128xbf16>, vector<24x128xf32> -> vector<24x128xf32>
    %c0_36 = arith.constant 0 : index
    %c0_37 = arith.constant 0 : index
    %49 = vector.load %arg14[%c0_36, %c0_37] : memref<24x1xf32, #tpu.memory_space<vmem>>, vector<24x1xf32>
    %50 = vector.broadcast %49 : vector<24x1xf32> to vector<24x128xf32>
    %51 = arith.addf %48, %50 : vector<24x128xf32>
    %c0_38 = arith.constant 0 : index
    %c0_39 = arith.constant 0 : index
    %52 = vector.load %arg15[%c0_38, %c0_39] : memref<216x24xbf16, #tpu.memory_space<vmem>>, vector<216x24xbf16>
    %53 = arith.truncf %45 : vector<24x128xf32> to vector<24x128xbf16>
    %cst_40 = arith.constant dense<0.000000e+00> : vector<216x128xf32>
    %54 = tpu.matmul %52, %53, %cst_40 {dimension_numbers = #tpu.dot_dimension_numbers<[1], [0], [0], [1], [0, 0, 1, 1], [], []>} : vector<216x24xbf16>, vector<24x128xbf16>, vector<216x128xf32> -> vector<216x128xf32>
    %55 = vector.extract_strided_slice %54 {offsets = [96, 0], sizes = [24, 128], strides = [1, 1]} : vector<216x128xf32> to vector<24x128xf32>
    %56 = vector.extract_strided_slice %54 {offsets = [0, 0], sizes = [24, 128], strides = [1, 1]} : vector<216x128xf32> to vector<24x128xf32>
    %57 = arith.truncf %56 : vector<24x128xf32> to vector<24x128xbf16>
    %c0_41 = arith.constant 0 : index
    %c0_42 = arith.constant 0 : index
    %c0_43 = arith.constant 0 : index
    %58 = vector.load %arg22[%c0_41, %c0_42, %c0_43] : memref<9x128x128xbf16, #tpu.memory_space<vmem>>, vector<1x128x128xbf16>
    %59 = vector.shape_cast %58 : vector<1x128x128xbf16> to vector<128x128xbf16>
    %cst_44 = arith.constant dense<0.000000e+00> : vector<24x128xf32>
    %60 = tpu.matmul %57, %59, %cst_44 {dimension_numbers = #tpu.dot_dimension_numbers<[1], [0], [0], [1], [0, 0, 1, 1], [], []>} : vector<24x128xbf16>, vector<128x128xbf16>, vector<24x128xf32> -> vector<24x128xf32>
    %61 = arith.addf %55, %60 : vector<24x128xf32>
    %62 = vector.extract_strided_slice %54 {offsets = [24, 0], sizes = [24, 128], strides = [1, 1]} : vector<216x128xf32> to vector<24x128xf32>
    %63 = arith.truncf %62 : vector<24x128xf32> to vector<24x128xbf16>
    %c1 = arith.constant 1 : index
    %c0_45 = arith.constant 0 : index
    %c0_46 = arith.constant 0 : index
    %64 = vector.load %arg22[%c1, %c0_45, %c0_46] : memref<9x128x128xbf16, #tpu.memory_space<vmem>>, vector<1x128x128xbf16>
    %65 = vector.shape_cast %64 : vector<1x128x128xbf16> to vector<128x128xbf16>
    %cst_47 = arith.constant dense<0.000000e+00> : vector<24x128xf32>
    %66 = tpu.matmul %63, %65, %cst_47 {dimension_numbers = #tpu.dot_dimension_numbers<[1], [0], [0], [1], [0, 0, 1, 1], [], []>} : vector<24x128xbf16>, vector<128x128xbf16>, vector<24x128xf32> -> vector<24x128xf32>
    %67 = arith.addf %61, %66 : vector<24x128xf32>
    %68 = vector.extract_strided_slice %54 {offsets = [48, 0], sizes = [24, 128], strides = [1, 1]} : vector<216x128xf32> to vector<24x128xf32>
    %69 = arith.truncf %68 : vector<24x128xf32> to vector<24x128xbf16>
    %c2 = arith.constant 2 : index
    %c0_48 = arith.constant 0 : index
    %c0_49 = arith.constant 0 : index
    %70 = vector.load %arg22[%c2, %c0_48, %c0_49] : memref<9x128x128xbf16, #tpu.memory_space<vmem>>, vector<1x128x128xbf16>
    %71 = vector.shape_cast %70 : vector<1x128x128xbf16> to vector<128x128xbf16>
    %cst_50 = arith.constant dense<0.000000e+00> : vector<24x128xf32>
    %72 = tpu.matmul %69, %71, %cst_50 {dimension_numbers = #tpu.dot_dimension_numbers<[1], [0], [0], [1], [0, 0, 1, 1], [], []>} : vector<24x128xbf16>, vector<128x128xbf16>, vector<24x128xf32> -> vector<24x128xf32>
    %73 = arith.addf %67, %72 : vector<24x128xf32>
    %74 = vector.extract_strided_slice %54 {offsets = [72, 0], sizes = [24, 128], strides = [1, 1]} : vector<216x128xf32> to vector<24x128xf32>
    %75 = arith.truncf %74 : vector<24x128xf32> to vector<24x128xbf16>
    %c3 = arith.constant 3 : index
    %c0_51 = arith.constant 0 : index
    %c0_52 = arith.constant 0 : index
    %76 = vector.load %arg22[%c3, %c0_51, %c0_52] : memref<9x128x128xbf16, #tpu.memory_space<vmem>>, vector<1x128x128xbf16>
    %77 = vector.shape_cast %76 : vector<1x128x128xbf16> to vector<128x128xbf16>
    %cst_53 = arith.constant dense<0.000000e+00> : vector<24x128xf32>
    %78 = tpu.matmul %75, %77, %cst_53 {dimension_numbers = #tpu.dot_dimension_numbers<[1], [0], [0], [1], [0, 0, 1, 1], [], []>} : vector<24x128xbf16>, vector<128x128xbf16>, vector<24x128xf32> -> vector<24x128xf32>
    %79 = arith.addf %73, %78 : vector<24x128xf32>
    %80 = vector.extract_strided_slice %54 {offsets = [120, 0], sizes = [24, 128], strides = [1, 1]} : vector<216x128xf32> to vector<24x128xf32>
    %81 = arith.truncf %80 : vector<24x128xf32> to vector<24x128xbf16>
    %c5 = arith.constant 5 : index
    %c0_54 = arith.constant 0 : index
    %c0_55 = arith.constant 0 : index
    %82 = vector.load %arg22[%c5, %c0_54, %c0_55] : memref<9x128x128xbf16, #tpu.memory_space<vmem>>, vector<1x128x128xbf16>
    %83 = vector.shape_cast %82 : vector<1x128x128xbf16> to vector<128x128xbf16>
    %cst_56 = arith.constant dense<0.000000e+00> : vector<24x128xf32>
    %84 = tpu.matmul %81, %83, %cst_56 {dimension_numbers = #tpu.dot_dimension_numbers<[1], [0], [0], [1], [0, 0, 1, 1], [], []>} : vector<24x128xbf16>, vector<128x128xbf16>, vector<24x128xf32> -> vector<24x128xf32>
    %85 = arith.addf %79, %84 : vector<24x128xf32>
    %86 = vector.extract_strided_slice %54 {offsets = [144, 0], sizes = [24, 128], strides = [1, 1]} : vector<216x128xf32> to vector<24x128xf32>
    %87 = arith.truncf %86 : vector<24x128xf32> to vector<24x128xbf16>
    %c6 = arith.constant 6 : index
    %c0_57 = arith.constant 0 : index
    %c0_58 = arith.constant 0 : index
    %88 = vector.load %arg22[%c6, %c0_57, %c0_58] : memref<9x128x128xbf16, #tpu.memory_space<vmem>>, vector<1x128x128xbf16>
    %89 = vector.shape_cast %88 : vector<1x128x128xbf16> to vector<128x128xbf16>
    %cst_59 = arith.constant dense<0.000000e+00> : vector<24x128xf32>
    %90 = tpu.matmul %87, %89, %cst_59 {dimension_numbers = #tpu.dot_dimension_numbers<[1], [0], [0], [1], [0, 0, 1, 1], [], []>} : vector<24x128xbf16>, vector<128x128xbf16>, vector<24x128xf32> -> vector<24x128xf32>
    %91 = arith.addf %85, %90 : vector<24x128xf32>
    %92 = vector.extract_strided_slice %54 {offsets = [168, 0], sizes = [24, 128], strides = [1, 1]} : vector<216x128xf32> to vector<24x128xf32>
    %93 = arith.truncf %92 : vector<24x128xf32> to vector<24x128xbf16>
    %c7 = arith.constant 7 : index
    %c0_60 = arith.constant 0 : index
    %c0_61 = arith.constant 0 : index
    %94 = vector.load %arg22[%c7, %c0_60, %c0_61] : memref<9x128x128xbf16, #tpu.memory_space<vmem>>, vector<1x128x128xbf16>
    %95 = vector.shape_cast %94 : vector<1x128x128xbf16> to vector<128x128xbf16>
    %cst_62 = arith.constant dense<0.000000e+00> : vector<24x128xf32>
    %96 = tpu.matmul %93, %95, %cst_62 {dimension_numbers = #tpu.dot_dimension_numbers<[1], [0], [0], [1], [0, 0, 1, 1], [], []>} : vector<24x128xbf16>, vector<128x128xbf16>, vector<24x128xf32> -> vector<24x128xf32>
    %97 = arith.addf %91, %96 : vector<24x128xf32>
    %98 = vector.extract_strided_slice %54 {offsets = [192, 0], sizes = [24, 128], strides = [1, 1]} : vector<216x128xf32> to vector<24x128xf32>
    %99 = arith.truncf %98 : vector<24x128xf32> to vector<24x128xbf16>
    %c8 = arith.constant 8 : index
    %c0_63 = arith.constant 0 : index
    %c0_64 = arith.constant 0 : index
    %100 = vector.load %arg22[%c8, %c0_63, %c0_64] : memref<9x128x128xbf16, #tpu.memory_space<vmem>>, vector<1x128x128xbf16>
    %101 = vector.shape_cast %100 : vector<1x128x128xbf16> to vector<128x128xbf16>
    %cst_65 = arith.constant dense<0.000000e+00> : vector<24x128xf32>
    %102 = tpu.matmul %99, %101, %cst_65 {dimension_numbers = #tpu.dot_dimension_numbers<[1], [0], [0], [1], [0, 0, 1, 1], [], []>} : vector<24x128xbf16>, vector<128x128xbf16>, vector<24x128xf32> -> vector<24x128xf32>
    %103 = arith.addf %97, %102 : vector<24x128xf32>
    %c0_66 = arith.constant 0 : index
    %c0_67 = arith.constant 0 : index
    %104 = vector.load %arg16[%c0_66, %c0_67] : memref<24x1xf32, #tpu.memory_space<vmem>>, vector<24x1xf32>
    %105 = vector.broadcast %104 : vector<24x1xf32> to vector<24x128xf32>
    %106 = arith.addf %103, %105 : vector<24x128xf32>
    %cst_68 = arith.constant 0.000000e+00 : f32
    %107 = vector.broadcast %cst_68 : f32 to vector<24x128xf32>
    %108 = arith.maximumf %106, %107 : vector<24x128xf32>
    %c0_69 = arith.constant 0 : index
    %c0_70 = arith.constant 0 : index
    %109 = vector.load %arg17[%c0_69, %c0_70] : memref<216x24xbf16, #tpu.memory_space<vmem>>, vector<216x24xbf16>
    %110 = arith.truncf %108 : vector<24x128xf32> to vector<24x128xbf16>
    %cst_71 = arith.constant dense<0.000000e+00> : vector<216x128xf32>
    %111 = tpu.matmul %109, %110, %cst_71 {dimension_numbers = #tpu.dot_dimension_numbers<[1], [0], [0], [1], [0, 0, 1, 1], [], []>} : vector<216x24xbf16>, vector<24x128xbf16>, vector<216x128xf32> -> vector<216x128xf32>
    %112 = vector.extract_strided_slice %111 {offsets = [96, 0], sizes = [24, 128], strides = [1, 1]} : vector<216x128xf32> to vector<24x128xf32>
    %113 = vector.extract_strided_slice %111 {offsets = [0, 0], sizes = [24, 128], strides = [1, 1]} : vector<216x128xf32> to vector<24x128xf32>
    %114 = arith.truncf %113 : vector<24x128xf32> to vector<24x128xbf16>
    %c0_72 = arith.constant 0 : index
    %c0_73 = arith.constant 0 : index
    %c0_74 = arith.constant 0 : index
    %115 = vector.load %arg22[%c0_72, %c0_73, %c0_74] : memref<9x128x128xbf16, #tpu.memory_space<vmem>>, vector<1x128x128xbf16>
    %116 = vector.shape_cast %115 : vector<1x128x128xbf16> to vector<128x128xbf16>
    %cst_75 = arith.constant dense<0.000000e+00> : vector<24x128xf32>
    %117 = tpu.matmul %114, %116, %cst_75 {dimension_numbers = #tpu.dot_dimension_numbers<[1], [0], [0], [1], [0, 0, 1, 1], [], []>} : vector<24x128xbf16>, vector<128x128xbf16>, vector<24x128xf32> -> vector<24x128xf32>
    %118 = arith.addf %112, %117 : vector<24x128xf32>
    %119 = vector.extract_strided_slice %111 {offsets = [24, 0], sizes = [24, 128], strides = [1, 1]} : vector<216x128xf32> to vector<24x128xf32>
    %120 = arith.truncf %119 : vector<24x128xf32> to vector<24x128xbf16>
    %c1_76 = arith.constant 1 : index
    %c0_77 = arith.constant 0 : index
    %c0_78 = arith.constant 0 : index
    %121 = vector.load %arg22[%c1_76, %c0_77, %c0_78] : memref<9x128x128xbf16, #tpu.memory_space<vmem>>, vector<1x128x128xbf16>
    %122 = vector.shape_cast %121 : vector<1x128x128xbf16> to vector<128x128xbf16>
    %cst_79 = arith.constant dense<0.000000e+00> : vector<24x128xf32>
    %123 = tpu.matmul %120, %122, %cst_79 {dimension_numbers = #tpu.dot_dimension_numbers<[1], [0], [0], [1], [0, 0, 1, 1], [], []>} : vector<24x128xbf16>, vector<128x128xbf16>, vector<24x128xf32> -> vector<24x128xf32>
    %124 = arith.addf %118, %123 : vector<24x128xf32>
    %125 = vector.extract_strided_slice %111 {offsets = [48, 0], sizes = [24, 128], strides = [1, 1]} : vector<216x128xf32> to vector<24x128xf32>
    %126 = arith.truncf %125 : vector<24x128xf32> to vector<24x128xbf16>
    %c2_80 = arith.constant 2 : index
    %c0_81 = arith.constant 0 : index
    %c0_82 = arith.constant 0 : index
    %127 = vector.load %arg22[%c2_80, %c0_81, %c0_82] : memref<9x128x128xbf16, #tpu.memory_space<vmem>>, vector<1x128x128xbf16>
    %128 = vector.shape_cast %127 : vector<1x128x128xbf16> to vector<128x128xbf16>
    %cst_83 = arith.constant dense<0.000000e+00> : vector<24x128xf32>
    %129 = tpu.matmul %126, %128, %cst_83 {dimension_numbers = #tpu.dot_dimension_numbers<[1], [0], [0], [1], [0, 0, 1, 1], [], []>} : vector<24x128xbf16>, vector<128x128xbf16>, vector<24x128xf32> -> vector<24x128xf32>
    %130 = arith.addf %124, %129 : vector<24x128xf32>
    %131 = vector.extract_strided_slice %111 {offsets = [72, 0], sizes = [24, 128], strides = [1, 1]} : vector<216x128xf32> to vector<24x128xf32>
    %132 = arith.truncf %131 : vector<24x128xf32> to vector<24x128xbf16>
    %c3_84 = arith.constant 3 : index
    %c0_85 = arith.constant 0 : index
    %c0_86 = arith.constant 0 : index
    %133 = vector.load %arg22[%c3_84, %c0_85, %c0_86] : memref<9x128x128xbf16, #tpu.memory_space<vmem>>, vector<1x128x128xbf16>
    %134 = vector.shape_cast %133 : vector<1x128x128xbf16> to vector<128x128xbf16>
    %cst_87 = arith.constant dense<0.000000e+00> : vector<24x128xf32>
    %135 = tpu.matmul %132, %134, %cst_87 {dimension_numbers = #tpu.dot_dimension_numbers<[1], [0], [0], [1], [0, 0, 1, 1], [], []>} : vector<24x128xbf16>, vector<128x128xbf16>, vector<24x128xf32> -> vector<24x128xf32>
    %136 = arith.addf %130, %135 : vector<24x128xf32>
    %137 = vector.extract_strided_slice %111 {offsets = [120, 0], sizes = [24, 128], strides = [1, 1]} : vector<216x128xf32> to vector<24x128xf32>
    %138 = arith.truncf %137 : vector<24x128xf32> to vector<24x128xbf16>
    %c5_88 = arith.constant 5 : index
    %c0_89 = arith.constant 0 : index
    %c0_90 = arith.constant 0 : index
    %139 = vector.load %arg22[%c5_88, %c0_89, %c0_90] : memref<9x128x128xbf16, #tpu.memory_space<vmem>>, vector<1x128x128xbf16>
    %140 = vector.shape_cast %139 : vector<1x128x128xbf16> to vector<128x128xbf16>
    %cst_91 = arith.constant dense<0.000000e+00> : vector<24x128xf32>
    %141 = tpu.matmul %138, %140, %cst_91 {dimension_numbers = #tpu.dot_dimension_numbers<[1], [0], [0], [1], [0, 0, 1, 1], [], []>} : vector<24x128xbf16>, vector<128x128xbf16>, vector<24x128xf32> -> vector<24x128xf32>
    %142 = arith.addf %136, %141 : vector<24x128xf32>
    %143 = vector.extract_strided_slice %111 {offsets = [144, 0], sizes = [24, 128], strides = [1, 1]} : vector<216x128xf32> to vector<24x128xf32>
    %144 = arith.truncf %143 : vector<24x128xf32> to vector<24x128xbf16>
    %c6_92 = arith.constant 6 : index
    %c0_93 = arith.constant 0 : index
    %c0_94 = arith.constant 0 : index
    %145 = vector.load %arg22[%c6_92, %c0_93, %c0_94] : memref<9x128x128xbf16, #tpu.memory_space<vmem>>, vector<1x128x128xbf16>
    %146 = vector.shape_cast %145 : vector<1x128x128xbf16> to vector<128x128xbf16>
    %cst_95 = arith.constant dense<0.000000e+00> : vector<24x128xf32>
    %147 = tpu.matmul %144, %146, %cst_95 {dimension_numbers = #tpu.dot_dimension_numbers<[1], [0], [0], [1], [0, 0, 1, 1], [], []>} : vector<24x128xbf16>, vector<128x128xbf16>, vector<24x128xf32> -> vector<24x128xf32>
    %148 = arith.addf %142, %147 : vector<24x128xf32>
    %149 = vector.extract_strided_slice %111 {offsets = [168, 0], sizes = [24, 128], strides = [1, 1]} : vector<216x128xf32> to vector<24x128xf32>
    %150 = arith.truncf %149 : vector<24x128xf32> to vector<24x128xbf16>
    %c7_96 = arith.constant 7 : index
    %c0_97 = arith.constant 0 : index
    %c0_98 = arith.constant 0 : index
    %151 = vector.load %arg22[%c7_96, %c0_97, %c0_98] : memref<9x128x128xbf16, #tpu.memory_space<vmem>>, vector<1x128x128xbf16>
    %152 = vector.shape_cast %151 : vector<1x128x128xbf16> to vector<128x128xbf16>
    %cst_99 = arith.constant dense<0.000000e+00> : vector<24x128xf32>
    %153 = tpu.matmul %150, %152, %cst_99 {dimension_numbers = #tpu.dot_dimension_numbers<[1], [0], [0], [1], [0, 0, 1, 1], [], []>} : vector<24x128xbf16>, vector<128x128xbf16>, vector<24x128xf32> -> vector<24x128xf32>
    %154 = arith.addf %148, %153 : vector<24x128xf32>
    %155 = vector.extract_strided_slice %111 {offsets = [192, 0], sizes = [24, 128], strides = [1, 1]} : vector<216x128xf32> to vector<24x128xf32>
    %156 = arith.truncf %155 : vector<24x128xf32> to vector<24x128xbf16>
    %c8_100 = arith.constant 8 : index
    %c0_101 = arith.constant 0 : index
    %c0_102 = arith.constant 0 : index
    %157 = vector.load %arg22[%c8_100, %c0_101, %c0_102] : memref<9x128x128xbf16, #tpu.memory_space<vmem>>, vector<1x128x128xbf16>
    %158 = vector.shape_cast %157 : vector<1x128x128xbf16> to vector<128x128xbf16>
    %cst_103 = arith.constant dense<0.000000e+00> : vector<24x128xf32>
    %159 = tpu.matmul %156, %158, %cst_103 {dimension_numbers = #tpu.dot_dimension_numbers<[1], [0], [0], [1], [0, 0, 1, 1], [], []>} : vector<24x128xbf16>, vector<128x128xbf16>, vector<24x128xf32> -> vector<24x128xf32>
    %160 = arith.addf %154, %159 : vector<24x128xf32>
    %c0_104 = arith.constant 0 : index
    %c0_105 = arith.constant 0 : index
    %161 = vector.load %arg19[%c0_104, %c0_105] : memref<24x1xf32, #tpu.memory_space<vmem>>, vector<24x1xf32>
    %162 = vector.broadcast %161 : vector<24x1xf32> to vector<24x128xf32>
    %163 = arith.mulf %162, %51 : vector<24x128xf32>
    %164 = arith.addf %160, %163 : vector<24x128xf32>
    %c0_106 = arith.constant 0 : index
    %c0_107 = arith.constant 0 : index
    %165 = vector.load %arg18[%c0_106, %c0_107] : memref<24x1xf32, #tpu.memory_space<vmem>>, vector<24x1xf32>
    %166 = vector.broadcast %165 : vector<24x1xf32> to vector<24x128xf32>
    %167 = arith.addf %164, %166 : vector<24x128xf32>
    %cst_108 = arith.constant 0.000000e+00 : f32
    %168 = vector.broadcast %cst_108 : f32 to vector<24x128xf32>
    %169 = arith.maximumf %167, %168 : vector<24x128xf32>
    %c0_109 = arith.constant 0 : index
    %c0_110 = arith.constant 0 : index
    %170 = vector.load %arg20[%c0_109, %c0_110] : memref<32x24xbf16, #tpu.memory_space<vmem>>, vector<32x24xbf16>
    %171 = arith.truncf %169 : vector<24x128xf32> to vector<24x128xbf16>
    %cst_111 = arith.constant dense<0.000000e+00> : vector<32x128xf32>
    %172 = tpu.matmul %170, %171, %cst_111 {dimension_numbers = #tpu.dot_dimension_numbers<[1], [0], [0], [1], [0, 0, 1, 1], [], []>} : vector<32x24xbf16>, vector<24x128xbf16>, vector<32x128xf32> -> vector<32x128xf32>
    %cst_112 = arith.constant 5.000000e-01 : f32
    %173 = vector.broadcast %cst_112 : f32 to vector<32x128xf32>
    %174 = arith.mulf %173, %37 : vector<32x128xf32>
    %175 = arith.addf %172, %174 : vector<32x128xf32>
    %176 = arith.truncf %175 : vector<32x128xf32> to vector<32x128xbf16>
    %c0_113 = arith.constant 0 : index
    %c0_114 = arith.constant 0 : index
    %177 = vector.load %arg23[%c0_113, %c0_114] : memref<128x128xbf16, #tpu.memory_space<vmem>>, vector<128x128xbf16>
    %cst_115 = arith.constant dense<0.000000e+00> : vector<32x128xf32>
    %178 = tpu.matmul %176, %177, %cst_115 {dimension_numbers = #tpu.dot_dimension_numbers<[1], [0], [0], [1], [0, 0, 1, 1], [], []>} : vector<32x128xbf16>, vector<128x128xbf16>, vector<32x128xf32> -> vector<32x128xf32>
    %cst_116 = arith.constant 1.562500e-02 : f32
    %179 = vector.broadcast %cst_116 : f32 to vector<32x128xf32>
    %180 = arith.mulf %178, %179 : vector<32x128xf32>
    %c0_117 = arith.constant 0 : index
    %c0_118 = arith.constant 0 : index
    %181 = vector.load %arg21[%c0_117, %c0_118] : memref<32x1xf32, #tpu.memory_space<vmem>>, vector<32x1xf32>
    %182 = vector.broadcast %181 : vector<32x1xf32> to vector<32x128xf32>
    %183 = arith.addf %180, %182 : vector<32x128xf32>
    %c0_119 = arith.constant 0 : index
    %c0_120 = arith.constant 0 : index
    %c0_121 = arith.constant 0 : index
    %184 = vector.load %arg24[%c0_119, %c0_120, %c0_121] : memref<1x32x128xf32, #tpu.memory_space<vmem>>, vector<1x32x128xf32>
    %185 = vector.shape_cast %184 : vector<1x32x128xf32> to vector<32x128xf32>
    %186 = vector.shape_cast %183 : vector<32x128xf32> to vector<1x32x128xf32>
    tpu.vector_store %arg24[%c0_119, %c0_120, %c0_121], %186 {strides = array<i32>} : memref<1x32x128xf32, #tpu.memory_space<vmem>>, vector<1x32x128xf32>,
    return
  }
  func.func @transform_0(%arg0: i32) -> (i32, i32, i32) {
    %c0_i32 = arith.constant 0 : i32
    %c0_i32_0 = arith.constant 0 : i32
    %c0_i32_1 = arith.constant 0 : i32
    return %arg0, %c0_i32, %c0_i32_0 : i32, i32, i32
  }
  func.func @transform_1(%arg0: i32) -> (i32, i32) {
    %c0_i32 = arith.constant 0 : i32
    %c0_i32_0 = arith.constant 0 : i32
    %c0_i32_1 = arith.constant 0 : i32
    return %c0_i32, %c0_i32_0 : i32, i32
  }
  func.func @transform_2(%arg0: i32) -> (i32, i32) {
    %c0_i32 = arith.constant 0 : i32
    %c0_i32_0 = arith.constant 0 : i32
    %c0_i32_1 = arith.constant 0 : i32
    return %c0_i32, %c0_i32_0 : i32, i32
  }
  func.func @transform_3(%arg0: i32) -> (i32, i32) {
    %c0_i32 = arith.constant 0 : i32
    %c0_i32_0 = arith.constant 0 : i32
    %c0_i32_1 = arith.constant 0 : i32
    return %c0_i32, %c0_i32_0 : i32, i32
  }
  func.func @transform_4(%arg0: i32) -> (i32, i32) {
    %c0_i32 = arith.constant 0 : i32
    %c0_i32_0 = arith.constant 0 : i32
    %c0_i32_1 = arith.constant 0 : i32
    return %c0_i32, %c0_i32_0 : i32, i32
  }
  func.func @transform_5(%arg0: i32) -> (i32, i32) {
    %c0_i32 = arith.constant 0 : i32
    %c0_i32_0 = arith.constant 0 : i32
    %c0_i32_1 = arith.constant 0 : i32
    return %c0_i32, %c0_i32_0 : i32, i32
  }
  func.func @transform_6(%arg0: i32) -> (i32, i32) {
    %c0_i32 = arith.constant 0 : i32
    %c0_i32_0 = arith.constant 0 : i32
    %c0_i32_1 = arith.constant 0 : i32
    return %c0_i32, %c0_i32_0 : i32, i32
  }
  func.func @transform_7(%arg0: i32) -> (i32, i32) {
    %c0_i32 = arith.constant 0 : i32
    %c0_i32_0 = arith.constant 0 : i32
    %c0_i32_1 = arith.constant 0 : i32
    return %c0_i32, %c0_i32_0 : i32, i32
  }
  func.func @transform_8(%arg0: i32) -> (i32, i32) {
    %c0_i32 = arith.constant 0 : i32
    %c0_i32_0 = arith.constant 0 : i32
    %c0_i32_1 = arith.constant 0 : i32
    return %c0_i32, %c0_i32_0 : i32, i32
  }
  func.func @transform_9(%arg0: i32) -> (i32, i32) {
    %c0_i32 = arith.constant 0 : i32
    %c0_i32_0 = arith.constant 0 : i32
    %c0_i32_1 = arith.constant 0 : i32
    return %c0_i32, %c0_i32_0 : i32, i32
  }
  func.func @transform_10(%arg0: i32) -> (i32, i32) {
    %c0_i32 = arith.constant 0 : i32
    %c0_i32_0 = arith.constant 0 : i32
    %c0_i32_1 = arith.constant 0 : i32
    return %c0_i32, %c0_i32_0 : i32, i32
  }
  func.func @transform_11(%arg0: i32) -> (i32, i32) {
    %c0_i32 = arith.constant 0 : i32
    %c0_i32_0 = arith.constant 0 : i32
    %c0_i32_1 = arith.constant 0 : i32
    return %c0_i32, %c0_i32_0 : i32, i32
  }
  func.func @transform_12(%arg0: i32) -> (i32, i32) {
    %c0_i32 = arith.constant 0 : i32
    %c0_i32_0 = arith.constant 0 : i32
    %c0_i32_1 = arith.constant 0 : i32
    return %c0_i32, %c0_i32_0 : i32, i32
  }
  func.func @transform_13(%arg0: i32) -> (i32, i32) {
    %c0_i32 = arith.constant 0 : i32
    %c0_i32_0 = arith.constant 0 : i32
    %c0_i32_1 = arith.constant 0 : i32
    return %c0_i32, %c0_i32_0 : i32, i32
  }
  func.func @transform_14(%arg0: i32) -> (i32, i32) {
    %c0_i32 = arith.constant 0 : i32
    %c0_i32_0 = arith.constant 0 : i32
    %c0_i32_1 = arith.constant 0 : i32
    return %c0_i32, %c0_i32_0 : i32, i32
  }
  func.func @transform_15(%arg0: i32) -> (i32, i32) {
    %c0_i32 = arith.constant 0 : i32
    %c0_i32_0 = arith.constant 0 : i32
    %c0_i32_1 = arith.constant 0 : i32
    return %c0_i32, %c0_i32_0 : i32, i32
  }
  func.func @transform_16(%arg0: i32) -> (i32, i32) {
    %c0_i32 = arith.constant 0 : i32
    %c0_i32_0 = arith.constant 0 : i32
    %c0_i32_1 = arith.constant 0 : i32
    return %c0_i32, %c0_i32_0 : i32, i32
  }
  func.func @transform_17(%arg0: i32) -> (i32, i32) {
    %c0_i32 = arith.constant 0 : i32
    %c0_i32_0 = arith.constant 0 : i32
    %c0_i32_1 = arith.constant 0 : i32
    return %c0_i32, %c0_i32_0 : i32, i32
  }
  func.func @transform_18(%arg0: i32) -> (i32, i32) {
    %c0_i32 = arith.constant 0 : i32
    %c0_i32_0 = arith.constant 0 : i32
    %c0_i32_1 = arith.constant 0 : i32
    return %c0_i32, %c0_i32_0 : i32, i32
  }
  func.func @transform_19(%arg0: i32) -> (i32, i32) {
    %c0_i32 = arith.constant 0 : i32
    %c0_i32_0 = arith.constant 0 : i32
    %c0_i32_1 = arith.constant 0 : i32
    return %c0_i32, %c0_i32_0 : i32, i32
  }
  func.func @transform_20(%arg0: i32) -> (i32, i32) {
    %c0_i32 = arith.constant 0 : i32
    %c0_i32_0 = arith.constant 0 : i32
    %c0_i32_1 = arith.constant 0 : i32
    return %c0_i32, %c0_i32_0 : i32, i32
  }
  func.func @transform_21(%arg0: i32) -> (i32, i32, i32) {
    %c0_i32 = arith.constant 0 : i32
    %c0_i32_0 = arith.constant 0 : i32
    %c0_i32_1 = arith.constant 0 : i32
    %c0_i32_2 = arith.constant 0 : i32
    return %c0_i32, %c0_i32_0, %c0_i32_1 : i32, i32, i32
  }
  func.func @transform_22(%arg0: i32) -> (i32, i32) {
    %c0_i32 = arith.constant 0 : i32
    %c0_i32_0 = arith.constant 0 : i32
    %c0_i32_1 = arith.constant 0 : i32
    return %c0_i32, %c0_i32_0 : i32, i32
  }
  func.func @transform_23(%arg0: i32) -> (i32, i32, i32) {
    %c0_i32 = arith.constant 0 : i32
    %c0_i32_0 = arith.constant 0 : i32
    %c0_i32_1 = arith.constant 0 : i32
    return %arg0, %c0_i32, %c0_i32_0 : i32, i32, i32
  }
}

</mosaic_0001>

<bundles_post_ra>
// kernel: encoder_forward.1
= control target key start
LH: loop header
LB: loop body
LE: loop exit
PB: predicated region body
PF: predicated region fallthrough
CT: control target
= control target key end

     0   :  { %v5035_v0 = vmov 0   ;;  %v5036_v5 = vmov 0.0   ;;  %vm279_vm0 = vcmask 1040384   ;;  %vm5037_vm1 = vmmov 0   ;;  %s6688_s2 = inlined_call_operand.vmem [shape: f32[144,1], index: 2, kind: input, shape index: {}]   ;;  %s6689_s0 = inlined_call_operand.vmem [shape: f32[1,18,128], index: 0, kind: input, shape index: {}]   ;;  %s6690_s1 = inlined_call_operand.vmem [shape: bf16[144,18], index: 1, kind: input, shape index: {}]   ;;  %s6691_s4 = inlined_call_operand.vmem [shape: f32[144,1], index: 4, kind: input, shape index: {}]   ;;  %s6692_s7 = inlined_call_operand.vmem [shape: f32[144,1], index: 7, kind: input, shape index: {}]   ;;  %s6693_s6 = inlined_call_operand.vmem [shape: f32[144,1], index: 6, kind: input, shape index: {}]   ;;  %s6694_s11 = inlined_call_operand.vmem [shape: f32[24,1], index: 11, kind: input, shape index: {}]   ;;  %s6695_s15 = inlined_call_operand.vmem [shape: f32[24,1], index: 15, kind: input, shape index: {}]   ;;  %s6696_s13 = inlined_call_operand.vmem [shape: f32[24,1], index: 13, kind: input, shape index: {}]   ;;  %s6697_s3 = inlined_call_operand.vmem [shape: bf16[144,144], index: 3, kind: input, shape index: {}]   ;;  %s6698_s18 = inlined_call_operand.vmem [shape: f32[24,1], index: 18, kind: input, shape index: {}]   ;;  %s6699_s17 = inlined_call_operand.vmem [shape: f32[24,1], index: 17, kind: input, shape index: {}]   ;;  %s6700_s9 = inlined_call_operand.vmem [shape: f32[32,1], index: 9, kind: input, shape index: {}]   ;;  %s6701_s20 = inlined_call_operand.vmem [shape: f32[32,1], index: 20, kind: input, shape index: {}]   ;;  %s6702_s5 = inlined_call_operand.vmem [shape: bf16[144,144], index: 5, kind: input, shape index: {}]   ;;  %s6703_s8 = inlined_call_operand.vmem [shape: bf16[32,144], index: 8, kind: input, shape index: {}]   ;;  %s6704_s10 = inlined_call_operand.vmem [shape: bf16[24,18], index: 10, kind: input, shape index: {}]   ;;  %s6705_s12 = inlined_call_operand.vmem [shape: bf16[24,24], index: 12, kind: input, shape index: {}]   ;;  %s6706_s14 = inlined_call_operand.vmem [shape: bf16[216,24], index: 14, kind: input, shape index: {}]   ;;  %s6707_s21 = inlined_call_operand.vmem [shape: bf16[9,128,128], index: 21, kind: input, shape index: {}]   ;;  %s6708_s16 = inlined_call_operand.vmem [shape: bf16[216,24], index: 16, kind: input, shape index: {}]   ;;  %s6709_s19 = inlined_call_operand.vmem [shape: bf16[32,24], index: 19, kind: input, shape index: {}]   ;;  %s6710_s22 = inlined_call_operand.vmem [shape: bf16[128,128], index: 22, kind: input, shape index: {}]   ;;  %s6711_s23 = inlined_call_operand.vmem [shape: f32[1,32,128], index: 23, kind: output, shape index: {}]  }
   0x1   :  { %6767 = sst [smem:[#allocation30_spill]] %s6688_s2  ;;  %4853 = vset.pattern.permute.xlu1 %v5035_v0  ;;  %4852 = vset.pattern.permute.xlu0 %v5035_v0  ;;  %vm251_vm2 = vcmask 146432   ;;  %vm622_vm3 = vcmask 130048   ;;  %vm1514_vm4 = vcmask 195584   ;;  %vm1521_vm5 = vcmask 1043456  }
   0x2   :  { %6768 = sst [smem:[#allocation31_spill]] %s6689_s0  ;;  %s6775_s24 = sld [smem:[#allocation30_spill]]  ;;  %4367 = vmatprep.subr.bf16.mxu0 %v5036_v5  ;;  %4835 = vmatprep.subr.bf16.mxu1 %v5036_v5 }
   0x3   :  { %6769 = sst [smem:[#allocation32_spill]] %s6690_s1  ;;  %s6776_s1 = sld [smem:[#allocation31_spill]]  ;;  %4371 = vmatprep.mubr.msk.bf16.mxu0 %vm5037_vm1, %v5036_v5  ;;  %4391 = vmatprep.mubr.msk.bf16.mxu1 %vm5037_vm1, %v5036_v5 }
   0x4   :  { %6770 = sst [smem:[#allocation33_spill]] %s6691_s4 }
   0x5   :  { %6771 = sst [smem:[#allocation34_spill]] %s6692_s7 }
   0x6   :  { %6772 = sst [smem:[#allocation35_spill]] %s6693_s6  ;;  %s6779_s26 = sld [smem:[#allocation34_spill]] }
   0x7   :  { %6773 = sst [smem:[#allocation36_spill]] %s6694_s11  ;;  %s6777_s11 = sld [smem:[#allocation32_spill]] }
   0x8   :  { %6774 = sst [smem:[#allocation37_spill]] %s6695_s15  ;;  %v100_v1 = vld [vmem:[%s6775_s24 + $0x10] sm:$0xff]  ;;  %v98_v2 = vld [vmem:[%s6775_s24] sm:$0xff]  ;;  %v101_v7 = vld [vmem:[%s6775_s24 + $0x18] sm:$0xff]  ;;  %s6778_s15 = sld [smem:[#allocation33_spill]] }
   0x9   :  { %v75_v3 = vld [vmem:[%s6776_s1] sm:$0xff]  ;;  %128 = vperm.xlu1 %4853, %v100_v1   ;;  %118 = vperm.xlu0 %4852, %v98_v2   ;;  %v76_v4 = vld [vmem:[%s6776_s1 + $0x8] sm:$0xff]  ;;  %v77_v9 = vld [vmem:[%s6776_s1 + $0x10] sm:$0x3]  ;;  %s6780_s2 = sld [smem:[#allocation35_spill]]  ;;  %s6782_s6 = sld [smem:[#allocation37_spill]] }
   0xa   :  { %v5174_v6 = vpack.c.bf16 %v76_v4, %v75_v3  ;;  %v99_v8 = vld [vmem:[%s6775_s24 + $0x8] sm:$0xff]  ;;  %v5185_v10 = vpack.c.bf16 %v77_v9, %v77_v9  ;;  %v102_v13 = vld [vmem:[%s6775_s24 + $0x20] sm:$0xff]  ;;  %v105_v16 = vld [vmem:[%s6775_s24 + $0x38] sm:$0xff] }
   0xb   :  { %v103_v12 = vld [vmem:[%s6775_s24 + $0x28] sm:$0xff]  ;;  %v104_v17 = vld [vmem:[%s6775_s24 + $0x30] sm:$0xff]  ;;  %v106_v19 = vld [vmem:[%s6775_s24 + $0x40] sm:$0xff] }
   0xc   :  { %4368 = vmatpush3.bf16.msra.mxu0 %v5174_v6  ;;  %4837 = vmatpush3.bf16.msra.mxu1 %v5174_v6  ;;  %v5195_v11 = vsel %vm279_vm0, %v5185_v10, 0  ;;  %v107_v18 = vld [vmem:[%s6775_s24 + $0x48] sm:$0xff]  ;;  %v109_v22 = vld [vmem:[%s6775_s24 + $0x58] sm:$0xff]  ;;  %v108_v23 = vld [vmem:[%s6775_s24 + $0x50] sm:$0xff] }
   0xd   :  { %133 = vperm.xlu1 %4853, %v101_v7   ;;  %123 = vperm.xlu0 %4852, %v99_v8   ;;  %v4854_v14 = vld [vmem:[%s6777_s11] sm:$0xff]   ;;  %v4855_v15 = vld [vmem:[%s6777_s11 + $0x28] sm:$0xff]   ;;  %v4857_v21 = vld [vmem:[%s6777_s11 + $0x30] sm:$0xff]  }
   0xe   :  { %4369 = vmatprep.subr.bf16.mxu0 %v5036_v5  ;;  %4836 = vmatprep.subr.bf16.mxu1 %v5036_v5  ;;  %v4856_v20 = vld [vmem:[%s6777_s11 + $0x8] sm:$0xff]   ;;  %v110_v25 = vld [vmem:[%s6775_s24 + $0x60] sm:$0xff]  ;;  %v4858_v26 = vld [vmem:[%s6777_s11 + $0x10] sm:$0xff]  }
   0xf   :  { %v111_v24 = vld [vmem:[%s6775_s24 + $0x68] sm:$0xff]  ;;  %v4859_v27 = vld [vmem:[%s6777_s11 + $0x38] sm:$0xff]   ;;  %v112_v29 = vld [vmem:[%s6775_s24 + $0x70] sm:$0xff] }
  0x10   :  { %4370 = vmatpush3.bf16.msra.mxu0 %v5195_v11  ;;  %4838 = vmatpush3.bf16.msra.mxu1 %v5195_v11  ;;  %v113_v28 = vld [vmem:[%s6775_s24 + $0x78] sm:$0xff]  ;;  %v115_v30 = vld [vmem:[%s6775_s24 + $0x88] sm:$0xff]  ;;  %v114_v31 = vld [vmem:[%s6775_s24 + $0x80] sm:$0xff] }
  0x11   :  { %143 = vperm.xlu1 %4853, %v103_v12   ;;  %138 = vperm.xlu0 %4852, %v102_v13   ;;  %v4860_v32 = vld [vmem:[%s6777_s11 + $0x18] sm:$0xff]   ;;  %v4861_v33 = vld [vmem:[%s6777_s11 + $0x40] sm:$0xff]   ;;  %v434_v34 = vld [vmem:[%s6778_s15 + $0x8] sm:$0xff] }
  0x12   :  { %650 = vmatprep.subr.bf16.mxu1 %v5035_v0  ;;  %1034 = vmatprep.subr.bf16.mxu0 %v5035_v0  ;;  %v433_v35 = vld [vmem:[%s6778_s15] sm:$0xff]  ;;  %v436_v36 = vld [vmem:[%s6778_s15 + $0x18] sm:$0xff]  ;;  %v435_v37 = vld [vmem:[%s6778_s15 + $0x10] sm:$0xff] }
  0x13   :  { %4372 = vmatmul.mubr.msk.bf16.vlgmr.msra.gmra.mrb[0].mxu0 %vm251_vm2, %v4854_v14  ;;  %4392 = vmatmul.mubr.msk.bf16.vlgmr.msra.gmra.mrb[0].mxu1 %vm251_vm2, %v4855_v15  ;;  %v4862_v38 = vld [vmem:[%s6777_s11 + $0x20] sm:$0xff]   ;;  %v438_v39 = vld [vmem:[%s6778_s15 + $0x28] sm:$0xff]  ;;  %v440_v41 = vld [vmem:[%s6778_s15 + $0x38] sm:$0xff] }
  0x14   :  { %4375 = vmatprep.mubr.msk.bf16.mxu0 %vm5037_vm1, %v5036_v5  ;;  %4395 = vmatprep.mubr.msk.bf16.mxu1 %vm5037_vm1, %v5036_v5  ;;  %v437_v40 = vld [vmem:[%s6778_s15 + $0x20] sm:$0xff]  ;;  %v439_v42 = vld [vmem:[%s6778_s15 + $0x30] sm:$0xff]  ;;  %v442_v43 = vld [vmem:[%s6778_s15 + $0x48] sm:$0xff] }
  0x15   :  { %153 = vperm.xlu1 %4853, %v105_v16   ;;  %148 = vperm.xlu0 %4852, %v104_v17   ;;  %v441_v44 = vld [vmem:[%s6778_s15 + $0x40] sm:$0xff]  ;;  %v444_v45 = vld [vmem:[%s6778_s15 + $0x58] sm:$0xff]  ;;  %v443_v46 = vld [vmem:[%s6778_s15 + $0x50] sm:$0xff] }
  0x16   :  { %v446_v47 = vld [vmem:[%s6778_s15 + $0x68] sm:$0xff]  ;;  %v445_v48 = vld [vmem:[%s6778_s15 + $0x60] sm:$0xff]  ;;  %v448_v49 = vld [vmem:[%s6778_s15 + $0x78] sm:$0xff] }
  0x17   :  { %v447_v50 = vld [vmem:[%s6778_s15 + $0x70] sm:$0xff]  ;;  %v450_v51 = vld [vmem:[%s6778_s15 + $0x88] sm:$0xff]  ;;  %v449_v52 = vld [vmem:[%s6778_s15 + $0x80] sm:$0xff]  ;;  %s6781_s15 = sld [smem:[#allocation36_spill]] }
  0x18   :  { %v801_v53 = vld [vmem:[%s6779_s26 + $0x8] sm:$0xff]  ;;  %v800_v54 = vld [vmem:[%s6779_s26] sm:$0xff]  ;;  %v803_v55 = vld [vmem:[%s6779_s26 + $0x18] sm:$0xff] }
  0x19   :  { %163 = vperm.xlu1 %4853, %v107_v18   ;;  %158 = vperm.xlu0 %4852, %v106_v19   ;;  %v802_v56 = vld [vmem:[%s6779_s26 + $0x10] sm:$0xff]  ;;  %v1140_v57 = vld [vmem:[%s6780_s2 + $0x8] sm:$0xff]  ;;  %v1139_v58 = vld [vmem:[%s6780_s2] sm:$0xff] }
  0x1a   :  { %v805_v59 = vld [vmem:[%s6779_s26 + $0x28] sm:$0xff]  ;;  %v804_v60 = vld [vmem:[%s6779_s26 + $0x20] sm:$0xff]  ;;  %v1142_v61 = vld [vmem:[%s6780_s2 + $0x18] sm:$0xff] }
  0x1b   :  { %4376 = vmatmul.mubr.msk.bf16.gmra.mrb[4].mxu0 %vm251_vm2, %v4856_v20  ;;  %4396 = vmatmul.mubr.msk.bf16.gmra.mrb[4].mxu1 %vm251_vm2, %v4857_v21  ;;  %v1141_v62 = vld [vmem:[%s6780_s2 + $0x10] sm:$0xff]  ;;  %v807_v63 = vld [vmem:[%s6779_s26 + $0x38] sm:$0xff]  ;;  %v1144_v2 = vld [vmem:[%s6780_s2 + $0x28] sm:$0xff] }
  0x1c   :  { %4379 = vmatprep.mubr.msk.bf16.mxu0 %vm5037_vm1, %v5036_v5  ;;  %4399 = vmatprep.mubr.msk.bf16.mxu1 %vm5037_vm1, %v5036_v5  ;;  %v806_v1 = vld [vmem:[%s6779_s26 + $0x30] sm:$0xff]  ;;  %v1143_v3 = vld [vmem:[%s6780_s2 + $0x20] sm:$0xff]  ;;  %v809_v4 = vld [vmem:[%s6779_s26 + $0x48] sm:$0xff] }
  0x1d   :  { %173 = vperm.xlu1 %4853, %v109_v22   ;;  %168 = vperm.xlu0 %4852, %v108_v23   ;;  %v1146_v7 = vld [vmem:[%s6780_s2 + $0x38] sm:$0xff]  ;;  %v1145_v8 = vld [vmem:[%s6780_s2 + $0x30] sm:$0xff]  ;;  %v1148_v13 = vld [vmem:[%s6780_s2 + $0x48] sm:$0xff] }
  0x1e   :  { %v811_v9 = vld [vmem:[%s6779_s26 + $0x58] sm:$0xff]  ;;  %v810_v12 = vld [vmem:[%s6779_s26 + $0x50] sm:$0xff]  ;;  %v1147_v14 = vld [vmem:[%s6780_s2 + $0x40] sm:$0xff] }
  0x1f   :  { %v813_v15 = vld [vmem:[%s6779_s26 + $0x68] sm:$0xff]  ;;  %v812_v16 = vld [vmem:[%s6779_s26 + $0x60] sm:$0xff]  ;;  %v1150_v17 = vld [vmem:[%s6780_s2 + $0x58] sm:$0xff] }
  0x20   :  { %v1149_v18 = vld [vmem:[%s6780_s2 + $0x50] sm:$0xff]  ;;  %v815_v19 = vld [vmem:[%s6779_s26 + $0x78] sm:$0xff]  ;;  %v1152_v21 = vld [vmem:[%s6780_s2 + $0x68] sm:$0xff] }
  0x21   :  { %183 = vperm.xlu1 %4853, %v111_v24   ;;  %178 = vperm.xlu0 %4852, %v110_v25   ;;  %v814_v20 = vld [vmem:[%s6779_s26 + $0x70] sm:$0xff]  ;;  %v1151_v22 = vld [vmem:[%s6780_s2 + $0x60] sm:$0xff]  ;;  %v817_v23 = vld [vmem:[%s6779_s26 + $0x88] sm:$0xff] }
  0x22   :  { %v816_v24 = vld [vmem:[%s6779_s26 + $0x80] sm:$0xff]  ;;  %v1154_v25 = vld [vmem:[%s6780_s2 + $0x78] sm:$0xff] }
  0x23   :  { %4380 = vmatmul.mubr.msk.bf16.gmra.mrb[8].mxu0 %vm251_vm2, %v4858_v26  ;;  %4400 = vmatmul.mubr.msk.bf16.gmra.mrb[8].mxu1 %vm251_vm2, %v4859_v27  ;;  %v1153_v26 = vld [vmem:[%s6780_s2 + $0x70] sm:$0xff]  ;;  %v1156_v27 = vld [vmem:[%s6780_s2 + $0x88] sm:$0xff] }
  0x24   :  { %4383 = vmatprep.mubr.msk.bf16.mxu0 %vm5037_vm1, %v5036_v5  ;;  %4403 = vmatprep.mubr.msk.bf16.mxu1 %vm5037_vm1, %v5036_v5 }
  0x25   :  { %193 = vperm.xlu1 %4853, %v113_v28   ;;  %188 = vperm.xlu0 %4852, %v112_v29   ;;  %v1155_v28 = vld [vmem:[%s6780_s2 + $0x80] sm:$0xff]  ;;  %v1401_v29 = vld [vmem:[%s6781_s15 + $0x8] sm:$0xff] }
  0x29   :  { %203 = vperm.xlu1 %4853, %v115_v30   ;;  %198 = vperm.xlu0 %4852, %v114_v31   ;;  %v1400_v30 = vld [vmem:[%s6781_s15] sm:$0xff] }
  0x2a   :  { %v2797_v31 = vld [vmem:[%s6782_s6] sm:$0xff] }
  0x2b   :  { %4384 = vmatmul.mubr.msk.bf16.gmra.mrb[12].mxu0 %vm251_vm2, %v4860_v32  ;;  %4404 = vmatmul.mubr.msk.bf16.gmra.mrb[12].mxu1 %vm251_vm2, %v4861_v33  ;;  %v1402_v32 = vld [vmem:[%s6781_s15 + $0x10] sm:$0xff] }
  0x2c   :  { %4387 = vmatprep.mubr.msk.bf16.mxu0 %vm5037_vm1, %v5036_v5  ;;  %v808_v5 = vld [vmem:[%s6779_s26 + $0x40] sm:$0xff]  ;;  %v2799_v33 = vld [vmem:[%s6782_s6 + $0x10] sm:$0xff] }
  0x2d   :  { %458 = vperm.xlu1 %4853, %v434_v34   ;;  %453 = vperm.xlu0 %4852, %v433_v35   ;;  %v2798_v34 = vld [vmem:[%s6782_s6 + $0x8] sm:$0xff] }
  0x2e   :  { %v1489_v35 = vld [vmem:[%s6696_s13 + $0x8] sm:$0xff] }
  0x31   :  { %468 = vperm.xlu1 %4853, %v436_v36   ;;  %463 = vperm.xlu0 %4852, %v435_v37   ;;  %v4865_v36 = vld [vmem:[%s6697_s3 + $0x4] ss:$8 sps:$4 sm:$0xff]  }
  0x32   :  { %v1488_v37 = vld [vmem:[%s6696_s13] sm:$0xff]  ;;  %3848 = vmatprep.mubr.msk.bf16.mxu1 %vm622_vm3, %v4865_v36 }
  0x33   :  { %4388 = vmatmul.mubr.msk.bf16.gmra.mrb[16].mxu0 %vm251_vm2, %v4862_v38  ;;  %v3532_v38 = vld [vmem:[%s6698_s18 + $0x8] sm:$0xff] }
  0x35   :  { %478 = vperm.xlu1 %4853, %v438_v39   ;;  %473 = vperm.xlu0 %4852, %v437_v40   ;;  %v3531_v39 = vld [vmem:[%s6698_s18] sm:$0xff]  ;;  %v3533_v40 = vld [vmem:[%s6698_s18 + $0x10] sm:$0xff] }
  0x39   :  { %488 = vperm.xlu1 %4853, %v440_v41   ;;  %483 = vperm.xlu0 %4852, %v439_v42   ;;  %v1490_v41 = vld [vmem:[%s6696_s13 + $0x10] sm:$0xff]  ;;  %v3556_v42 = vld [vmem:[%s6699_s17 + $0x8] sm:$0xff] }
  0x3d   :  { %498 = vperm.xlu1 %4853, %v442_v43   ;;  %493 = vperm.xlu0 %4852, %v441_v44   ;;  %v3555_v43 = vld [vmem:[%s6699_s17] sm:$0xff] }
  0x3e   :  { %v1296_v44 = vld [vmem:[%s6700_s9] sm:$0xff] }
  0x41   :  { %508 = vperm.xlu1 %4853, %v444_v45   ;;  %503 = vperm.xlu0 %4852, %v443_v46   ;;  %v3557_v45 = vld [vmem:[%s6699_s17 + $0x10] sm:$0xff] }
  0x42   :  { %v1298_v46 = vld [vmem:[%s6700_s9 + $0x10] sm:$0xff] }
  0x45   :  { %518 = vperm.xlu1 %4853, %v446_v47   ;;  %513 = vperm.xlu0 %4852, %v445_v48   ;;  %v1297_v47 = vld [vmem:[%s6700_s9 + $0x8] sm:$0xff]  ;;  %v3776_v48 = vld [vmem:[%s6701_s20] sm:$0xff] }
  0x49   :  { %528 = vperm.xlu1 %4853, %v448_v49   ;;  %523 = vperm.xlu0 %4852, %v447_v50   ;;  %v1299_v49 = vld [vmem:[%s6700_s9 + $0x18] sm:$0xff]  ;;  %v3778_v50 = vld [vmem:[%s6701_s20 + $0x10] sm:$0xff] }
  0x4d   :  { %538 = vperm.xlu1 %4853, %v450_v51   ;;  %533 = vperm.xlu0 %4852, %v449_v52   ;;  %v3777_v51 = vld [vmem:[%s6701_s20 + $0x8] sm:$0xff]  ;;  %v3779_v52 = vld [vmem:[%s6701_s20 + $0x18] sm:$0xff] }
  0x51   :  { %825 = vperm.xlu1 %4853, %v801_v53   ;;  %820 = vperm.xlu0 %4852, %v800_v54  }
  0x55   :  { %835 = vperm.xlu1 %4853, %v803_v55   ;;  %830 = vperm.xlu0 %4852, %v802_v56  }
  0x59   :  { %1164 = vperm.xlu1 %4853, %v1140_v57   ;;  %1159 = vperm.xlu0 %4852, %v1139_v58  }
  0x5d   :  { %845 = vperm.xlu1 %4853, %v805_v59   ;;  %840 = vperm.xlu0 %4852, %v804_v60  }
  0x61   :  { %1174 = vperm.xlu1 %4853, %v1142_v61   ;;  %1169 = vperm.xlu0 %4852, %v1141_v62  }
  0x65   :  { %855 = vperm.xlu1 %4853, %v807_v63   ;;  %850 = vperm.xlu0 %4852, %v806_v1  }
  0x69   :  { %1184 = vperm.xlu1 %4853, %v1144_v2   ;;  %1179 = vperm.xlu0 %4852, %v1143_v3  }
  0x6d   :  { %865 = vperm.xlu1 %4853, %v809_v4   ;;  %860 = vperm.xlu0 %4852, %v808_v5  }
  0x71   :  { %1194 = vperm.xlu1 %4853, %v1146_v7   ;;  %1189 = vperm.xlu0 %4852, %v1145_v8  }
  0x75   :  { %875 = vperm.xlu1 %4853, %v811_v9   ;;  %870 = vperm.xlu0 %4852, %v810_v12  }
  0x79   :  { %1204 = vperm.xlu1 %4853, %v1148_v13   ;;  %1199 = vperm.xlu0 %4852, %v1147_v14  }
  0x7d   :  { %885 = vperm.xlu1 %4853, %v813_v15   ;;  %880 = vperm.xlu0 %4852, %v812_v16  }
  0x81   :  { %1214 = vperm.xlu1 %4853, %v1150_v17   ;;  %1209 = vperm.xlu0 %4852, %v1149_v18  }
  0x85   :  { %895 = vperm.xlu1 %4853, %v815_v19   ;;  %890 = vperm.xlu0 %4852, %v814_v20  }
  0x88   :  { %v129_v53 = vpop.permute.xlu1 %128  ;;  %v119_v54 = vpop.permute.xlu0 %118 }
  0x89   :  { %1224 = vperm.xlu1 %4853, %v1152_v21   ;;  %1219 = vperm.xlu0 %4852, %v1151_v22  }
  0x8c   :  { %v134_v55 = vpop.permute.xlu1 %133  ;;  %v124_v56 = vpop.permute.xlu0 %123 }
  0x8d   :  { %905 = vperm.xlu1 %4853, %v817_v23   ;;  %900 = vperm.xlu0 %4852, %v816_v24  }
  0x90   :  { %v144_v57 = vpop.permute.xlu1 %143  ;;  %v139_v58 = vpop.permute.xlu0 %138 }
  0x91   :  { %1234 = vperm.xlu1 %4853, %v1154_v25   ;;  %1229 = vperm.xlu0 %4852, %v1153_v26  }
  0x94   :  { %v5530_v59 = vpop.permute.xlu1 %153  ;;  %v5532_v60 = vpop.permute.xlu0 %148 }
  0x95   :  { %1244 = vperm.xlu1 %4853, %v1156_v27   ;;  %1239 = vperm.xlu0 %4852, %v1155_v28  }
  0x98   :  { %v5534_v61 = vpop.permute.xlu1 %163  ;;  %v5536_v62 = vpop.permute.xlu0 %158 }
  0x99   :  { %1410 = vperm.xlu1 %4853, %v1401_v29   ;;  %1405 = vperm.xlu0 %4852, %v1400_v30  }
  0x9c   :  { %v174_v63 = vpop.permute.xlu1 %173  ;;  %v169_v1 = vpop.permute.xlu0 %168 }
  0x9d   :  { %2802 = vperm.xlu1 %4853, %v2797_v31   ;;  %1415 = vperm.xlu0 %4852, %v1402_v32  }
  0xa0   :  { %v184_v19 = vpop.permute.xlu1 %183  ;;  %v179_v20 = vpop.permute.xlu0 %178 }
  0xa1   :  { %2812 = vperm.xlu1 %4853, %v2799_v33   ;;  %2807 = vperm.xlu0 %4852, %v2798_v34  }
  0xa5   :  { %1498 = vperm.xlu1 %4853, %v1489_v35   ;;  %1493 = vperm.xlu0 %4852, %v1488_v37  }
  0xa9   :  { %3541 = vperm.xlu1 %4853, %v3532_v38   ;;  %3536 = vperm.xlu0 %4852, %v3531_v39  }
  0xad   :  { %3546 = vperm.xlu1 %4853, %v3533_v40   ;;  %1503 = vperm.xlu0 %4852, %v1490_v41   ;;  %v194_v40 = vpop.permute.xlu1 %193  ;;  %v189_v41 = vpop.permute.xlu0 %188 }
  0xb1   :  { %3565 = vperm.xlu1 %4853, %v3556_v42   ;;  %3560 = vperm.xlu0 %4852, %v3555_v43  }
  0xb5   :  { %1302 = vperm.xlu1 %4853, %v1296_v44   ;;  %3570 = vperm.xlu0 %4852, %v3557_v45  }
  0xb9   :  { %1312 = vperm.xlu1 %4853, %v1298_v46   ;;  %1307 = vperm.xlu0 %4852, %v1297_v47  }
  0xbd   :  { %3782 = vperm.xlu1 %4853, %v3776_v48   ;;  %1317 = vperm.xlu0 %4852, %v1299_v49  }
  0xc1   :  { %3792 = vperm.xlu1 %4853, %v3778_v50   ;;  %3787 = vperm.xlu0 %4852, %v3777_v51  }
  0xc5   :  { %3797 = vperm.xlu0 %4852, %v3779_v52  }
  0xe6   :  { %v317_v2 = vpop.f32.mrb[0].mxu0  ;;  %v357_v3 = vpop.f32.mrb[0].mxu1 }
  0xe7   :  { %v5538_v4 = vadd.f32 %v317_v2, %v119_v54  ;;  %v4373_v5 = vpop.f32.mrb[1].mxu0  ;;  %v4393_v7 = vpop.f32.mrb[1].mxu1  ;;  %v5542_v13 = vadd.f32 %v357_v3, %v169_v1 }
  0xe8   :  { %v320_v8 = vpop.f32.mrb[2].mxu0  ;;  %v360_v14 = vpop.f32.mrb[2].mxu1 }
  0xe9   :  { %v5540_v9 = vadd.f32 %v320_v8, %v124_v56  ;;  %v4374_v12 = vpop.f32.mrb[3].mxu0  ;;  %v388_v15 = vmax.f32 %v5538_v4, 0.0  ;;  %v5546_v17 = vadd.f32 %v360_v14, %v174_v63  ;;  %v4394_v18 = vpop.f32.mrb[3].mxu1  ;;  %v398_v22 = vmax.f32 %v5542_v13, 0.0 }
  0xea   :  { %v204_v3 = vpop.permute.xlu1 %203  ;;  %v199_v5 = vpop.permute.xlu0 %198 }
  0xeb   :  { %v389_v16 = vmax.f32 %v5540_v9, 0.0  ;;  %v399_v23 = vmax.f32 %v5546_v17, 0.0 }
  0xed   :  { %v424_v21 = vpack.c.bf16 %v389_v16, %v388_v15  ;;  %v5560_v28 = vpack.c.bf16 %v399_v23, %v398_v22 }
  0xee   :  { %v325_v24 = vpop.f32.mrb[4].mxu0  ;;  %v365_v25 = vpop.f32.mrb[4].mxu1 }
  0xef   :  { %v5554_v26 = vadd.f32 %v325_v24, %v129_v53  ;;  %v4377_v27 = vpop.f32.mrb[5].mxu0  ;;  %651 = vmatpush1.bf16.msra.mxu1 %v424_v21  ;;  %v5562_v29 = vadd.f32 %v365_v25, %v179_v20  ;;  %v4397_v30 = vpop.f32.mrb[5].mxu1 }
  0xf0   :  { %v328_v31 = vpop.f32.mrb[6].mxu0  ;;  %652 = vmatprep.subr.bf16.mxu1 %v5035_v0  ;;  %v368_v34 = vpop.f32.mrb[6].mxu1 }
  0xf1   :  { %v5565_v32 = vadd.f32 %v328_v31, %v134_v55  ;;  %v4378_v33 = vpop.f32.mrb[7].mxu0  ;;  %v390_v35 = vmax.f32 %v5554_v26, 0.0  ;;  %v400_v37 = vmax.f32 %v5562_v29, 0.0  ;;  %v5570_v38 = vadd.f32 %v368_v34, %v184_v19  ;;  %v4398_v39 = vpop.f32.mrb[7].mxu1 }
  0xf3   :  { %v391_v36 = vmax.f32 %v5565_v32, 0.0  ;;  %v6724_v43 = vmax.f32 %v5570_v38, 0.0 }
  0xf5   :  { %v425_v42 = vpack.c.bf16 %v391_v36, %v390_v35  ;;  %v430_v46 = vpack.c.bf16 %v6724_v43, %v400_v37 }
  0xf6   :  { %v333_v44 = vpop.f32.mrb[8].mxu0  ;;  %v373_v45 = vpop.f32.mrb[8].mxu1 }
  0xf7   :  { %v5581_v47 = vadd.f32 %v333_v44, %v139_v58  ;;  %v5583_v48 = vadd.f32 %v373_v45, %v189_v41  ;;  %v4381_v49 = vpop.f32.mrb[9].mxu0  ;;  %v4401_v50 = vpop.f32.mrb[9].mxu1  ;;  %653 = vmatpush1.bf16.msra.mxu1 %v425_v42 }
  0xf8   :  { %v336_v51 = vpop.f32.mrb[10].mxu0  ;;  %v376_v52 = vpop.f32.mrb[10].mxu1  ;;  %654 = vmatprep.subr.bf16.mxu1 %v5035_v0 }
  0xf9   :  { %v5586_v53 = vadd.f32 %v336_v51, %v144_v57  ;;  %v5588_v54 = vadd.f32 %v376_v52, %v194_v40  ;;  %v4382_v55 = vpop.f32.mrb[11].mxu0  ;;  %v4402_v56 = vpop.f32.mrb[11].mxu1  ;;  %v392_v63 = vmax.f32 %v5581_v47, 0.0  ;;  %v6723_v58 = vmax.f32 %v5583_v48, 0.0 }
  0xfa   :  { %v4871_v56 = vld [vmem:[%s6697_s3 + $0x20] ss:$8 sps:$4 sm:$0xff]  }
  0xfb   :  { %v393_v1 = vmax.f32 %v5586_v53, 0.0  ;;  %v6722_v2 = vmax.f32 %v5588_v54, 0.0 }
  0xfd   :  { %v426_v57 = vpack.c.bf16 %v393_v1, %v392_v63  ;;  %v431_v7 = vpack.c.bf16 %v6722_v2, %v6723_v58 }
  0xfe   :  { %v341_v8 = vpop.f32.mrb[12].mxu0  ;;  %v381_v12 = vpop.f32.mrb[12].mxu1 }
  0xff   :  { %v5603_v14 = vadd.f32 %v341_v8, %v5532_v60  ;;  %v5605_v18 = vadd.f32 %v381_v12, %v199_v5  ;;  %v4385_v19 = vpop.f32.mrb[13].mxu0  ;;  %v4405_v20 = vpop.f32.mrb[13].mxu1  ;;  %655 = vmatpush1.bf16.msra.mxu1 %v426_v57  ;;  %v4874_v5 = vld [vmem:[%s6697_s3 + $0x30] ss:$8 sps:$4 sm:$0xff]   ;;  %v4875_v57 = vld [vmem:[%s6697_s3 + $0x44] ss:$8 sps:$4 sm:$0xff]  }
 0x100   :  { %v344_v21 = vpop.f32.mrb[14].mxu0  ;;  %v384_v24 = vpop.f32.mrb[14].mxu1  ;;  %656 = vmatprep.subr.bf16.mxu1 %v5035_v0  ;;  %v4878_v8 = vld [vmem:[%s6697_s3 + $0x54] ss:$8 sps:$4 sm:$0xff]   ;;  %v4880_v12 = vld [vmem:[%s6697_s3 + $0x50] ss:$8 sps:$4 sm:$0xff]  }
 0x101   :  { %v5609_v25 = vadd.f32 %v344_v21, %v5530_v59  ;;  %v5611_v27 = vadd.f32 %v384_v24, %v204_v3  ;;  %v4386_v30 = vpop.f32.mrb[15].mxu0  ;;  %v4406_v31 = vpop.f32.mrb[15].mxu1  ;;  %v394_v33 = vmax.f32 %v5603_v14, 0.0  ;;  %v6721_v60 = vmax.f32 %v5605_v18, 0.0  ;;  %v4872_v3 = vld [vmem:[%s6697_s3 + $0x34] ss:$8 sps:$4 sm:$0xff]  }
 0x102   :  { %v4881_v19 = vld [vmem:[%s6697_s3 + $0x64] ss:$8 sps:$4 sm:$0xff]   ;;  %v4883_v20 = vld [vmem:[%s6697_s3 + $0x60] ss:$8 sps:$4 sm:$0xff]   ;;  %v4884_v21 = vld [vmem:[%s6697_s3 + $0x74] ss:$8 sps:$4 sm:$0xff]  }
 0x103   :  { %v395_v34 = vmax.f32 %v5609_v25, 0.0  ;;  %v6720_v39 = vmax.f32 %v5611_v27, 0.0  ;;  %v4886_v24 = vld [vmem:[%s6697_s3 + $0x70] ss:$8 sps:$4 sm:$0xff]   ;;  %v4887_v30 = vld [vmem:[%s6697_s3 + $0x84] ss:$8 sps:$4 sm:$0xff]  }
 0x104   :  { %v4889_v31 = vld [vmem:[%s6697_s3 + $0x80] ss:$8 sps:$4 sm:$0xff]  }
 0x105   :  { %v427_v40 = vpack.c.bf16 %v395_v34, %v394_v33  ;;  %v432_v59 = vpack.c.bf16 %v6720_v39, %v6721_v60 }
 0x106   :  { %v349_v41 = vpop.f32.mrb[16].mxu0 }
 0x107   :  { %v5626_v42 = vadd.f32 %v349_v41, %v5536_v62  ;;  %v4389_v44 = vpop.f32.mrb[17].mxu0  ;;  %657 = vmatpush1.bf16.msra.mxu1 %v427_v40  ;;  %v4866_v62 = vld [vmem:[%s6697_s3 + $0x14] ss:$8 sps:$4 sm:$0xff]   ;;  %v4892_v40 = vld [vmem:[%s6702_s5 + $0x4] ss:$8 sps:$4 sm:$0xff]  }
 0x108   :  { %v352_v45 = vpop.f32.mrb[18].mxu0  ;;  %658 = vmatprep.subr.bf16.mxu1 %v5035_v0  ;;  %3875 = vmatprep.mubr.msk.bf16.mxu0 %vm622_vm3, %v4892_v40 }
 0x109   :  { %v5630_v49 = vadd.f32 %v352_v45, %v5534_v61  ;;  %v4390_v50 = vpop.f32.mrb[19].mxu0  ;;  %v396_v51 = vmax.f32 %v5626_v42, 0.0  ;;  %v4863_v61 = vld [vmem:[%s6697_s3] ss:$8 sps:$4 sm:$0xff]  }
 0x10a   :  { %v459_v50 = vpop.permute.xlu1 %458 }
 0x10b   :  { %v397_v52 = vmax.f32 %v5630_v49, 0.0 }
 0x10d   :  { %v428_v55 = vpack.c.bf16 %v397_v52, %v396_v51 }
 0x10f   :  { %659 = vmatpush1.bf16.msra.mxu1 %v428_v55 }
 0x110   :  { %660 = vmatprep.subr.bf16.mxu1 %v5035_v0 }
 0x113   :  { %661 = vmatpush1.bf16.msra.mxu1 %v5560_v28  ;;  %v4868_v28 = vld [vmem:[%s6697_s3 + $0x10] ss:$8 sps:$4 sm:$0xff]  }
 0x114   :  { %662 = vmatprep.subr.bf16.mxu1 %v5035_v0 }
 0x117   :  { %663 = vmatpush1.bf16.msra.mxu1 %v430_v46  ;;  %v4869_v46 = vld [vmem:[%s6697_s3 + $0x24] ss:$8 sps:$4 sm:$0xff]  }
 0x118   :  { %664 = vmatprep.subr.bf16.mxu1 %v5035_v0 }
 0x11b   :  { %665 = vmatpush1.bf16.msra.mxu1 %v431_v7  ;;  %v4877_v7 = vld [vmem:[%s6697_s3 + $0x40] ss:$8 sps:$4 sm:$0xff]  }
 0x11c   :  { %666 = vmatprep.subr.bf16.mxu1 %v5035_v0 }
 0x11f   :  { %667 = vmatpush1.bf16.msra.mxu1 %v432_v59  ;;  %v454_v59 = vpop.permute.xlu0 %453 }
 0x120   :  { %1344 = vmatprep.subr.bf16.mxu1 %v5035_v0 }
 0x122   :  { %683 = vmatmul.mubr.bf16.vlgmr.msra.gmra.mrb[16].mxu1 %v4863_v61 }
 0x123   :  { %3849 = vmatprep.mubr.msk.bf16.mxu1 %vm622_vm3, %v4866_v62 }
 0x12a   :  { %691 = vmatmul.mubr.bf16.gmra.mrb[20].mxu1 %v4868_v28 }
 0x12b   :  { %3850 = vmatprep.mubr.msk.bf16.mxu1 %vm622_vm3, %v4869_v46 }
 0x132   :  { %699 = vmatmul.mubr.bf16.gmra.mrb[24].mxu1 %v4871_v56 }
 0x133   :  { %3851 = vmatprep.mubr.msk.bf16.mxu1 %vm622_vm3, %v4872_v3  ;;  %v464_v3 = vpop.permute.xlu0 %463 }
 0x13a   :  { %707 = vmatmul.mubr.bf16.gmra.mrb[28].mxu1 %v4874_v5 }
 0x13b   :  { %3852 = vmatprep.mubr.msk.bf16.mxu1 %vm622_vm3, %v4875_v57 }
 0x142   :  { %715 = vmatmul.mubr.bf16.gmra.mrb[32].mxu1 %v4877_v7 }
 0x143   :  { %3853 = vmatprep.mubr.msk.bf16.mxu1 %vm622_vm3, %v4878_v8  ;;  %v469_v8 = vpop.permute.xlu1 %468 }
 0x14a   :  { %723 = vmatmul.mubr.bf16.gmra.mrb[36].mxu1 %v4880_v12 }
 0x14b   :  { %3854 = vmatprep.mubr.msk.bf16.mxu1 %vm622_vm3, %v4881_v19 }
 0x152   :  { %731 = vmatmul.mubr.bf16.gmra.mrb[40].mxu1 %v4883_v20 }
 0x153   :  { %3855 = vmatprep.mubr.msk.bf16.mxu1 %vm622_vm3, %v4884_v21 }
 0x15a   :  { %739 = vmatmul.mubr.bf16.gmra.mrb[44].mxu1 %v4886_v24 }
 0x15b   :  { %3856 = vmatprep.mubr.msk.bf16.mxu1 %vm622_vm3, %v4887_v30 }
 0x162   :  { %747 = vmatmul.mubr.bf16.gmra.mrb[48].mxu1 %v4889_v31  ;;  %v474_v31 = vpop.permute.xlu0 %473 }
 0x1f5   :  { %v684_v41 = vpop.f32.mrb[16].mxu1 }
 0x1f6   :  { %v685_v44 = vadd.f32 %v684_v41, %v454_v59  ;;  %v686_v45 = vpop.f32.mrb[17].mxu1 }
 0x1f7   :  { %v687_v55 = vpop.f32.mrb[18].mxu1 }
 0x1f8   :  { %v688_v61 = vadd.f32 %v687_v55, %v459_v50  ;;  %v689_v62 = vpop.f32.mrb[19].mxu1  ;;  %v755_v28 = vmax.f32 %v685_v44, 0.0  ;;  %v479_v44 = vpop.permute.xlu1 %478 }
 0x1fa   :  { %v756_v46 = vmax.f32 %v688_v61, 0.0 }
 0x1fc   :  { %v791_v56 = vpack.c.bf16 %v756_v46, %v755_v28  ;;  %v484_v46 = vpop.permute.xlu0 %483 }
 0x1fd   :  { %v692_v5 = vpop.f32.mrb[20].mxu1 }
 0x1fe   :  { %v693_v57 = vadd.f32 %v692_v5, %v464_v3  ;;  %v694_v7 = vpop.f32.mrb[21].mxu1  ;;  %1035 = vmatpush1.bf16.msra.mxu0 %v791_v56 }
 0x1ff   :  { %v695_v12 = vpop.f32.mrb[22].mxu1  ;;  %1036 = vmatprep.subr.bf16.mxu0 %v5035_v0 }
 0x200   :  { %v696_v19 = vadd.f32 %v695_v12, %v469_v8  ;;  %v697_v20 = vpop.f32.mrb[23].mxu1  ;;  %v757_v21 = vmax.f32 %v693_v57, 0.0  ;;  %v489_v57 = vpop.permute.xlu1 %488 }
 0x202   :  { %v758_v24 = vmax.f32 %v696_v19, 0.0 }
 0x204   :  { %v792_v30 = vpack.c.bf16 %v758_v24, %v757_v21  ;;  %v494_v24 = vpop.permute.xlu0 %493 }
 0x205   :  { %v700_v40 = vpop.f32.mrb[24].mxu1 }
 0x206   :  { %v701_v59 = vadd.f32 %v700_v40, %v474_v31  ;;  %v702_v41 = vpop.f32.mrb[25].mxu1  ;;  %1037 = vmatpush1.bf16.msra.mxu0 %v792_v30 }
 0x207   :  { %v703_v45 = vpop.f32.mrb[26].mxu1  ;;  %1038 = vmatprep.subr.bf16.mxu0 %v5035_v0 }
 0x208   :  { %v704_v50 = vadd.f32 %v703_v45, %v479_v44  ;;  %v705_v55 = vpop.f32.mrb[27].mxu1  ;;  %v759_v61 = vmax.f32 %v701_v59, 0.0  ;;  %v499_v59 = vpop.permute.xlu1 %498 }
 0x20a   :  { %v760_v62 = vmax.f32 %v704_v50, 0.0 }
 0x20c   :  { %v793_v28 = vpack.c.bf16 %v760_v62, %v759_v61  ;;  %v504_v62 = vpop.permute.xlu0 %503 }
 0x20d   :  { %v708_v56 = vpop.f32.mrb[28].mxu1 }
 0x20e   :  { %v709_v3 = vadd.f32 %v708_v56, %v484_v46  ;;  %v710_v5 = vpop.f32.mrb[29].mxu1  ;;  %1039 = vmatpush1.bf16.msra.mxu0 %v793_v28 }
 0x20f   :  { %v711_v7 = vpop.f32.mrb[30].mxu1  ;;  %1040 = vmatprep.subr.bf16.mxu0 %v5035_v0 }
 0x210   :  { %v712_v8 = vadd.f32 %v711_v7, %v489_v57  ;;  %v713_v12 = vpop.f32.mrb[31].mxu1  ;;  %v761_v19 = vmax.f32 %v709_v3, 0.0  ;;  %v509_v3 = vpop.permute.xlu1 %508 }
 0x212   :  { %v762_v20 = vmax.f32 %v712_v8, 0.0 }
 0x214   :  { %v794_v21 = vpack.c.bf16 %v762_v20, %v761_v19  ;;  %v514_v20 = vpop.permute.xlu0 %513 }
 0x215   :  { %v716_v30 = vpop.f32.mrb[32].mxu1 }
 0x216   :  { %v717_v31 = vadd.f32 %v716_v30, %v494_v24  ;;  %v718_v40 = vpop.f32.mrb[33].mxu1  ;;  %1041 = vmatpush1.bf16.msra.mxu0 %v794_v21 }
 0x217   :  { %v719_v41 = vpop.f32.mrb[34].mxu1  ;;  %1042 = vmatprep.subr.bf16.mxu0 %v5035_v0 }
 0x218   :  { %v720_v44 = vadd.f32 %v719_v41, %v499_v59  ;;  %v721_v45 = vpop.f32.mrb[35].mxu1  ;;  %v763_v50 = vmax.f32 %v717_v31, 0.0  ;;  %v519_v31 = vpop.permute.xlu1 %518 }
 0x21a   :  { %v764_v55 = vmax.f32 %v720_v44, 0.0 }
 0x21c   :  { %v795_v61 = vpack.c.bf16 %v764_v55, %v763_v50  ;;  %v524_v55 = vpop.permute.xlu0 %523 }
 0x21d   :  { %v724_v28 = vpop.f32.mrb[36].mxu1 }
 0x21e   :  { %v725_v46 = vadd.f32 %v724_v28, %v504_v62  ;;  %v726_v56 = vpop.f32.mrb[37].mxu1  ;;  %1043 = vmatpush1.bf16.msra.mxu0 %v795_v61 }
 0x21f   :  { %v727_v5 = vpop.f32.mrb[38].mxu1  ;;  %1044 = vmatprep.subr.bf16.mxu0 %v5035_v0 }
 0x220   :  { %v728_v57 = vadd.f32 %v727_v5, %v509_v3  ;;  %v729_v7 = vpop.f32.mrb[39].mxu1  ;;  %v765_v8 = vmax.f32 %v725_v46, 0.0  ;;  %v529_v46 = vpop.permute.xlu1 %528 }
 0x222   :  { %v766_v12 = vmax.f32 %v728_v57, 0.0 }
 0x224   :  { %v796_v19 = vpack.c.bf16 %v766_v12, %v765_v8  ;;  %v534_v12 = vpop.permute.xlu0 %533 }
 0x225   :  { %v732_v21 = vpop.f32.mrb[40].mxu1 }
 0x226   :  { %v733_v24 = vadd.f32 %v732_v21, %v514_v20  ;;  %v734_v30 = vpop.f32.mrb[41].mxu1  ;;  %1045 = vmatpush1.bf16.msra.mxu0 %v796_v19 }
 0x227   :  { %v735_v40 = vpop.f32.mrb[42].mxu1  ;;  %1046 = vmatprep.subr.bf16.mxu0 %v5035_v0 }
 0x228   :  { %v736_v59 = vadd.f32 %v735_v40, %v519_v31  ;;  %v737_v41 = vpop.f32.mrb[43].mxu1  ;;  %v767_v44 = vmax.f32 %v733_v24, 0.0  ;;  %v539_v24 = vpop.permute.xlu1 %538 }
 0x22a   :  { %v768_v45 = vmax.f32 %v736_v59, 0.0 }
 0x22c   :  { %v797_v50 = vpack.c.bf16 %v768_v45, %v767_v44  ;;  %v4890_v45 = vld [vmem:[%s6702_s5] ss:$8 sps:$4 sm:$0xff]  }
 0x22d   :  { %v740_v61 = vpop.f32.mrb[44].mxu1 }
 0x22e   :  { %v741_v62 = vadd.f32 %v740_v61, %v524_v55  ;;  %v742_v28 = vpop.f32.mrb[45].mxu1  ;;  %1047 = vmatpush1.bf16.msra.mxu0 %v797_v50  ;;  %v4893_v50 = vld [vmem:[%s6702_s5 + $0x14] ss:$8 sps:$4 sm:$0xff]   ;;  %v4895_v55 = vld [vmem:[%s6702_s5 + $0x10] ss:$8 sps:$4 sm:$0xff]  }
 0x22f   :  { %v743_v56 = vpop.f32.mrb[46].mxu1  ;;  %1048 = vmatprep.subr.bf16.mxu0 %v5035_v0  ;;  %v4896_v61 = vld [vmem:[%s6702_s5 + $0x24] ss:$8 sps:$4 sm:$0xff]   ;;  %v4899_v28 = vld [vmem:[%s6702_s5 + $0x34] ss:$8 sps:$4 sm:$0xff]  }
 0x230   :  { %v744_v3 = vadd.f32 %v743_v56, %v529_v46  ;;  %v745_v5 = vpop.f32.mrb[47].mxu1  ;;  %v769_v57 = vmax.f32 %v741_v62, 0.0  ;;  %v4898_v62 = vld [vmem:[%s6702_s5 + $0x20] ss:$8 sps:$4 sm:$0xff]   ;;  %v4901_v46 = vld [vmem:[%s6702_s5 + $0x30] ss:$8 sps:$4 sm:$0xff]  }
 0x231   :  { %v4902_v56 = vld [vmem:[%s6702_s5 + $0x44] ss:$8 sps:$4 sm:$0xff]   ;;  %v4905_v5 = vld [vmem:[%s6702_s5 + $0x54] ss:$8 sps:$4 sm:$0xff]  }
 0x232   :  { %v770_v7 = vmax.f32 %v744_v3, 0.0  ;;  %v4904_v3 = vld [vmem:[%s6702_s5 + $0x40] ss:$8 sps:$4 sm:$0xff]  }
 0x234   :  { %v798_v8 = vpack.c.bf16 %v770_v7, %v769_v57  ;;  %v4907_v57 = vld [vmem:[%s6702_s5 + $0x50] ss:$8 sps:$4 sm:$0xff]   ;;  %v4908_v7 = vld [vmem:[%s6702_s5 + $0x64] ss:$8 sps:$4 sm:$0xff]  }
 0x235   :  { %v748_v19 = vpop.f32.mrb[48].mxu1 }
 0x236   :  { %v749_v20 = vadd.f32 %v748_v19, %v534_v12  ;;  %v750_v21 = vpop.f32.mrb[49].mxu1  ;;  %1049 = vmatpush1.bf16.msra.mxu0 %v798_v8  ;;  %v4910_v8 = vld [vmem:[%s6702_s5 + $0x60] ss:$8 sps:$4 sm:$0xff]   ;;  %v4911_v12 = vld [vmem:[%s6702_s5 + $0x74] ss:$8 sps:$4 sm:$0xff]  }
 0x237   :  { %v751_v30 = vpop.f32.mrb[50].mxu1  ;;  %1050 = vmatprep.subr.bf16.mxu0 %v5035_v0  ;;  %v4913_v19 = vld [vmem:[%s6702_s5 + $0x70] ss:$8 sps:$4 sm:$0xff]   ;;  %v4916_v21 = vld [vmem:[%s6702_s5 + $0x80] ss:$8 sps:$4 sm:$0xff]  }
 0x238   :  { %v752_v31 = vadd.f32 %v751_v30, %v539_v24  ;;  %v753_v40 = vpop.f32.mrb[51].mxu1  ;;  %v771_v59 = vmax.f32 %v749_v20, 0.0  ;;  %v4914_v20 = vld [vmem:[%s6702_s5 + $0x84] ss:$8 sps:$4 sm:$0xff]   ;;  %v821_v30 = vpop.permute.xlu0 %820 }
 0x239   :  { %v4919_v24 = vld [vmem:[%s6703_s8 + $0x4] ss:$8 sps:$4 sm:$0xff]  }
 0x23a   :  { %v772_v41 = vmax.f32 %v752_v31, 0.0  ;;  %3888 = vmatprep.mubr.msk.bf16.mxu1 %vm622_vm3, %v4919_v24  ;;  %v826_v31 = vpop.permute.xlu1 %825 }
 0x23c   :  { %v799_v44 = vpack.c.bf16 %v772_v41, %v771_v59  ;;  %v831_v40 = vpop.permute.xlu0 %830 }
 0x23d   :  { %v910_v4 = vmul.f32 %v831_v40, %v390_v35 }
 0x23e   :  { %1051 = vmatpush1.bf16.msra.mxu0 %v799_v44  ;;  %v836_v59 = vpop.permute.xlu1 %835 }
 0x23f   :  { %v911_v9 = vmul.f32 %v836_v59, %v391_v36 }
 0x240   :  { %v1160_v41 = vpop.permute.xlu0 %1159 }
 0x241   :  { %1067 = vmatmul.mubr.bf16.vlgmr.msra.gmra.mrb[20].mxu0 %v4890_v45 }
 0x242   :  { %3876 = vmatprep.mubr.msk.bf16.mxu0 %vm622_vm3, %v4893_v50  ;;  %v1165_v44 = vpop.permute.xlu1 %1164 }
 0x244   :  { %v841_v45 = vpop.permute.xlu0 %840 }
 0x245   :  { %v912_v35 = vmul.f32 %v841_v45, %v392_v63 }
 0x246   :  { %v846_v50 = vpop.permute.xlu1 %845 }
 0x249   :  { %1075 = vmatmul.mubr.bf16.gmra.mrb[24].mxu0 %v4895_v55  ;;  %v1170_v55 = vpop.permute.xlu0 %1169 }
 0x24a   :  { %3877 = vmatprep.mubr.msk.bf16.mxu0 %vm622_vm3, %v4896_v61  ;;  %v1175_v61 = vpop.permute.xlu1 %1174 }
 0x251   :  { %1083 = vmatmul.mubr.bf16.gmra.mrb[28].mxu0 %v4898_v62  ;;  %v851_v62 = vpop.permute.xlu0 %850 }
 0x252   :  { %3878 = vmatprep.mubr.msk.bf16.mxu0 %vm622_vm3, %v4899_v28  ;;  %v856_v28 = vpop.permute.xlu1 %855  ;;  %v914_v45 = vmul.f32 %v851_v62, %v394_v33 }
 0x259   :  { %1091 = vmatmul.mubr.bf16.gmra.mrb[32].mxu0 %v4901_v46  ;;  %v1180_v46 = vpop.permute.xlu0 %1179 }
 0x25a   :  { %3879 = vmatprep.mubr.msk.bf16.mxu0 %vm622_vm3, %v4902_v56  ;;  %v908_v56 = vmul.f32 %v821_v30, %v388_v15 }
 0x25d   :  { %v861_v24 = vpop.permute.xlu0 %860 }
 0x25e   :  { %v916_v62 = vmul.f32 %v861_v24, %v396_v51 }
 0x261   :  { %1099 = vmatmul.mubr.bf16.gmra.mrb[36].mxu0 %v4904_v3  ;;  %v1185_v3 = vpop.permute.xlu1 %1184 }
 0x262   :  { %3880 = vmatprep.mubr.msk.bf16.mxu0 %vm622_vm3, %v4905_v5 }
 0x265   :  { %v866_v60 = vpop.permute.xlu1 %865 }
 0x269   :  { %1107 = vmatmul.mubr.bf16.gmra.mrb[40].mxu0 %v4907_v57 }
 0x26a   :  { %3881 = vmatprep.mubr.msk.bf16.mxu0 %vm622_vm3, %v4908_v7 }
 0x271   :  { %1115 = vmatmul.mubr.bf16.gmra.mrb[44].mxu0 %v4910_v8  ;;  %v909_v8 = vmul.f32 %v826_v31, %v389_v16  ;;  %v1190_v16 = vpop.permute.xlu0 %1189 }
 0x272   :  { %3882 = vmatprep.mubr.msk.bf16.mxu0 %vm622_vm3, %v4911_v12 }
 0x279   :  { %1123 = vmatmul.mubr.bf16.gmra.mrb[48].mxu0 %v4913_v19 }
 0x27a   :  { %3883 = vmatprep.mubr.msk.bf16.mxu0 %vm622_vm3, %v4914_v20 }
 0x281   :  { %1131 = vmatmul.mubr.bf16.gmra.mrb[52].mxu0 %v4916_v21 }
 0x314   :  { %v1068_v5 = vpop.f32.mrb[20].mxu0 }
 0x315   :  { %v1069_v57 = vadd.f32 %v1068_v5, %v908_v56  ;;  %v1070_v7 = vpop.f32.mrb[21].mxu0 }
 0x316   :  { %v1071_v12 = vpop.f32.mrb[22].mxu0 }
 0x317   :  { %v1247_v19 = vadd.f32 %v1160_v41, %v1069_v57  ;;  %v1072_v20 = vadd.f32 %v1071_v12, %v909_v8  ;;  %v1073_v21 = vpop.f32.mrb[23].mxu0 }
 0x319   :  { %v1248_v39 = vadd.f32 %v1165_v44, %v1072_v20  ;;  %v1265_v2 = vmax.f32 %v1247_v19, 0.0  ;;  %v1195_v44 = vpop.permute.xlu1 %1194 }
 0x31b   :  { %v1266_v58 = vmax.f32 %v1248_v39, 0.0 }
 0x31c   :  { %v1076_v15 = vpop.f32.mrb[24].mxu0 }
 0x31d   :  { %v1287_v30 = vpack.c.bf16 %v1266_v58, %v1265_v2  ;;  %v1077_v43 = vadd.f32 %v1076_v15, %v910_v4  ;;  %v1078_v56 = vpop.f32.mrb[25].mxu0  ;;  %v871_v58 = vpop.permute.xlu0 %870 }
 0x31e   :  { %v1079_v31 = vpop.f32.mrb[26].mxu0  ;;  %v876_v59 = vpop.permute.xlu1 %875  ;;  %v918_v42 = vmul.f32 %v871_v58, %v398_v22 }
 0x31f   :  { %v1249_v41 = vadd.f32 %v1170_v55, %v1077_v43  ;;  %v1080_v5 = vadd.f32 %v1079_v31, %v911_v9  ;;  %v1081_v57 = vpop.f32.mrb[27].mxu0  ;;  %1345 = vmatpush1.bf16.msra.mxu1 %v1287_v30  ;;  %v913_v43 = vmul.f32 %v846_v50, %v393_v1  ;;  %v915_v50 = vmul.f32 %v856_v28, %v395_v34 }
 0x320   :  { %1346 = vmatprep.subr.bf16.mxu1 %v5035_v0  ;;  %v917_v34 = vmul.f32 %v866_v60, %v397_v52  ;;  %v919_v60 = vmul.f32 %v876_v59, %v399_v23  ;;  %v6783_v59 = vmax.f32 %v5570_v38, 0.0 }
 0x321   :  { %v1250_v39 = vadd.f32 %v1175_v61, %v1080_v5  ;;  %v1267_v7 = vmax.f32 %v1249_v41, 0.0  ;;  %v1200_v20 = vpop.permute.xlu0 %1199 }
 0x322   :  { %v1205_v21 = vpop.permute.xlu1 %1204 }
 0x323   :  { %v1268_v26 = vmax.f32 %v1250_v39, 0.0 }
 0x324   :  { %v1084_v2 = vpop.f32.mrb[28].mxu0 }
 0x325   :  { %v1288_v40 = vpack.c.bf16 %v1268_v26, %v1267_v7  ;;  %v1085_v32 = vadd.f32 %v1084_v2, %v912_v35  ;;  %v1086_v36 = vpop.f32.mrb[29].mxu0 }
 0x326   :  { %v1087_v55 = vpop.f32.mrb[30].mxu0  ;;  %v886_v41 = vpop.permute.xlu1 %885 }
 0x327   :  { %v1251_v8 = vadd.f32 %v1180_v46, %v1085_v32  ;;  %v1088_v12 = vadd.f32 %v1087_v55, %v913_v43  ;;  %v1089_v19 = vpop.f32.mrb[31].mxu0  ;;  %1347 = vmatpush1.bf16.msra.mxu1 %v1288_v40 }
 0x328   :  { %1348 = vmatprep.subr.bf16.mxu1 %v5035_v0 }
 0x329   :  { %v1252_v61 = vadd.f32 %v1185_v3, %v1088_v12  ;;  %v1269_v47 = vmax.f32 %v1251_v8, 0.0  ;;  %v881_v3 = vpop.permute.xlu0 %880 }
 0x32a   :  { %v920_v58 = vmul.f32 %v881_v3, %v400_v37  ;;  %v6785_v3 = vmax.f32 %v5588_v54, 0.0 }
 0x32b   :  { %v1270_v63 = vmax.f32 %v1252_v61, 0.0 }
 0x32c   :  { %v1092_v4 = vpop.f32.mrb[32].mxu0 }
 0x32d   :  { %v1289_v15 = vpack.c.bf16 %v1270_v63, %v1269_v47  ;;  %v1093_v53 = vadd.f32 %v1092_v4, %v914_v45  ;;  %v1094_v1 = vpop.f32.mrb[33].mxu0  ;;  %v1210_v28 = vpop.permute.xlu0 %1209  ;;  %v921_v47 = vmul.f32 %v886_v41, %v6783_v59 }
 0x32e   :  { %v1095_v46 = vpop.f32.mrb[34].mxu0 }
 0x32f   :  { %v1253_v30 = vadd.f32 %v1190_v16, %v1093_v53  ;;  %v1096_v56 = vadd.f32 %v1095_v46, %v915_v50  ;;  %v1097_v9 = vpop.f32.mrb[35].mxu0  ;;  %1349 = vmatpush1.bf16.msra.mxu1 %v1289_v15  ;;  %v6784_v46 = vmax.f32 %v5583_v48, 0.0 }
 0x330   :  { %1350 = vmatprep.subr.bf16.mxu1 %v5035_v0 }
 0x331   :  { %v1254_v31 = vadd.f32 %v1195_v44, %v1096_v56  ;;  %v1271_v14 = vmax.f32 %v1253_v30, 0.0  ;;  %v1215_v44 = vpop.permute.xlu1 %1214  ;;  %v891_v40 = vpop.permute.xlu0 %890 }
 0x332   :  { %v922_v30 = vmul.f32 %v891_v40, %v6784_v46 }
 0x333   :  { %v1272_v33 = vmax.f32 %v1254_v31, 0.0 }
 0x334   :  { %v1100_v5 = vpop.f32.mrb[36].mxu0 }
 0x335   :  { %v1290_v57 = vpack.c.bf16 %v1272_v33, %v1271_v14  ;;  %v1101_v39 = vadd.f32 %v1100_v5, %v916_v62  ;;  %v1102_v25 = vpop.f32.mrb[37].mxu0  ;;  %v896_v43 = vpop.permute.xlu1 %895 }
 0x336   :  { %v1103_v16 = vpop.f32.mrb[38].mxu0  ;;  %v1220_v22 = vpop.permute.xlu0 %1219  ;;  %v923_v31 = vmul.f32 %v896_v43, %v6785_v3 }
 0x337   :  { %v1255_v7 = vadd.f32 %v1200_v20, %v1101_v39  ;;  %v1104_v26 = vadd.f32 %v1103_v16, %v917_v34  ;;  %v1105_v35 = vpop.f32.mrb[39].mxu0  ;;  %1351 = vmatpush1.bf16.msra.mxu1 %v1290_v57 }
 0x338   :  { %1352 = vmatprep.subr.bf16.mxu1 %v5035_v0  ;;  %v6787_v35 = vmax.f32 %v5611_v27, 0.0  ;;  %v4917_v27 = vld [vmem:[%s6703_s8] ss:$8 sps:$4 sm:$0xff]  }
 0x339   :  { %v1256_v2 = vadd.f32 %v1205_v21, %v1104_v26  ;;  %v1273_v51 = vmax.f32 %v1255_v7, 0.0  ;;  %v1225_v17 = vpop.permute.xlu1 %1224 }
 0x33a   :  { %v901_v50 = vpop.permute.xlu0 %900 }
 0x33b   :  { %v1274_v24 = vmax.f32 %v1256_v2, 0.0 }
 0x33c   :  { %v1108_v32 = vpop.f32.mrb[40].mxu0 }
 0x33d   :  { %v1291_v49 = vpack.c.bf16 %v1274_v24, %v1273_v51  ;;  %v1109_v52 = vadd.f32 %v1108_v32, %v918_v42  ;;  %v1110_v36 = vpop.f32.mrb[41].mxu0  ;;  %v906_v37 = vpop.permute.xlu1 %905 }
 0x33e   :  { %v1111_v55 = vpop.f32.mrb[42].mxu0  ;;  %v1230_v62 = vpop.permute.xlu0 %1229 }
 0x33f   :  { %v1257_v8 = vadd.f32 %v1210_v28, %v1109_v52  ;;  %v1112_v12 = vadd.f32 %v1111_v55, %v919_v60  ;;  %v1113_v19 = vpop.f32.mrb[43].mxu0  ;;  %1353 = vmatpush1.bf16.msra.mxu1 %v1291_v49  ;;  %v6786_v28 = vmax.f32 %v5605_v18, 0.0 }
 0x340   :  { %1354 = vmatprep.subr.bf16.mxu1 %v5035_v0  ;;  %v4942_v19 = vld [vmem:[%s6707_s21 + $0x8] sm:$0xff]  }
 0x341   :  { %v1258_v13 = vadd.f32 %v1215_v44, %v1112_v12  ;;  %v1275_v61 = vmax.f32 %v1257_v8, 0.0  ;;  %v1235_v34 = vpop.permute.xlu1 %1234  ;;  %v924_v16 = vmul.f32 %v901_v50, %v6786_v28  ;;  %v925_v44 = vmul.f32 %v906_v37, %v6787_v35  ;;  %v4920_v8 = vld [vmem:[%s6703_s8 + $0x14] ss:$8 sps:$4 sm:$0xff]   ;;  %v4923_v12 = vld [vmem:[%s6704_s10] sm:$0xff]  }
 0x342   :  { %v1240_v24 = vpop.permute.xlu0 %1239  ;;  %v4934_v28 = vld [vmem:[%s6706_s14 + $0x38] sm:$0xff]   ;;  %v4939_v35 = vld [vmem:[%s6706_s14 + $0x60] sm:$0xff]  }
 0x343   :  { %v1276_v20 = vmax.f32 %v1258_v13, 0.0  ;;  %v4943_v13 = vld [vmem:[%s6707_s21 + $0x10] sm:$0xff]  }
 0x344   :  { %v1116_v23 = vpop.f32.mrb[44].mxu0 }
 0x345   :  { %v1292_v63 = vpack.c.bf16 %v1276_v20, %v1275_v61  ;;  %v1117_v45 = vadd.f32 %v1116_v23, %v920_v58  ;;  %v1118_v21 = vpop.f32.mrb[45].mxu0  ;;  %v1245_v52 = vpop.permute.xlu1 %1244  ;;  %v4945_v58 = vld [vmem:[%s6707_s21 + $0x20] sm:$0xff]   ;;  %v4946_v61 = vld [vmem:[%s6707_s21 + $0x28] sm:$0xff]  }
 0x346   :  { %v1119_v4 = vpop.f32.mrb[46].mxu0  ;;  %v1406_v21 = vpop.permute.xlu0 %1405 }
 0x347   :  { %v1259_v15 = vadd.f32 %v1220_v22, %v1117_v45  ;;  %v1120_v53 = vadd.f32 %v1119_v4, %v921_v47  ;;  %v1121_v1 = vpop.f32.mrb[47].mxu0  ;;  %1355 = vmatpush1.bf16.msra.mxu1 %v1292_v63  ;;  %v4944_v22 = vld [vmem:[%s6707_s21 + $0x18] sm:$0xff]  }
 0x348   :  { %1356 = vmatprep.subr.bf16.mxu1 %v5035_v0 }
 0x349   :  { %v1260_v29 = vadd.f32 %v1225_v17, %v1120_v53  ;;  %v1277_v56 = vmax.f32 %v1259_v15, 0.0  ;;  %v1411_v46 = vpop.permute.xlu1 %1410 }
 0x34a   :  { %v1416_v53 = vpop.permute.xlu0 %1415 }
 0x34b   :  { %v1278_v9 = vmax.f32 %v1260_v29, 0.0 }
 0x34c   :  { %v1124_v38 = vpop.f32.mrb[48].mxu0 }
 0x34d   :  { %v1293_v41 = vpack.c.bf16 %v1278_v9, %v1277_v56  ;;  %v1125_v14 = vadd.f32 %v1124_v38, %v922_v30  ;;  %v1126_v33 = vpop.f32.mrb[49].mxu0 }
 0x34e   :  { %v1127_v5 = vpop.f32.mrb[50].mxu0  ;;  %v4926_v33 = vld [vmem:[%s6705_s12 + $0x8] ss:$0 sps:$4 sm:$0xff]  }
 0x34f   :  { %v1261_v57 = vadd.f32 %v1230_v62, %v1125_v14  ;;  %v1128_v39 = vadd.f32 %v1127_v5, %v923_v31  ;;  %v1129_v25 = vpop.f32.mrb[51].mxu0  ;;  %1357 = vmatpush1.bf16.msra.mxu1 %v1293_v41  ;;  %v4927_v62 = vld [vmem:[%s6706_s14] sm:$0xff]   ;;  %v4928_v5 = vld [vmem:[%s6706_s14 + $0x8] sm:$0xff]  }
 0x350   :  { %1358 = vmatprep.subr.bf16.mxu1 %v5035_v0  ;;  %v4931_v25 = vld [vmem:[%s6706_s14 + $0x20] sm:$0xff]  }
 0x351   :  { %v1262_v48 = vadd.f32 %v1235_v34, %v1128_v39  ;;  %v1279_v7 = vmax.f32 %v1261_v57, 0.0  ;;  %v4929_v57 = vld [vmem:[%s6706_s14 + $0x10] sm:$0xff]   ;;  %v4930_v39 = vld [vmem:[%s6706_s14 + $0x18] sm:$0xff]   ;;  %v4932_v34 = vld [vmem:[%s6706_s14 + $0x28] sm:$0xff]  }
 0x353   :  { %v1280_v26 = vmax.f32 %v1262_v48, 0.0  ;;  %v4933_v48 = vld [vmem:[%s6706_s14 + $0x30] sm:$0xff]  }
 0x354   :  { %v1132_v54 = vpop.f32.mrb[52].mxu0 }
 0x355   :  { %v1294_v2 = vpack.c.bf16 %v1280_v26, %v1279_v7  ;;  %v1133_v42 = vadd.f32 %v1132_v54, %v924_v16  ;;  %v1134_v51 = vpop.f32.mrb[53].mxu0  ;;  %v4935_v16 = vld [vmem:[%s6706_s14 + $0x40] sm:$0xff]   ;;  %v4936_v7 = vld [vmem:[%s6706_s14 + $0x48] sm:$0xff]   ;;  %v4937_v26 = vld [vmem:[%s6706_s14 + $0x50] sm:$0xff]  }
 0x356   :  { %v1135_v40 = vpop.f32.mrb[54].mxu0  ;;  %v4938_v54 = vld [vmem:[%s6706_s14 + $0x58] sm:$0xff]   ;;  %v5953_v51 = vld [vmem:[%s6707_s21 + $0x80] sm:$0xff]  }
 0x357   :  { %v1263_v32 = vadd.f32 %v1240_v24, %v1133_v42  ;;  %v1136_v60 = vadd.f32 %v1135_v40, %v925_v44  ;;  %v1137_v49 = vpop.f32.mrb[55].mxu0  ;;  %1359 = vmatpush1.bf16.msra.mxu1 %v1294_v2  ;;  %v4940_v44 = vld [vmem:[%s6706_s14 + $0x68] ss:$0 sps:$4 sm:$0xff]   ;;  %v5941_v2 = vld [vmem:[%s6707_s21 + $0x30] sm:$0xff]   ;;  %v5948_v42 = vld [vmem:[%s6707_s21 + $0x38] sm:$0xff]  }
 0x358   :  { %1360 = vmatprep.subr.bf16.mxu1 %v5035_v0  ;;  %v4922_v0 = vld [vmem:[%s6703_s8 + $0x10] ss:$8 sps:$4 sm:$0xff]   ;;  %v5961_v24 = vld [vmem:[%s6707_s21 + $0x40] sm:$0xff]   ;;  %v5967_v40 = vld [vmem:[%s6707_s21 + $0x88] sm:$0xff]  }
 0x359   :  { %v1264_v18 = vadd.f32 %v1245_v52, %v1136_v60  ;;  %v1281_v36 = vmax.f32 %v1263_v32, 0.0  ;;  %v5975_v32 = vld [vmem:[%s6707_s21 + $0x90] sm:$0xff]   ;;  %v5982_v60 = vld [vmem:[%s6707_s21 + $0x98] sm:$0xff]   ;;  %v5989_v49 = vld [vmem:[%s6707_s21 + $0xa0] sm:$0xff]  }
 0x35a   :  { %v5996_v52 = vld [vmem:[%s6707_s21 + $0xa8] sm:$0xff]  }
 0x35b   :  { %v1282_v43 = vmax.f32 %v1264_v18, 0.0  ;;  %v6003_v18 = vld [vmem:[%s6707_s21 + $0xb0] sm:$0xff]  }
 0x35d   :  { %v1295_v55 = vpack.c.bf16 %v1282_v43, %v1281_v36  ;;  %v6010_v36 = vld [vmem:[%s6707_s21 + $0xb8] sm:$0xff]   ;;  %v6017_v43 = vld [vmem:[%s6707_s21 + $0x140] sm:$0xff]  }
 0x35f   :  { %1361 = vmatpush1.bf16.msra.mxu1 %v1295_v55 }
 0x360   :  { %4407 = vmatprep.subr.bf16.mxu1 %v5174_v6 }
 0x362   :  { %1377 = vmatmul.mubr.bf16.vlgmr.msra.gmra.mrb[52].mxu1 %v4917_v27 }
 0x363   :  { %4408 = vmatpush3.bf16.msra.mxu1 %v5174_v6  ;;  %3889 = vmatprep.mubr.msk.bf16.mxu1 %vm622_vm3, %v4920_v8  ;;  %v4924_v6 = vld [vmem:[%s6704_s10 + $0x8] ss:$0 sps:$4 sm:$0xff]  }
 0x364   :  { %4843 = vmatprep.subr.msk.bf16.mxu1 %vm279_vm0, %v5185_v10  ;;  %v4925_v10 = vld [vmem:[%s6705_s12] sm:$0xff]  }
 0x367   :  { %4410 = vmatpush3.bf16.msra.mxu1 %v5195_v11  ;;  %v4941_v11 = vld [vmem:[%s6707_s21] sm:$0xff]  }
 0x368   :  { %4455 = vmatprep.subr.bf16.mxu0 %v4941_v11 }
 0x369   :  { %4456 = vmatpush3.bf16.msra.mxu0 %v4941_v11 }
 0x36a   :  { %1385 = vmatmul.mubr.bf16.gmra.mrb[56].mxu1 %v4922_v0  ;;  %4457 = vmatprep.subr.bf16.mxu0 %v4942_v19 }
 0x36b   :  { %4411 = vmatprep.mubr.msk.bf16.mxu1 %vm251_vm2, %v4923_v12 }
 0x36d   :  { %4458 = vmatpush3.bf16.msra.mxu0 %v4942_v19 }
 0x36e   :  { %4459 = vmatprep.subr.bf16.mxu0 %v4943_v13 }
 0x371   :  { %4460 = vmatpush3.bf16.msra.mxu0 %v4943_v13 }
 0x372   :  { %4412 = vmatmul.mubr.msk.bf16.vlgmr.msra.gmra.mrb[60].mxu1 %vm251_vm2, %v4924_v6  ;;  %4461 = vmatprep.subr.bf16.mxu0 %v4944_v22 }
 0x373   :  { %4419 = vmatprep.mubr.msk.bf16.mxu1 %vm1514_vm4, %v4925_v10 }
 0x375   :  { %4462 = vmatpush3.bf16.msra.mxu0 %v4944_v22  ;;  %v6029_v22 = vld [vmem:[%s6707_s21 + $0x48] sm:$0xff]  }
 0x376   :  { %4463 = vmatprep.subr.bf16.mxu0 %v4945_v58 }
 0x379   :  { %4464 = vmatpush3.bf16.msra.mxu0 %v4945_v58 }
 0x37a   :  { %4465 = vmatprep.subr.bf16.mxu0 %v4946_v61 }
 0x37d   :  { %4466 = vmatpush3.bf16.msra.mxu0 %v4946_v61 }
 0x37e   :  { %4467 = vmatprep.subr.bf16.mxu0 %v5941_v2 }
 0x381   :  { %4468 = vmatpush3.bf16.msra.mxu0 %v5941_v2 }
 0x382   :  { %4469 = vmatprep.subr.bf16.mxu0 %v5948_v42 }
 0x385   :  { %4470 = vmatpush3.bf16.msra.mxu0 %v5948_v42 }
 0x386   :  { %4475 = vmatprep.subr.bf16.mxu0 %v5961_v24 }
 0x435   :  { %v5867_v20 = vpop.f32.mrb[52].mxu1 }
 0x436   :  { %6788 = vst [vmem:[#allocation2_spill] sm:$0xff] %v5867_v20  ;;  %v1380_v17 = vpop.f32.mrb[53].mxu1  ;;  %v6338_v20 = vld [vmem:[%s6707_s21 + $0x208] sm:$0xff]  }
 0x437   :  { %v5869_v23 = vpop.f32.mrb[54].mxu1  ;;  %v6036_v17 = vld [vmem:[%s6707_s21 + $0x50] sm:$0xff]   ;;  %6809 = vst [vmem:[#allocation23_spill] sm:$0xff] %v6338_v20 }
 0x438   :  { %6789 = vst [vmem:[#allocation3_spill] sm:$0xff] %v5869_v23  ;;  %v1383_v59 = vpop.f32.mrb[55].mxu1  ;;  %v6329_v23 = vld [vmem:[%s6707_s21 + $0x200] sm:$0xff]  }
 0x439   :  { %6808 = vst [vmem:[#allocation22_spill] sm:$0xff] %v6329_v23 }
 0x43d   :  { %v5871_v47 = vpop.f32.mrb[56].mxu1 }
 0x43e   :  { %6790 = vst [vmem:[#allocation4_spill] sm:$0xff] %v5871_v47  ;;  %v1388_v63 = vpop.f32.mrb[57].mxu1 }
 0x43f   :  { %v5873_v45 = vpop.f32.mrb[58].mxu1 }
 0x440   :  { %6791 = vst [vmem:[#allocation5_spill] sm:$0xff] %v5873_v45  ;;  %v1391_v4 = vpop.f32.mrb[59].mxu1 }
 0x445   :  { %v4413_v15 = vpop.f32.mrb[60].mxu1 }
 0x446   :  { %v1466_v1 = vpop.f32.mrb[61].mxu1  ;;  %v1475_v50 = vadd.f32 %v4413_v15, %v1416_v53  ;;  %v6043_v15 = vld [vmem:[%s6707_s21 + $0x58] sm:$0xff]  }
 0x447   :  { %v1467_v29 = vadd.f32 %v1466_v1, %v1406_v21  ;;  %v4414_v37 = vpop.f32.mrb[62].mxu1  ;;  %v6050_v1 = vld [vmem:[%s6707_s21 + $0x60] sm:$0xff]  }
 0x448   :  { %v1469_v30 = vpop.f32.mrb[63].mxu1  ;;  %v1482_v9 = vmax.f32 %v1475_v50, 0.0  ;;  %v6055_v37 = vld [vmem:[%s6707_s21 + $0x148] sm:$0xff]  }
 0x449   :  { %v1470_v56 = vadd.f32 %v1469_v30, %v1411_v46  ;;  %v1480_v38 = vmax.f32 %v1467_v29, 0.0 }
 0x44a   :  { %v1487_v41 = vpack.c.bf16 %v1482_v9, %v1482_v9  ;;  %v6064_v9 = vld [vmem:[%s6707_s21 + $0x68] sm:$0xff]  }
 0x44b   :  { %v1481_v3 = vmax.f32 %v1470_v56, 0.0 }
 0x44c   :  { %v1523_v14 = vsel %vm1521_vm5, %v1487_v41, 0 }
 0x44d   :  { %v1486_v31 = vpack.c.bf16 %v1481_v3, %v1480_v38  ;;  %v6071_v38 = vld [vmem:[%s6707_s21 + $0x150] sm:$0xff]  }
 0x44f   :  { %4415 = vmatprep.subr.bf16.mxu1 %v1486_v31 }
 0x450   :  { %4416 = vmatpush3.bf16.msra.mxu1 %v1486_v31 }
 0x451   :  { %4844 = vmatprep.subr.msk.bf16.mxu1 %vm1521_vm5, %v1487_v41 }
 0x454   :  { %4418 = vmatpush3.bf16.msra.mxu1 %v1523_v14 }
 0x455   :  { %4423 = vmatprep.subr.bf16.mxu1 %v1486_v31 }
 0x457   :  { %4420 = vmatmul.mubr.msk.bf16.vlgmr.msra.gmra.mrb[64].mxu1 %vm1514_vm4, %v4926_v33 }
 0x458   :  { %4424 = vmatpush3.bf16.msra.mxu1 %v1486_v31  ;;  %4427 = vmatprep.mubr.msk.bf16.mxu1 %vm1514_vm4, %v4927_v62  ;;  %v6080_v31 = vld [vmem:[%s6707_s21 + $0x70] sm:$0xff]  }
 0x459   :  { %4845 = vmatprep.subr.msk.bf16.mxu1 %vm1521_vm5, %v1487_v41 }
 0x45c   :  { %4426 = vmatpush3.bf16.msra.mxu1 %v1523_v14  ;;  %v6089_v14 = vld [vmem:[%s6707_s21 + $0x158] sm:$0xff]  }
 0x45d   :  { %4495 = vmatprep.subr.bf16.mxu1 %v5953_v51 }
 0x45f   :  { %4428 = vmatmul.mubr.msk.bf16.vlgmr.msra.gmra.mrb[68].mxu1 %vm1514_vm4, %v4928_v5  ;;  %v6098_v5 = vld [vmem:[%s6707_s21 + $0x78] sm:$0xff]  }
 0x460   :  { %4431 = vmatprep.mubr.msk.bf16.mxu1 %vm1514_vm4, %v4929_v57  ;;  %4496 = vmatpush3.bf16.msra.mxu1 %v5953_v51  ;;  %v6105_v57 = vld [vmem:[%s6707_s21 + $0x160] sm:$0xff]  }
 0x461   :  { %4497 = vmatprep.subr.bf16.mxu1 %v5967_v40 }
 0x464   :  { %4498 = vmatpush3.bf16.msra.mxu1 %v5967_v40 }
 0x465   :  { %4499 = vmatprep.subr.bf16.mxu1 %v5975_v32 }
 0x467   :  { %4432 = vmatmul.mubr.msk.bf16.gmra.mrb[72].mxu1 %vm1514_vm4, %v4930_v39 }
 0x468   :  { %4435 = vmatprep.mubr.msk.bf16.mxu1 %vm1514_vm4, %v4931_v25  ;;  %4500 = vmatpush3.bf16.msra.mxu1 %v5975_v32  ;;  %v6114_v25 = vld [vmem:[%s6707_s21 + $0xc0] sm:$0xff]  }
 0x469   :  { %4501 = vmatprep.subr.bf16.mxu1 %v5982_v60 }
 0x46c   :  { %4502 = vmatpush3.bf16.msra.mxu1 %v5982_v60 }
 0x46d   :  { %4503 = vmatprep.subr.bf16.mxu1 %v5989_v49 }
 0x46f   :  { %4436 = vmatmul.mubr.msk.bf16.gmra.mrb[76].mxu1 %vm1514_vm4, %v4932_v34 }
 0x470   :  { %4439 = vmatprep.mubr.msk.bf16.mxu1 %vm1514_vm4, %v4933_v48  ;;  %4504 = vmatpush3.bf16.msra.mxu1 %v5989_v49  ;;  %v6121_v48 = vld [vmem:[%s6707_s21 + $0x168] sm:$0xff]  }
 0x471   :  { %4505 = vmatprep.subr.bf16.mxu1 %v5996_v52 }
 0x474   :  { %4506 = vmatpush3.bf16.msra.mxu1 %v5996_v52 }
 0x475   :  { %4507 = vmatprep.subr.bf16.mxu1 %v6003_v18 }
 0x477   :  { %4440 = vmatmul.mubr.msk.bf16.gmra.mrb[80].mxu1 %vm1514_vm4, %v4934_v28 }
 0x478   :  { %4443 = vmatprep.mubr.msk.bf16.mxu1 %vm1514_vm4, %v4935_v16  ;;  %4508 = vmatpush3.bf16.msra.mxu1 %v6003_v18 }
 0x479   :  { %4509 = vmatprep.subr.bf16.mxu1 %v6010_v36 }
 0x47c   :  { %4510 = vmatpush3.bf16.msra.mxu1 %v6010_v36 }
 0x47d   :  { %4535 = vmatprep.subr.bf16.mxu1 %v6017_v43 }
 0x47f   :  { %4444 = vmatmul.mubr.msk.bf16.gmra.mrb[84].mxu1 %vm1514_vm4, %v4936_v7 }
 0x480   :  { %4447 = vmatprep.mubr.msk.bf16.mxu1 %vm1514_vm4, %v4937_v26 }
 0x487   :  { %4448 = vmatmul.mubr.msk.bf16.gmra.mrb[88].mxu1 %vm1514_vm4, %v4938_v54 }
 0x488   :  { %4451 = vmatprep.mubr.msk.bf16.mxu1 %vm1514_vm4, %v4939_v35  ;;  %v6132_v35 = vld [vmem:[%s6707_s21 + $0xc8] sm:$0xff]  }
 0x48f   :  { %4452 = vmatmul.mubr.msk.bf16.gmra.mrb[92].mxu1 %vm1514_vm4, %v4940_v44  ;;  %v6139_v44 = vld [vmem:[%s6707_s21 + $0x170] sm:$0xff]  }
 0x490   :  { %6795 = vst [vmem:[#allocation9_spill] sm:$0xff] %v6139_v44 }
 0x52a   :  { %v6020_v55 = vpop.f32.mrb[64].mxu1 }
 0x52b   :  { %6792 = vst [vmem:[#allocation6_spill] sm:$0xff] %v6020_v55  ;;  %v6022_v27 = vpop.f32.mrb[65].mxu1 }
 0x52c   :  { %6793 = vst [vmem:[#allocation7_spill] sm:$0xff] %v6022_v27  ;;  %v4422_v8 = vpop.f32.mrb[66].mxu1 }
 0x52d   :  { %v6024_v0 = vpop.f32.mrb[67].mxu1 }
 0x52e   :  { %6794 = vst [vmem:[#allocation8_spill] sm:$0xff] %v6024_v0  ;;  %v6383_v0 = vld [vmem:[%s6707_s21 + $0x238] sm:$0xff]  }
 0x52f   :  { %6816 = vst [vmem:[#allocation29_spill] sm:$0xff] %v6383_v0 }
 0x532   :  { %v4429_v12 = vpop.f32.mrb[68].mxu1 }
 0x533   :  { %v1744_v6 = vpop.f32.mrb[69].mxu1  ;;  %v1855_v13 = vpack.c.bf16 %v4429_v12, %v4429_v12  ;;  %v6146_v12 = vld [vmem:[%s6707_s21 + $0xd0] sm:$0xff]  }
 0x534   :  { %v4430_v10 = vpop.f32.mrb[70].mxu1 }
 0x535   :  { %v1747_v11 = vpop.f32.mrb[71].mxu1 }
 0x536   :  { %v1854_v19 = vpack.c.bf16 %v1747_v11, %v1744_v6 }
 0x538   :  { %4471 = vmatprep.mubr.bf16.mxu0 %v1854_v19 }
 0x539   :  { %4472 = vmatmul.mubr.bf16.vlgmr.msra.gmra.mrb[56].mxu0 %v1855_v13 }
 0x53a   :  { %4476 = vmatpush3.bf16.msra.mxu0 %v5961_v24  ;;  %v4433_v58 = vpop.f32.mrb[72].mxu1 }
 0x53b   :  { %v1760_v61 = vpop.f32.mrb[73].mxu1  ;;  %4477 = vmatprep.subr.bf16.mxu0 %v6029_v22 }
 0x53c   :  { %v1971_v59 = vpack.c.bf16 %v1760_v61, %v4430_v10  ;;  %v4434_v63 = vpop.f32.mrb[74].mxu1  ;;  %v6155_v10 = vld [vmem:[%s6707_s21 + $0x178] sm:$0xff]   ;;  %v6171_v61 = vld [vmem:[%s6707_s21 + $0x1c0] sm:$0xff]  }
 0x53d   :  { %v2089_v21 = vpack.c.bf16 %v4434_v63, %v4433_v58  ;;  %v1763_v4 = vpop.f32.mrb[75].mxu1  ;;  %6796 = vst [vmem:[#allocation10_spill] sm:$0xff] %v6155_v10  ;;  %v6164_v58 = vld [vmem:[%s6707_s21 + $0xd8] sm:$0xff]   ;;  %6797 = vst [vmem:[#allocation11_spill] sm:$0xff] %v6171_v61 }
 0x53e   :  { %4478 = vmatpush3.bf16.msra.mxu0 %v6029_v22  ;;  %4491 = vmatprep.mubr.bf16.mxu0 %v1971_v59  ;;  %v1972_v54 = vpack.c.bf16 %v1763_v4, %v1763_v4 }
 0x53f   :  { %4479 = vmatprep.subr.bf16.mxu0 %v6036_v17  ;;  %4511 = vmatprep.mubr.bf16.mxu1 %v2089_v21  ;;  %v6180_v21 = vld [vmem:[%s6707_s21 + $0xe0] sm:$0xff]  }
 0x542   :  { %4480 = vmatpush3.bf16.msra.mxu0 %v6036_v17  ;;  %v4437_v53 = vpop.f32.mrb[76].mxu1 }
 0x543   :  { %4481 = vmatprep.subr.bf16.mxu0 %v6043_v15  ;;  %v1776_v50 = vpop.f32.mrb[77].mxu1 }
 0x544   :  { %v2090_v29 = vpack.c.bf16 %v1776_v50, %v1776_v50  ;;  %v6057_v46 = vpop.f32.mrb[78].mxu1 }
 0x545   :  { %v1779_v30 = vpop.f32.mrb[79].mxu1 }
 0x546   :  { %4482 = vmatpush3.bf16.msra.mxu0 %v6043_v15  ;;  %4512 = vmatmul.mubr.bf16.vlgmr.msra.gmra.mrb[96].mxu1 %v2090_v29  ;;  %v2207_v56 = vpack.c.bf16 %v4437_v53, %v1779_v30  ;;  %v6189_v53 = vld [vmem:[%s6707_s21 + $0x1c8] sm:$0xff]  }
 0x547   :  { %4483 = vmatprep.subr.bf16.mxu0 %v6050_v1  ;;  %4536 = vmatpush3.bf16.msra.mxu1 %v6017_v43  ;;  %6798 = vst [vmem:[#allocation12_spill] sm:$0xff] %v6189_v53  ;;  %v6308_v30 = vld [vmem:[%s6707_s21 + $0x1a8] sm:$0xff]  }
 0x548   :  { %4537 = vmatprep.subr.bf16.mxu1 %v6055_v37  ;;  %6805 = vst [vmem:[#allocation19_spill] sm:$0xff] %v6308_v30 }
 0x54a   :  { %4484 = vmatpush3.bf16.msra.mxu0 %v6050_v1  ;;  %v6074_v3 = vpop.f32.mrb[80].mxu1 }
 0x54b   :  { %4485 = vmatprep.subr.bf16.mxu0 %v6064_v9  ;;  %4538 = vmatpush3.bf16.msra.mxu1 %v6055_v37  ;;  %v6083_v41 = vpop.f32.mrb[81].mxu1 }
 0x54c   :  { %4539 = vmatprep.subr.bf16.mxu1 %v6071_v38  ;;  %v4442_v33 = vpop.f32.mrb[82].mxu1 }
 0x54d   :  { %v6091_v62 = vpop.f32.mrb[83].mxu1 }
 0x54e   :  { %4486 = vmatpush3.bf16.msra.mxu0 %v6064_v9 }
 0x54f   :  { %4487 = vmatprep.subr.bf16.mxu0 %v6080_v31  ;;  %4540 = vmatpush3.bf16.msra.mxu1 %v6071_v38 }
 0x550   :  { %4541 = vmatprep.subr.bf16.mxu1 %v6089_v14 }
 0x552   :  { %4488 = vmatpush3.bf16.msra.mxu0 %v6080_v31  ;;  %v6108_v39 = vpop.f32.mrb[84].mxu1 }
 0x553   :  { %4489 = vmatprep.subr.bf16.mxu0 %v6098_v5  ;;  %4542 = vmatpush3.bf16.msra.mxu1 %v6089_v14  ;;  %v1808_v34 = vpop.f32.mrb[85].mxu1 }
 0x554   :  { %4543 = vmatprep.subr.bf16.mxu1 %v6105_v57  ;;  %v2325_v28 = vpack.c.bf16 %v1808_v34, %v4442_v33  ;;  %v6123_v16 = vpop.f32.mrb[86].mxu1  ;;  %v6207_v33 = vld [vmem:[%s6707_s21 + $0x1d0] sm:$0xff]  }
 0x555   :  { %v2443_v7 = vpack.c.bf16 %v6123_v16, %v6108_v39  ;;  %v1811_v26 = vpop.f32.mrb[87].mxu1  ;;  %6799 = vst [vmem:[#allocation13_spill] sm:$0xff] %v6207_v33  ;;  %v6214_v34 = vld [vmem:[%s6707_s21 + $0xf0] sm:$0xff]   ;;  %v6289_v39 = vld [vmem:[%s6707_s21 + $0x198] sm:$0xff]  }
 0x556   :  { %4490 = vmatpush3.bf16.msra.mxu0 %v6098_v5  ;;  %4551 = vmatprep.mubr.bf16.mxu1 %v2325_v28  ;;  %v2326_v59 = vpack.c.bf16 %v1811_v26, %v1811_v26  ;;  %v6221_v28 = vld [vmem:[%s6707_s21 + $0x1d8] sm:$0xff]  }
 0x557   :  { %4515 = vmatprep.subr.bf16.mxu0 %v6114_v25  ;;  %4544 = vmatpush3.bf16.msra.mxu1 %v6105_v57  ;;  %6800 = vst [vmem:[#allocation14_spill] sm:$0xff] %v6221_v28  ;;  %v6228_v26 = vld [vmem:[%s6707_s21 + $0xf8] sm:$0xff]  }
 0x558   :  { %4545 = vmatprep.subr.bf16.mxu1 %v6121_v48 }
 0x559   :  { %4492 = vmatmul.mubr.bf16.vlgmr.msra.gmra.mrb[60].mxu0 %v1972_v54  ;;  %v6235_v54 = vld [vmem:[%s6707_s21 + $0x1e0] sm:$0xff]  }
 0x55a   :  { %4516 = vmatpush3.bf16.msra.mxu0 %v6114_v25  ;;  %4531 = vmatprep.mubr.bf16.mxu0 %v2207_v56  ;;  %v4449_v8 = vpop.f32.mrb[88].mxu1  ;;  %v6200_v56 = vld [vmem:[%s6707_s21 + $0xe8] sm:$0xff]   ;;  %6801 = vst [vmem:[#allocation15_spill] sm:$0xff] %v6235_v54 }
 0x55b   :  { %4517 = vmatprep.subr.bf16.mxu0 %v6132_v35  ;;  %4546 = vmatpush3.bf16.msra.mxu1 %v6121_v48  ;;  %v6149_v6 = vpop.f32.mrb[89].mxu1 }
 0x55c   :  { %4547 = vmatprep.subr.bf16.mxu1 %v6139_v44  ;;  %v6157_v11 = vpop.f32.mrb[90].mxu1  ;;  %v2444_v45 = vpack.c.bf16 %v6149_v6, %v6149_v6  ;;  %v6348_v6 = vld [vmem:[%s6707_s21 + $0x210] sm:$0xff]  }
 0x55d   :  { %v1827_v19 = vpop.f32.mrb[91].mxu1  ;;  %v2562_v16 = vpack.c.bf16 %v6157_v11, %v6157_v11  ;;  %v6315_v11 = vld [vmem:[%s6707_s21 + $0x1b0] sm:$0xff]   ;;  %6811 = vst [vmem:[#allocation24_spill] sm:$0xff] %v6348_v6 }
 0x55e   :  { %4518 = vmatpush3.bf16.msra.mxu0 %v6132_v35  ;;  %v2561_v13 = vpack.c.bf16 %v4449_v8, %v1827_v19  ;;  %v6242_v8 = vld [vmem:[%s6707_s21 + $0x180] sm:$0xff]   ;;  %v6249_v19 = vld [vmem:[%s6707_s21 + $0x1e8] sm:$0xff]   ;;  %6806 = vst [vmem:[#allocation20_spill] sm:$0xff] %v6315_v11 }
 0x55f   :  { %4519 = vmatprep.subr.bf16.mxu0 %v6146_v12  ;;  %4548 = vmatpush3.bf16.msra.mxu1 %v6139_v44  ;;  %6802 = vst [vmem:[#allocation16_spill] sm:$0xff] %v6249_v19 }
 0x560   :  { %4549 = vmatprep.subr.bf16.mxu1 %v6155_v10 }
 0x562   :  { %4520 = vmatpush3.bf16.msra.mxu0 %v6146_v12  ;;  %v6174_v63 = vpop.f32.mrb[92].mxu1 }
 0x563   :  { %4521 = vmatprep.subr.bf16.mxu0 %v6164_v58  ;;  %4550 = vmatpush3.bf16.msra.mxu1 %v6155_v10  ;;  %v6183_v4 = vpop.f32.mrb[93].mxu1  ;;  %v2680_v27 = vpack.c.bf16 %v6174_v63, %v6174_v63 }
 0x564   :  { %4575 = vmatprep.subr.bf16.mxu1 %v6171_v61  ;;  %v4454_v50 = vpop.f32.mrb[94].mxu1 }
 0x565   :  { %v6191_v29 = vpop.f32.mrb[95].mxu1  ;;  %v6265_v50 = vld [vmem:[%s6707_s21 + $0x1f0] sm:$0xff]  }
 0x566   :  { %4522 = vmatpush3.bf16.msra.mxu0 %v6164_v58  ;;  %4552 = vmatmul.mubr.bf16.vlgmr.msra.gmra.mrb[100].mxu1 %v2326_v59  ;;  %v6258_v59 = vld [vmem:[%s6707_s21 + $0x188] sm:$0xff]   ;;  %6803 = vst [vmem:[#allocation17_spill] sm:$0xff] %v6265_v50  ;;  %v6810_v47 = vpack.c.bf16 %v6191_v29, %v6183_v4  ;;  %v6376_v29 = vld [vmem:[%s6707_s21 + $0x230] sm:$0xff]  }
 0x567   :  { %4523 = vmatprep.subr.bf16.mxu0 %v6180_v21  ;;  %4576 = vmatpush3.bf16.msra.mxu1 %v6171_v61  ;;  %v6369_v4 = vld [vmem:[%s6707_s21 + $0x228] sm:$0xff]   ;;  %6815 = vst [vmem:[#allocation28_spill] sm:$0xff] %v6376_v29 }
 0x568   :  { %4577 = vmatprep.subr.bf16.mxu1 %v6189_v53  ;;  %4591 = vmatprep.mubr.bf16.mxu1 %v2561_v13  ;;  %v2208_v13 = vpack.c.bf16 %v6057_v46, %v6057_v46  ;;  %v6275_v46 = vld [vmem:[%s6707_s21 + $0x190] sm:$0xff]   ;;  %6814 = vst [vmem:[#allocation27_spill] sm:$0xff] %v6369_v4 }
 0x56a   :  { %4524 = vmatpush3.bf16.msra.mxu0 %v6180_v21 }
 0x56b   :  { %4525 = vmatprep.subr.bf16.mxu0 %v6200_v56  ;;  %4578 = vmatpush3.bf16.msra.mxu1 %v6189_v53 }
 0x56c   :  { %4579 = vmatprep.subr.bf16.mxu1 %v6207_v33 }
 0x56e   :  { %4526 = vmatpush3.bf16.msra.mxu0 %v6200_v56 }
 0x56f   :  { %4527 = vmatprep.subr.bf16.mxu0 %v6214_v34  ;;  %4580 = vmatpush3.bf16.msra.mxu1 %v6207_v33 }
 0x570   :  { %4581 = vmatprep.subr.bf16.mxu1 %v6221_v28 }
 0x572   :  { %4528 = vmatpush3.bf16.msra.mxu0 %v6214_v34 }
 0x573   :  { %4529 = vmatprep.subr.bf16.mxu0 %v6228_v26  ;;  %4582 = vmatpush3.bf16.msra.mxu1 %v6221_v28 }
 0x574   :  { %4583 = vmatprep.subr.bf16.mxu1 %v6235_v54 }
 0x576   :  { %4530 = vmatpush3.bf16.msra.mxu0 %v6228_v26 }
 0x577   :  { %4555 = vmatprep.subr.bf16.mxu0 %v6242_v8  ;;  %4584 = vmatpush3.bf16.msra.mxu1 %v6235_v54 }
 0x578   :  { %4585 = vmatprep.subr.bf16.mxu1 %v6249_v19 }
 0x579   :  { %4532 = vmatmul.mubr.bf16.vlgmr.msra.gmra.mrb[64].mxu0 %v2208_v13  ;;  %v6282_v13 = vld [vmem:[%s6707_s21 + $0x1f8] sm:$0xff]  }
 0x57a   :  { %4556 = vmatpush3.bf16.msra.mxu0 %v6242_v8  ;;  %4571 = vmatprep.mubr.bf16.mxu0 %v2443_v7  ;;  %6804 = vst [vmem:[#allocation18_spill] sm:$0xff] %v6282_v13  ;;  %v6300_v7 = vld [vmem:[%s6707_s21 + $0x1a0] sm:$0xff]  }
 0x57b   :  { %4557 = vmatprep.subr.bf16.mxu0 %v6258_v59  ;;  %4586 = vmatpush3.bf16.msra.mxu1 %v6249_v19 }
 0x57c   :  { %4587 = vmatprep.subr.bf16.mxu1 %v6265_v50 }
 0x57e   :  { %4558 = vmatpush3.bf16.msra.mxu0 %v6258_v59 }
 0x57f   :  { %4559 = vmatprep.subr.bf16.mxu0 %v6275_v46  ;;  %4588 = vmatpush3.bf16.msra.mxu1 %v6265_v50 }
 0x580   :  { %4589 = vmatprep.subr.bf16.mxu1 %v6282_v13 }
 0x582   :  { %4560 = vmatpush3.bf16.msra.mxu0 %v6275_v46 }
 0x583   :  { %4561 = vmatprep.subr.bf16.mxu0 %v6289_v39  ;;  %4590 = vmatpush3.bf16.msra.mxu1 %v6282_v13 }
 0x586   :  { %4562 = vmatpush3.bf16.msra.mxu0 %v6289_v39  ;;  %4592 = vmatmul.mubr.bf16.vlgmr.msra.gmra.mrb[104].mxu1 %v2562_v16  ;;  %v6322_v16 = vld [vmem:[%s6707_s21 + $0x1b8] sm:$0xff]  }
 0x587   :  { %4563 = vmatprep.subr.bf16.mxu0 %v6300_v7  ;;  %6807 = vst [vmem:[#allocation21_spill] sm:$0xff] %v6322_v16 }
 0x58a   :  { %4564 = vmatpush3.bf16.msra.mxu0 %v6300_v7 }
 0x58b   :  { %4565 = vmatprep.subr.bf16.mxu0 %v6308_v30 }
 0x58e   :  { %4566 = vmatpush3.bf16.msra.mxu0 %v6308_v30 }
 0x58f   :  { %4567 = vmatprep.subr.bf16.mxu0 %v6315_v11 }
 0x592   :  { %4568 = vmatpush3.bf16.msra.mxu0 %v6315_v11 }
 0x593   :  { %4569 = vmatprep.subr.bf16.mxu0 %v6322_v16 }
 0x596   :  { %4570 = vmatpush3.bf16.msra.mxu0 %v6322_v16 }
 0x597   :  { %4595 = vmatprep.subr.bf16.mxu0 %v6329_v23 }
 0x599   :  { %4572 = vmatmul.mubr.bf16.vlgmr.msra.gmra.mrb[68].mxu0 %v2444_v45  ;;  %v6355_v45 = vld [vmem:[%s6707_s21 + $0x218] sm:$0xff]  }
 0x59a   :  { %4596 = vmatpush3.bf16.msra.mxu0 %v6329_v23  ;;  %4611 = vmatprep.mubr.bf16.mxu0 %v6810_v47  ;;  %6812 = vst [vmem:[#allocation25_spill] sm:$0xff] %v6355_v45  ;;  %v6362_v47 = vld [vmem:[%s6707_s21 + $0x220] sm:$0xff]  }
 0x59b   :  { %4597 = vmatprep.subr.bf16.mxu0 %v6338_v20  ;;  %6813 = vst [vmem:[#allocation26_spill] sm:$0xff] %v6362_v47 }
 0x59e   :  { %4598 = vmatpush3.bf16.msra.mxu0 %v6338_v20 }
 0x59f   :  { %4599 = vmatprep.subr.bf16.mxu0 %v6348_v6 }
 0x5a2   :  { %4600 = vmatpush3.bf16.msra.mxu0 %v6348_v6 }
 0x5a3   :  { %4601 = vmatprep.subr.bf16.mxu0 %v6355_v45 }
 0x5a6   :  { %4602 = vmatpush3.bf16.msra.mxu0 %v6355_v45 }
 0x5a7   :  { %4603 = vmatprep.subr.bf16.mxu0 %v6362_v47 }
 0x5aa   :  { %4604 = vmatpush3.bf16.msra.mxu0 %v6362_v47 }
 0x5ab   :  { %4605 = vmatprep.subr.bf16.mxu0 %v6369_v4 }
 0x5ae   :  { %4606 = vmatpush3.bf16.msra.mxu0 %v6369_v4 }
 0x5af   :  { %4607 = vmatprep.subr.bf16.mxu0 %v6376_v29 }
 0x5b2   :  { %4608 = vmatpush3.bf16.msra.mxu0 %v6376_v29 }
 0x5b3   :  { %4609 = vmatprep.subr.bf16.mxu0 %v6383_v0 }
 0x5b6   :  { %4610 = vmatpush3.bf16.msra.mxu0 %v6383_v0  ;;  %v5005_v0 = vld [vmem:[%s6708_s16] sm:$0xff]  }
 0x5b9   :  { %4612 = vmatmul.mubr.bf16.vlgmr.msra.gmra.mrb[72].mxu0 %v2680_v27 }
 0x5ba   :  { %4619 = vmatprep.mubr.msk.bf16.mxu0 %vm1514_vm4, %v5005_v0 }
 0x60c   :  { %v4473_v55 = vpop.f32.mrb[56].mxu0 }
 0x60d   :  { %v1970_v13 = vadd.f32 %v4473_v55, %v6074_v3  ;;  %v1954_v4 = vpop.f32.mrb[57].mxu0 }
 0x60e   :  { %v1968_v50 = vadd.f32 %v1954_v4, %v6083_v41  ;;  %v4474_v47 = vpop.f32.mrb[58].mxu0 }
 0x60f   :  { %v1957_v19 = vpop.f32.mrb[59].mxu0 }
 0x610   :  { %v1969_v45 = vadd.f32 %v1957_v19, %v6091_v62  ;;  %v5011_v62 = vld [vmem:[%s6708_s16 + $0x30] sm:$0xff]  }
 0x611   :  { %4631 = vmatprep.mubr.msk.bf16.mxu1 %vm1514_vm4, %v5011_v62 }
 0x619   :  { %v4513_v54 = vpop.f32.mrb[96].mxu1 }
 0x61a   :  { %v2190_v29 = vpop.f32.mrb[97].mxu1 }
 0x61b   :  { %v4514_v6 = vpop.f32.mrb[98].mxu1 }
 0x61c   :  { %v2193_v28 = vpop.f32.mrb[99].mxu1 }
 0x62c   :  { %v4493_v27 = vpop.f32.mrb[60].mxu0 }
 0x62d   :  { %v2088_v63 = vadd.f32 %v4493_v27, %v1970_v13  ;;  %v2072_v55 = vpop.f32.mrb[61].mxu0 }
 0x62e   :  { %v2086_v3 = vadd.f32 %v2072_v55, %v1968_v50  ;;  %v4494_v20 = vpop.f32.mrb[62].mxu0 }
 0x62f   :  { %v2206_v41 = vadd.f32 %v4513_v54, %v2088_v63  ;;  %v2075_v47 = vpop.f32.mrb[63].mxu0 }
 0x630   :  { %v2087_v4 = vadd.f32 %v2075_v47, %v1969_v45  ;;  %v2204_v33 = vadd.f32 %v2190_v29, %v2086_v3 }
 0x632   :  { %v2205_v19 = vadd.f32 %v2193_v28, %v2087_v4 }
 0x639   :  { %v4553_v6 = vpop.f32.mrb[100].mxu1 }
 0x63a   :  { %v2426_v23 = vpop.f32.mrb[101].mxu1 }
 0x63b   :  { %v4554_v53 = vpop.f32.mrb[102].mxu1 }
 0x63c   :  { %v2429_v0 = vpop.f32.mrb[103].mxu1 }
 0x64c   :  { %v4533_v16 = vpop.f32.mrb[64].mxu0 }
 0x64d   :  { %v2324_v13 = vadd.f32 %v4533_v16, %v2206_v41  ;;  %v2308_v27 = vpop.f32.mrb[65].mxu0 }
 0x64e   :  { %v2322_v50 = vadd.f32 %v2308_v27, %v2204_v33  ;;  %v4534_v20 = vpop.f32.mrb[66].mxu0  ;;  %v2803_v27 = vpop.permute.xlu1 %2802 }
 0x64f   :  { %v2442_v54 = vadd.f32 %v4553_v6, %v2324_v13  ;;  %v2311_v63 = vpop.f32.mrb[67].mxu0 }
 0x650   :  { %v2323_v45 = vadd.f32 %v2311_v63, %v2205_v19  ;;  %v2440_v29 = vadd.f32 %v2426_v23, %v2322_v50 }
 0x652   :  { %v2441_v55 = vadd.f32 %v2429_v0, %v2323_v45  ;;  %v2813_v50 = vpop.permute.xlu1 %2812 }
 0x659   :  { %v4593_v3 = vpop.f32.mrb[104].mxu1 }
 0x65a   :  { %v2662_v47 = vpop.f32.mrb[105].mxu1 }
 0x65b   :  { %v4594_v61 = vpop.f32.mrb[106].mxu1 }
 0x65c   :  { %v2665_v28 = vpop.f32.mrb[107].mxu1 }
 0x66c   :  { %v4573_v4 = vpop.f32.mrb[68].mxu0 }
 0x66d   :  { %v2560_v62 = vadd.f32 %v4573_v4, %v2442_v54  ;;  %v2544_v11 = vpop.f32.mrb[69].mxu0  ;;  %v2808_v54 = vpop.permute.xlu0 %2807 }
 0x66e   :  { %v2558_v10 = vadd.f32 %v2544_v11, %v2440_v29  ;;  %v4574_v53 = vpop.f32.mrb[70].mxu0 }
 0x66f   :  { %v2678_v30 = vadd.f32 %v4593_v3, %v2560_v62  ;;  %v2547_v44 = vpop.f32.mrb[71].mxu0  ;;  %v5029_v53 = vld [vmem:[%s6707_s21] sm:$0xff]  }
 0x670   :  { %v2676_v16 = vadd.f32 %v2662_v47, %v2558_v10  ;;  %v2559_v41 = vadd.f32 %v2547_v44, %v2441_v55  ;;  %v5012_v55 = vld [vmem:[%s6708_s16 + $0x38] sm:$0xff]   ;;  %v5007_v47 = vld [vmem:[%s6708_s16 + $0x10] sm:$0xff]  }
 0x672   :  { %v2677_v33 = vadd.f32 %v2665_v28, %v2559_v41  ;;  %v5013_v28 = vld [vmem:[%s6708_s16 + $0x40] sm:$0xff]   ;;  %v5008_v41 = vld [vmem:[%s6708_s16 + $0x18] sm:$0xff]  }
 0x68c   :  { %v4613_v6 = vpop.f32.mrb[72].mxu0 }
 0x68d   :  { %v2796_v13 = vadd.f32 %v4613_v6, %v2678_v30  ;;  %v2780_v19 = vpop.f32.mrb[73].mxu0  ;;  %v5006_v30 = vld [vmem:[%s6708_s16 + $0x8] sm:$0xff]   ;;  %v5031_v6 = vld [vmem:[%s6707_s21 + $0x10] sm:$0xff]  }
 0x68e   :  { %v2794_v23 = vadd.f32 %v2780_v19, %v2676_v16  ;;  %v4614_v0 = vpop.f32.mrb[74].mxu0  ;;  %v5030_v16 = vld [vmem:[%s6707_s21 + $0x8] sm:$0xff]   ;;  %v5016_v19 = vld [vmem:[%s6708_s16 + $0x58] sm:$0xff]  }
 0x68f   :  { %v2783_v20 = vpop.f32.mrb[75].mxu0  ;;  %v2817_v61 = vadd.f32 %v2813_v50, %v2796_v13  ;;  %v5010_v13 = vld [vmem:[%s6708_s16 + $0x28] sm:$0xff]  }
 0x690   :  { %v2815_v63 = vadd.f32 %v2803_v27, %v2794_v23  ;;  %v2795_v45 = vadd.f32 %v2783_v20, %v2677_v33  ;;  %v5014_v33 = vld [vmem:[%s6708_s16 + $0x48] sm:$0xff]   ;;  %v5009_v27 = vld [vmem:[%s6708_s16 + $0x20] sm:$0xff]  }
 0x691   :  { %v2820_v11 = vmax.f32 %v2817_v61, 0.0  ;;  %v5017_v23 = vld [vmem:[%s6708_s16 + $0x60] sm:$0xff]   ;;  %v5018_v0 = vld [vmem:[%s6708_s16 + $0x68] ss:$0 sps:$4 sm:$0xff]  }
 0x692   :  { %v2816_v4 = vadd.f32 %v2808_v54, %v2795_v45  ;;  %v2818_v29 = vmax.f32 %v2815_v63, 0.0 }
 0x693   :  { %v2849_v10 = vpack.c.bf16 %v2820_v11, %v2820_v11 }
 0x694   :  { %v2819_v3 = vmax.f32 %v2816_v4, 0.0 }
 0x695   :  { %v2961_v44 = vsel %vm1521_vm5, %v2849_v10, 0 }
 0x696   :  { %v2848_v62 = vpack.c.bf16 %v2819_v3, %v2818_v29 }
 0x698   :  { %4615 = vmatprep.subr.bf16.mxu0 %v2848_v62  ;;  %4839 = vmatprep.subr.bf16.mxu1 %v2848_v62 }
 0x699   :  { %4616 = vmatpush3.bf16.msra.mxu0 %v2848_v62  ;;  %4841 = vmatpush3.bf16.msra.mxu1 %v2848_v62 }
 0x69a   :  { %4846 = vmatprep.subr.msk.bf16.mxu0 %vm1521_vm5, %v2849_v10  ;;  %4847 = vmatprep.subr.msk.bf16.mxu1 %vm1521_vm5, %v2849_v10 }
 0x69d   :  { %4618 = vmatpush3.bf16.msra.mxu0 %v2961_v44  ;;  %4842 = vmatpush3.bf16.msra.mxu1 %v2961_v44 }
 0x69e   :  { %4647 = vmatprep.subr.bf16.mxu0 %v5029_v53  ;;  %4667 = vmatprep.subr.bf16.mxu1 %v5961_v24 }
 0x6a0   :  { %4620 = vmatmul.mubr.msk.bf16.vlgmr.msra.gmra.mrb[76].mxu0 %vm1514_vm4, %v5006_v30  ;;  %4632 = vmatmul.mubr.msk.bf16.vlgmr.msra.gmra.mrb[108].mxu1 %vm1514_vm4, %v5012_v55 }
 0x6a1   :  { %4623 = vmatprep.mubr.msk.bf16.mxu0 %vm1514_vm4, %v5007_v47  ;;  %4635 = vmatprep.mubr.msk.bf16.mxu1 %vm1514_vm4, %v5013_v28 }
 0x6a2   :  { %4648 = vmatpush3.bf16.msra.mxu0 %v5029_v53  ;;  %4668 = vmatpush3.bf16.msra.mxu1 %v5961_v24  ;;  %v5015_v24 = vld [vmem:[%s6708_s16 + $0x50] sm:$0xff]  }
 0x6a3   :  { %4649 = vmatprep.subr.bf16.mxu0 %v5030_v16  ;;  %4669 = vmatprep.subr.bf16.mxu1 %v6029_v22 }
 0x6a6   :  { %4650 = vmatpush3.bf16.msra.mxu0 %v5030_v16  ;;  %4670 = vmatpush3.bf16.msra.mxu1 %v6029_v22  ;;  %v5032_v22 = vld [vmem:[%s6707_s21 + $0x18] sm:$0xff]  }
 0x6a7   :  { %4651 = vmatprep.subr.bf16.mxu0 %v5031_v6  ;;  %4671 = vmatprep.subr.bf16.mxu1 %v6036_v17 }
 0x6a8   :  { %4624 = vmatmul.mubr.msk.bf16.gmra.mrb[80].mxu0 %vm1514_vm4, %v5008_v41  ;;  %4636 = vmatmul.mubr.msk.bf16.gmra.mrb[112].mxu1 %vm1514_vm4, %v5014_v33 }
 0x6a9   :  { %4627 = vmatprep.mubr.msk.bf16.mxu0 %vm1514_vm4, %v5009_v27  ;;  %4639 = vmatprep.mubr.msk.bf16.mxu1 %vm1514_vm4, %v5015_v24 }
 0x6aa   :  { %4652 = vmatpush3.bf16.msra.mxu0 %v5031_v6  ;;  %4672 = vmatpush3.bf16.msra.mxu1 %v6036_v17  ;;  %v5033_v17 = vld [vmem:[%s6707_s21 + $0x20] sm:$0xff]  }
 0x6ab   :  { %4653 = vmatprep.subr.bf16.mxu0 %v5032_v22  ;;  %4673 = vmatprep.subr.bf16.mxu1 %v6043_v15 }
 0x6ae   :  { %4654 = vmatpush3.bf16.msra.mxu0 %v5032_v22  ;;  %4674 = vmatpush3.bf16.msra.mxu1 %v6043_v15  ;;  %v5034_v15 = vld [vmem:[%s6707_s21 + $0x28] sm:$0xff]  }
 0x6af   :  { %4655 = vmatprep.subr.bf16.mxu0 %v5033_v17  ;;  %4675 = vmatprep.subr.bf16.mxu1 %v6050_v1 }
 0x6b0   :  { %4628 = vmatmul.mubr.msk.bf16.gmra.mrb[84].mxu0 %vm1514_vm4, %v5010_v13  ;;  %4640 = vmatmul.mubr.msk.bf16.gmra.mrb[116].mxu1 %vm1514_vm4, %v5016_v19  ;;  %v6833_v13 = vld [vmem:[#allocation17_spill] sm:$0xff]  ;;  %v6834_v19 = vld [vmem:[#allocation27_spill] sm:$0xff] }
 0x6b1   :  { %4643 = vmatprep.mubr.msk.bf16.mxu1 %vm1514_vm4, %v5017_v23  ;;  %v6835_v23 = vld [vmem:[#allocation18_spill] sm:$0xff] }
 0x6b2   :  { %4656 = vmatpush3.bf16.msra.mxu0 %v5033_v17  ;;  %4676 = vmatpush3.bf16.msra.mxu1 %v6050_v1  ;;  %v6836_v17 = vld [vmem:[#allocation28_spill] sm:$0xff] }
 0x6b3   :  { %4657 = vmatprep.subr.bf16.mxu0 %v5034_v15  ;;  %4677 = vmatprep.subr.bf16.mxu1 %v6064_v9 }
 0x6b6   :  { %4658 = vmatpush3.bf16.msra.mxu0 %v5034_v15  ;;  %4678 = vmatpush3.bf16.msra.mxu1 %v6064_v9 }
 0x6b7   :  { %4659 = vmatprep.subr.bf16.mxu0 %v5941_v2  ;;  %4679 = vmatprep.subr.bf16.mxu1 %v6080_v31 }
 0x6b8   :  { %4644 = vmatmul.mubr.msk.bf16.gmra.mrb[120].mxu1 %vm1514_vm4, %v5018_v0  ;;  %v6837_v0 = vld [vmem:[#allocation29_spill] sm:$0xff] }
 0x6ba   :  { %4660 = vmatpush3.bf16.msra.mxu0 %v5941_v2  ;;  %4680 = vmatpush3.bf16.msra.mxu1 %v6080_v31 }
 0x6bb   :  { %4661 = vmatprep.subr.bf16.mxu0 %v5948_v42  ;;  %4681 = vmatprep.subr.bf16.mxu1 %v6098_v5 }
 0x6be   :  { %4662 = vmatpush3.bf16.msra.mxu0 %v5948_v42  ;;  %4682 = vmatpush3.bf16.msra.mxu1 %v6098_v5 }
 0x6bf   :  { %4687 = vmatprep.subr.bf16.mxu0 %v5953_v51  ;;  %4707 = vmatprep.subr.bf16.mxu1 %v6114_v25 }
 0x773   :  { %v4621_v1 = vpop.f32.mrb[76].mxu0  ;;  %v6492_v9 = vpop.f32.mrb[108].mxu1 }
 0x774   :  { %v2997_v50 = vpop.f32.mrb[77].mxu0  ;;  %v6494_v20 = vpop.f32.mrb[109].mxu1  ;;  %v3108_v42 = vpack.c.bf16 %v4621_v1, %v4621_v1 }
 0x775   :  { %v4622_v2 = vpop.f32.mrb[78].mxu0  ;;  %v6496_v31 = vpop.f32.mrb[110].mxu1 }
 0x776   :  { %v3000_v61 = vpop.f32.mrb[79].mxu0  ;;  %v6498_v63 = vpop.f32.mrb[111].mxu1 }
 0x777   :  { %v3107_v45 = vpack.c.bf16 %v3000_v61, %v2997_v50  ;;  %v5019_v50 = vld [vmem:[%s6709_s19] sm:$0xff]  }
 0x779   :  { %4663 = vmatprep.mubr.bf16.mxu0 %v3107_v45 }
 0x77a   :  { %4664 = vmatmul.mubr.bf16.vlgmr.msra.gmra.mrb[88].mxu0 %v3108_v42 }
 0x77b   :  { %4688 = vmatpush3.bf16.msra.mxu0 %v5953_v51  ;;  %v4625_v5 = vpop.f32.mrb[80].mxu0  ;;  %v6501_v54 = vpop.f32.mrb[112].mxu1 }
 0x77c   :  { %v3013_v4 = vpop.f32.mrb[81].mxu0  ;;  %4689 = vmatprep.subr.bf16.mxu0 %v5967_v40  ;;  %v3061_v11 = vpop.f32.mrb[113].mxu1 }
 0x77d   :  { %v3160_v29 = vpack.c.bf16 %v3013_v4, %v4622_v2  ;;  %v4626_v3 = vpop.f32.mrb[82].mxu0  ;;  %v3319_v62 = vpack.c.bf16 %v3061_v11, %v6496_v31  ;;  %v6505_v10 = vpop.f32.mrb[114].mxu1  ;;  %v5021_v2 = vld [vmem:[%s6710_s22] sm:$0xff]   ;;  %v5022_v31 = vld [vmem:[%s6710_s22 + $0x8] sm:$0xff]   ;;  %v5023_v4 = vld [vmem:[%s6710_s22 + $0x10] sm:$0xff]  }
 0x77e   :  { %v3213_v44 = vpack.c.bf16 %v4626_v3, %v4625_v5  ;;  %v3016_v30 = vpop.f32.mrb[83].mxu0  ;;  %v3372_v55 = vpack.c.bf16 %v6505_v10, %v6501_v54  ;;  %v6509_v47 = vpop.f32.mrb[115].mxu1  ;;  %v5024_v3 = vld [vmem:[%s6710_s22 + $0x18] sm:$0xff]  }
 0x77f   :  { %v3161_v51 = vpack.c.bf16 %v3016_v30, %v3016_v30  ;;  %4690 = vmatpush3.bf16.msra.mxu0 %v5967_v40  ;;  %4683 = vmatprep.mubr.bf16.mxu1 %v3160_v29 }
 0x780   :  { %4691 = vmatprep.subr.bf16.mxu0 %v5975_v32  ;;  %4703 = vmatprep.mubr.bf16.mxu0 %v3213_v44 }
 0x781   :  { %4684 = vmatmul.mubr.bf16.vlgmr.msra.gmra.mrb[124].mxu1 %v3161_v51 }
 0x782   :  { %4708 = vmatpush3.bf16.msra.mxu1 %v6114_v25 }
 0x783   :  { %4692 = vmatpush3.bf16.msra.mxu0 %v5975_v32  ;;  %4709 = vmatprep.subr.bf16.mxu1 %v6132_v35  ;;  %v4629_v28 = vpop.f32.mrb[84].mxu0  ;;  %v6516_v53 = vpop.f32.mrb[116].mxu1 }
 0x784   :  { %4693 = vmatprep.subr.bf16.mxu0 %v5982_v60  ;;  %v3029_v16 = vpop.f32.mrb[85].mxu0  ;;  %v6519_v41 = vpop.f32.mrb[117].mxu1 }
 0x785   :  { %v4630_v40 = vpop.f32.mrb[86].mxu0  ;;  %v6521_v33 = vpop.f32.mrb[118].mxu1 }
 0x786   :  { %4710 = vmatpush3.bf16.msra.mxu1 %v6132_v35  ;;  %v3032_v27 = vpop.f32.mrb[87].mxu0  ;;  %v6524_v24 = vpop.f32.mrb[119].mxu1  ;;  %v3426_v15 = vpack.c.bf16 %v6521_v33, %v6521_v33 }
 0x787   :  { %4694 = vmatpush3.bf16.msra.mxu0 %v5982_v60  ;;  %4711 = vmatprep.subr.bf16.mxu1 %v6146_v12  ;;  %v3266_v32 = vpack.c.bf16 %v4629_v28, %v3032_v27  ;;  %v3425_v25 = vpack.c.bf16 %v6516_v53, %v6524_v24 }
 0x788   :  { %4695 = vmatprep.subr.bf16.mxu0 %v5989_v49 }
 0x789   :  { %4723 = vmatprep.mubr.bf16.mxu1 %v3266_v32 }
 0x78a   :  { %4712 = vmatpush3.bf16.msra.mxu1 %v6146_v12  ;;  %v3214_v12 = vpack.c.bf16 %v3029_v16, %v3029_v16 }
 0x78b   :  { %4696 = vmatpush3.bf16.msra.mxu0 %v5989_v49  ;;  %4713 = vmatprep.subr.bf16.mxu1 %v6164_v58  ;;  %v6534_v35 = vpop.f32.mrb[120].mxu1 }
 0x78c   :  { %4697 = vmatprep.subr.bf16.mxu0 %v5996_v52  ;;  %v6537_v60 = vpop.f32.mrb[121].mxu1  ;;  %v3479_v1 = vpack.c.bf16 %v6534_v35, %v6534_v35 }
 0x78d   :  { %v4646_v6 = vpop.f32.mrb[122].mxu1 }
 0x78e   :  { %4714 = vmatpush3.bf16.msra.mxu1 %v6164_v58  ;;  %v6540_v22 = vpop.f32.mrb[123].mxu1  ;;  %v3373_v58 = vpack.c.bf16 %v6519_v41, %v6519_v41 }
 0x78f   :  { %4698 = vmatpush3.bf16.msra.mxu0 %v5996_v52  ;;  %4715 = vmatprep.subr.bf16.mxu1 %v6180_v21  ;;  %v3478_v49 = vpack.c.bf16 %v6540_v22, %v6537_v60  ;;  %v3267_v52 = vpack.c.bf16 %v4630_v40, %v4630_v40 }
 0x790   :  { %4699 = vmatprep.subr.bf16.mxu0 %v6003_v18 }
 0x792   :  { %4716 = vmatpush3.bf16.msra.mxu1 %v6180_v21  ;;  %v6824_v21 = vld [vmem:[#allocation22_spill] sm:$0xff] }
 0x793   :  { %4700 = vmatpush3.bf16.msra.mxu0 %v6003_v18  ;;  %4717 = vmatprep.subr.bf16.mxu1 %v6200_v56  ;;  %v6817_v18 = vld [vmem:[#allocation9_spill] sm:$0xff] }
 0x794   :  { %4701 = vmatprep.subr.bf16.mxu0 %v6010_v36 }
 0x796   :  { %4718 = vmatpush3.bf16.msra.mxu1 %v6200_v56  ;;  %v6825_v56 = vld [vmem:[#allocation13_spill] sm:$0xff] }
 0x797   :  { %4702 = vmatpush3.bf16.msra.mxu0 %v6010_v36  ;;  %4719 = vmatprep.subr.bf16.mxu1 %v6214_v34  ;;  %v6818_v36 = vld [vmem:[#allocation19_spill] sm:$0xff] }
 0x798   :  { %4727 = vmatprep.subr.bf16.mxu0 %v6017_v43 }
 0x79a   :  { %4704 = vmatmul.mubr.bf16.vlgmr.msra.gmra.mrb[92].mxu0 %v3214_v12  ;;  %4720 = vmatpush3.bf16.msra.mxu1 %v6214_v34  ;;  %v6826_v34 = vld [vmem:[#allocation23_spill] sm:$0xff] }
 0x79b   :  { %4728 = vmatpush3.bf16.msra.mxu0 %v6017_v43  ;;  %4721 = vmatprep.subr.bf16.mxu1 %v6228_v26  ;;  %v6819_v43 = vld [vmem:[#allocation10_spill] sm:$0xff] }
 0x79c   :  { %4729 = vmatprep.subr.bf16.mxu0 %v6055_v37  ;;  %4743 = vmatprep.mubr.bf16.mxu0 %v3319_v62 }
 0x79e   :  { %4722 = vmatpush3.bf16.msra.mxu1 %v6228_v26  ;;  %v6827_v26 = vld [vmem:[#allocation14_spill] sm:$0xff] }
 0x79f   :  { %4730 = vmatpush3.bf16.msra.mxu0 %v6055_v37  ;;  %4747 = vmatprep.subr.bf16.mxu1 %v6242_v8  ;;  %v3320_v37 = vpack.c.bf16 %v6509_v47, %v6509_v47 }
 0x7a0   :  { %4731 = vmatprep.subr.bf16.mxu0 %v6071_v38 }
 0x7a1   :  { %4724 = vmatmul.mubr.bf16.vlgmr.msra.gmra.mrb[128].mxu1 %v3267_v52 }
 0x7a2   :  { %4748 = vmatpush3.bf16.msra.mxu1 %v6242_v8  ;;  %4763 = vmatprep.mubr.bf16.mxu1 %v3372_v55  ;;  %v6828_v8 = vld [vmem:[#allocation24_spill] sm:$0xff]  ;;  %v5025_v55 = vld [vmem:[%s6710_s22 + $0x20] sm:$0xff]  }
 0x7a3   :  { %4732 = vmatpush3.bf16.msra.mxu0 %v6071_v38  ;;  %4749 = vmatprep.subr.bf16.mxu1 %v6258_v59  ;;  %v6820_v38 = vld [vmem:[#allocation20_spill] sm:$0xff] }
 0x7a4   :  { %4733 = vmatprep.subr.bf16.mxu0 %v6089_v14 }
 0x7a6   :  { %4750 = vmatpush3.bf16.msra.mxu1 %v6258_v59  ;;  %v6829_v59 = vld [vmem:[#allocation15_spill] sm:$0xff] }
 0x7a7   :  { %4734 = vmatpush3.bf16.msra.mxu0 %v6089_v14  ;;  %4751 = vmatprep.subr.bf16.mxu1 %v6275_v46  ;;  %v6821_v14 = vld [vmem:[#allocation11_spill] sm:$0xff] }
 0x7a8   :  { %4735 = vmatprep.subr.bf16.mxu0 %v6105_v57 }
 0x7aa   :  { %4752 = vmatpush3.bf16.msra.mxu1 %v6275_v46  ;;  %v6830_v46 = vld [vmem:[#allocation25_spill] sm:$0xff] }
 0x7ab   :  { %4736 = vmatpush3.bf16.msra.mxu0 %v6105_v57  ;;  %4753 = vmatprep.subr.bf16.mxu1 %v6289_v39  ;;  %v6822_v57 = vld [vmem:[#allocation21_spill] sm:$0xff] }
 0x7ac   :  { %4737 = vmatprep.subr.bf16.mxu0 %v6121_v48 }
 0x7ae   :  { %4754 = vmatpush3.bf16.msra.mxu1 %v6289_v39  ;;  %v6831_v39 = vld [vmem:[#allocation16_spill] sm:$0xff] }
 0x7af   :  { %4738 = vmatpush3.bf16.msra.mxu0 %v6121_v48  ;;  %4755 = vmatprep.subr.bf16.mxu1 %v6300_v7  ;;  %v6823_v48 = vld [vmem:[#allocation12_spill] sm:$0xff] }
 0x7b0   :  { %4739 = vmatprep.subr.bf16.mxu0 %v6817_v18 }
 0x7b2   :  { %4756 = vmatpush3.bf16.msra.mxu1 %v6300_v7  ;;  %v6832_v7 = vld [vmem:[#allocation26_spill] sm:$0xff] }
 0x7b3   :  { %4740 = vmatpush3.bf16.msra.mxu0 %v6817_v18  ;;  %4757 = vmatprep.subr.bf16.mxu1 %v6818_v36 }
 0x7b4   :  { %4741 = vmatprep.subr.bf16.mxu0 %v6819_v43 }
 0x7b6   :  { %4758 = vmatpush3.bf16.msra.mxu1 %v6818_v36 }
 0x7b7   :  { %4742 = vmatpush3.bf16.msra.mxu0 %v6819_v43  ;;  %4759 = vmatprep.subr.bf16.mxu1 %v6820_v38 }
 0x7b8   :  { %4767 = vmatprep.subr.bf16.mxu0 %v6821_v14 }
 0x7ba   :  { %4744 = vmatmul.mubr.bf16.vlgmr.msra.gmra.mrb[96].mxu0 %v3320_v37  ;;  %4760 = vmatpush3.bf16.msra.mxu1 %v6820_v38 }
 0x7bb   :  { %4768 = vmatpush3.bf16.msra.mxu0 %v6821_v14  ;;  %4761 = vmatprep.subr.bf16.mxu1 %v6822_v57 }
 0x7bc   :  { %4769 = vmatprep.subr.bf16.mxu0 %v6823_v48  ;;  %4783 = vmatprep.mubr.bf16.mxu0 %v3425_v25 }
 0x7be   :  { %4762 = vmatpush3.bf16.msra.mxu1 %v6822_v57 }
 0x7bf   :  { %4770 = vmatpush3.bf16.msra.mxu0 %v6823_v48  ;;  %4787 = vmatprep.subr.bf16.mxu1 %v6824_v21 }
 0x7c0   :  { %4771 = vmatprep.subr.bf16.mxu0 %v6825_v56 }
 0x7c1   :  { %4764 = vmatmul.mubr.bf16.vlgmr.msra.gmra.mrb[132].mxu1 %v3373_v58 }
 0x7c2   :  { %4788 = vmatpush3.bf16.msra.mxu1 %v6824_v21  ;;  %4803 = vmatprep.mubr.bf16.mxu1 %v3478_v49 }
 0x7c3   :  { %4772 = vmatpush3.bf16.msra.mxu0 %v6825_v56  ;;  %4789 = vmatprep.subr.bf16.mxu1 %v6826_v34  ;;  %v1494_v56 = vpop.permute.xlu0 %1493 }
 0x7c4   :  { %4773 = vmatprep.subr.bf16.mxu0 %v6827_v26 }
 0x7c6   :  { %4790 = vmatpush3.bf16.msra.mxu1 %v6826_v34 }
 0x7c7   :  { %4774 = vmatpush3.bf16.msra.mxu0 %v6827_v26  ;;  %4791 = vmatprep.subr.bf16.mxu1 %v6828_v8  ;;  %v3537_v34 = vpop.permute.xlu0 %3536  ;;  %v1499_v26 = vpop.permute.xlu1 %1498 }
 0x7c8   :  { %4775 = vmatprep.subr.bf16.mxu0 %v6829_v59 }
 0x7ca   :  { %4792 = vmatpush3.bf16.msra.mxu1 %v6828_v8 }
 0x7cb   :  { %4776 = vmatpush3.bf16.msra.mxu0 %v6829_v59  ;;  %4793 = vmatprep.subr.bf16.mxu1 %v6830_v46  ;;  %v1504_v8 = vpop.permute.xlu0 %1503 }
 0x7cc   :  { %4777 = vmatprep.subr.bf16.mxu0 %v6831_v39 }
 0x7ce   :  { %4794 = vmatpush3.bf16.msra.mxu1 %v6830_v46  ;;  %v3542_v46 = vpop.permute.xlu1 %3541 }
 0x7cf   :  { %4778 = vmatpush3.bf16.msra.mxu0 %v6831_v39  ;;  %4795 = vmatprep.subr.bf16.mxu1 %v6832_v7 }
 0x7d0   :  { %4779 = vmatprep.subr.bf16.mxu0 %v6833_v13 }
 0x7d2   :  { %4796 = vmatpush3.bf16.msra.mxu1 %v6832_v7 }
 0x7d3   :  { %4780 = vmatpush3.bf16.msra.mxu0 %v6833_v13  ;;  %4797 = vmatprep.subr.bf16.mxu1 %v6834_v19 }
 0x7d4   :  { %4781 = vmatprep.subr.bf16.mxu0 %v6835_v23 }
 0x7d6   :  { %4798 = vmatpush3.bf16.msra.mxu1 %v6834_v19 }
 0x7d7   :  { %4782 = vmatpush3.bf16.msra.mxu0 %v6835_v23  ;;  %4799 = vmatprep.subr.bf16.mxu1 %v6836_v17 }
 0x7d8   :  { %4815 = vmatprep.subr.bf16.mxu0 %v5021_v2 }
 0x7da   :  { %4784 = vmatmul.mubr.bf16.vlgmr.msra.gmra.mrb[100].mxu0 %v3426_v15  ;;  %4800 = vmatpush3.bf16.msra.mxu1 %v6836_v17  ;;  %v6838_v17 = vld [vmem:[#allocation6_spill] sm:$0xff] }
 0x7db   :  { %4801 = vmatprep.subr.bf16.mxu1 %v6837_v0  ;;  %4816 = vmatpush3.bf16.msra.mxu0 %v5021_v2  ;;  %v1568_v15 = vadd.f32 %v6838_v17, %v1504_v8  ;;  %v3561_v2 = vpop.permute.xlu0 %3560 }
 0x7dc   :  { %4817 = vmatprep.subr.bf16.mxu0 %v5022_v31 }
 0x7de   :  { %4802 = vmatpush3.bf16.msra.mxu1 %v6837_v0 }
 0x7df   :  { %4818 = vmatpush3.bf16.msra.mxu0 %v5022_v31  ;;  %v3547_v31 = vpop.permute.xlu1 %3546 }
 0x7e0   :  { %4819 = vmatprep.subr.bf16.mxu0 %v5023_v4 }
 0x7e1   :  { %4804 = vmatmul.mubr.bf16.vlgmr.msra.gmra.mrb[136].mxu1 %v3479_v1  ;;  %v6839_v1 = vld [vmem:[#allocation7_spill] sm:$0xff] }
 0x7e2   :  { %4811 = vmatprep.mubr.msk.bf16.mxu1 %vm1514_vm4, %v5019_v50  ;;  %v1560_v50 = vadd.f32 %v6839_v1, %v1494_v56 }
 0x7e3   :  { %4820 = vmatpush3.bf16.msra.mxu0 %v5023_v4 }
 0x7e4   :  { %4821 = vmatprep.subr.bf16.mxu0 %v5024_v3 }
 0x7e7   :  { %4822 = vmatpush3.bf16.msra.mxu0 %v5024_v3 }
 0x7e8   :  { %4823 = vmatprep.subr.bf16.mxu0 %v5025_v55 }
 0x7eb   :  { %4824 = vmatpush3.bf16.msra.mxu0 %v5025_v55 }
 0x84d   :  { %v4665_v61 = vpop.f32.mrb[88].mxu0 }
 0x84e   :  { %v3159_v45 = vadd.f32 %v4665_v61, %v6492_v9  ;;  %v3143_v42 = vpop.f32.mrb[89].mxu0  ;;  %v6840_v61 = vld [vmem:[#allocation8_spill] sm:$0xff] }
 0x84f   :  { %v3157_v5 = vadd.f32 %v3143_v42, %v6494_v20  ;;  %v4666_v54 = vpop.f32.mrb[90].mxu0 }
 0x850   :  { %v3146_v11 = vpop.f32.mrb[91].mxu0 }
 0x851   :  { %v3158_v29 = vadd.f32 %v3146_v11, %v6498_v63  ;;  %v5026_v63 = vld [vmem:[%s6710_s22 + $0x28] sm:$0xff]   ;;  %v3549_v11 = vmul.f32 %v3537_v34, %v1560_v50 }
 0x852   :  { %4825 = vmatprep.subr.bf16.mxu0 %v5026_v63 }
 0x853   :  { %4826 = vmatpush3.bf16.msra.mxu0 %v5026_v63 }
 0x854   :  { %v4685_v9 = vpop.f32.mrb[124].mxu1 }
 0x855   :  { %v3212_v62 = vadd.f32 %v4685_v9, %v3159_v45  ;;  %v3196_v10 = vpop.f32.mrb[125].mxu1  ;;  %v1563_v45 = vadd.f32 %v6840_v61, %v1499_v26 }
 0x856   :  { %v3210_v44 = vadd.f32 %v3196_v10, %v3157_v5  ;;  %v4686_v20 = vpop.f32.mrb[126].mxu1  ;;  %v3551_v5 = vmul.f32 %v3547_v31, %v1568_v15 }
 0x857   :  { %v3199_v30 = vpop.f32.mrb[127].mxu1  ;;  %v3550_v10 = vmul.f32 %v3542_v46, %v1563_v45 }
 0x858   :  { %v3211_v47 = vadd.f32 %v3199_v30, %v3158_v29  ;;  %v3571_v30 = vpop.permute.xlu0 %3570 }
 0x86d   :  { %v4705_v51 = vpop.f32.mrb[92].mxu0 }
 0x86e   :  { %v3265_v28 = vadd.f32 %v4705_v51, %v3212_v62  ;;  %v3249_v53 = vpop.f32.mrb[93].mxu0  ;;  %v3566_v51 = vpop.permute.xlu1 %3565 }
 0x86f   :  { %v3263_v16 = vadd.f32 %v3249_v53, %v3210_v44  ;;  %v4706_v41 = vpop.f32.mrb[94].mxu0 }
 0x870   :  { %v3252_v40 = vpop.f32.mrb[95].mxu0 }
 0x871   :  { %v3264_v33 = vadd.f32 %v3252_v40, %v3211_v47 }
 0x874   :  { %v4725_v27 = vpop.f32.mrb[128].mxu1 }
 0x875   :  { %v3318_v24 = vadd.f32 %v4725_v27, %v3265_v28  ;;  %v3302_v32 = vpop.f32.mrb[129].mxu1 }
 0x876   :  { %v3316_v25 = vadd.f32 %v3302_v32, %v3263_v16  ;;  %v4726_v35 = vpop.f32.mrb[130].mxu1  ;;  %v5027_v32 = vld [vmem:[%s6710_s22 + $0x30] sm:$0xff]  }
 0x877   :  { %v3305_v60 = vpop.f32.mrb[131].mxu1  ;;  %4827 = vmatprep.subr.bf16.mxu0 %v5027_v32  ;;  %v1303_v35 = vpop.permute.xlu1 %1302 }
 0x878   :  { %v3317_v6 = vadd.f32 %v3305_v60, %v3264_v33  ;;  %4828 = vmatpush3.bf16.msra.mxu0 %v5027_v32  ;;  %v1308_v60 = vpop.permute.xlu0 %1307 }
 0x88d   :  { %v4745_v22 = vpop.f32.mrb[96].mxu0 }
 0x88e   :  { %v3371_v49 = vadd.f32 %v4745_v22, %v3318_v24  ;;  %v3355_v12 = vpop.f32.mrb[97].mxu0  ;;  %v5020_v24 = vld [vmem:[%s6709_s19 + $0x8] sm:$0xff]   ;;  %v6841_v22 = vld [vmem:[#allocation4_spill] sm:$0xff] }
 0x88f   :  { %v3369_v52 = vadd.f32 %v3355_v12, %v3316_v25  ;;  %v4746_v18 = vpop.f32.mrb[98].mxu0  ;;  %v5028_v25 = vld [vmem:[%s6710_s22 + $0x38] sm:$0xff]   ;;  %v1318_v12 = vpop.permute.xlu0 %1317 }
 0x890   :  { %v3358_v36 = vpop.f32.mrb[99].mxu0  ;;  %4829 = vmatprep.subr.bf16.mxu0 %v5028_v25 }
 0x891   :  { %v3370_v43 = vadd.f32 %v3358_v36, %v3317_v6  ;;  %4830 = vmatpush3.bf16.msra.mxu0 %v5028_v25  ;;  %v1313_v6 = vpop.permute.xlu1 %1312  ;;  %v6843_v36 = vld [vmem:[#allocation5_spill] sm:$0xff] }
 0x893   :  { %v3788_v1 = vpop.permute.xlu0 %3787 }
 0x894   :  { %v4765_v37 = vpop.f32.mrb[132].mxu1 }
 0x895   :  { %v3424_v38 = vadd.f32 %v4765_v37, %v3371_v49  ;;  %v3408_v14 = vpop.f32.mrb[133].mxu1  ;;  %v1387_v49 = vadd.f32 %v6841_v22, %v1313_v6  ;;  %v6844_v37 = vld [vmem:[#allocation3_spill] sm:$0xff] }
 0x896   :  { %v3422_v57 = vadd.f32 %v3408_v14, %v3369_v52  ;;  %v4766_v48 = vpop.f32.mrb[134].mxu1  ;;  %v6842_v52 = vld [vmem:[#allocation2_spill] sm:$0xff] }
 0x897   :  { %v3411_v58 = vpop.f32.mrb[135].mxu1  ;;  %v1379_v18 = vadd.f32 %v6842_v52, %v1303_v35  ;;  %v1395_v14 = vmax.f32 %v1387_v49, 0.0 }
 0x898   :  { %v3423_v21 = vadd.f32 %v3411_v58, %v3370_v43  ;;  %v1390_v43 = vadd.f32 %v6843_v36, %v1318_v12 }
 0x89a   :  { %v1396_v48 = vmax.f32 %v1390_v43, 0.0 }
 0x89c   :  { %v3588_v26 = vmul.f32 0.5, %v1396_v48 }
 0x8ad   :  { %v4785_v59 = vpop.f32.mrb[100].mxu0 }
 0x8ae   :  { %v3477_v39 = vadd.f32 %v4785_v59, %v3424_v38  ;;  %v3461_v7 = vpop.f32.mrb[101].mxu0  ;;  %v1382_v38 = vadd.f32 %v6844_v37, %v1308_v60 }
 0x8af   :  { %v3475_v13 = vadd.f32 %v3461_v7, %v3422_v57  ;;  %v4786_v19 = vpop.f32.mrb[102].mxu0  ;;  %v1393_v57 = vmax.f32 %v1379_v18, 0.0 }
 0x8b0   :  { %v3464_v23 = vpop.f32.mrb[103].mxu0  ;;  %v1394_v58 = vmax.f32 %v1382_v38, 0.0 }
 0x8b1   :  { %v3476_v0 = vadd.f32 %v3464_v23, %v3423_v21  ;;  %v3587_v21 = vmul.f32 0.5, %v1395_v14  ;;  %v3585_v56 = vmul.f32 0.5, %v1393_v57 }
 0x8b2   :  { %v3586_v46 = vmul.f32 0.5, %v1394_v58 }
 0x8b4   :  { %v4805_v42 = vpop.f32.mrb[136].mxu1 }
 0x8b5   :  { %v3530_v54 = vadd.f32 %v4805_v42, %v3477_v39  ;;  %v3514_v4 = vpop.f32.mrb[137].mxu1 }
 0x8b6   :  { %v3528_v29 = vadd.f32 %v3514_v4, %v3475_v13  ;;  %v4806_v3 = vpop.f32.mrb[138].mxu1 }
 0x8b7   :  { %v3554_v9 = vadd.f32 %v3551_v5, %v3530_v54  ;;  %v3517_v62 = vpop.f32.mrb[139].mxu1 }
 0x8b8   :  { %v3552_v44 = vadd.f32 %v3549_v11, %v3528_v29  ;;  %v3529_v20 = vadd.f32 %v3517_v62, %v3476_v0  ;;  %v3783_v0 = vpop.permute.xlu1 %3782  ;;  %v3798_v11 = vpop.permute.xlu0 %3797 }
 0x8b9   :  { %v3575_v55 = vadd.f32 %v3571_v30, %v3554_v9 }
 0x8ba   :  { %v3573_v47 = vadd.f32 %v3561_v2, %v3552_v44  ;;  %v3553_v63 = vadd.f32 %v3550_v10, %v3529_v20 }
 0x8bb   :  { %v3578_v53 = vmax.f32 %v3575_v55, 0.0 }
 0x8bc   :  { %v3574_v28 = vadd.f32 %v3566_v51, %v3553_v63  ;;  %v3576_v16 = vmax.f32 %v3573_v47, 0.0  ;;  %v3793_v61 = vpop.permute.xlu1 %3792 }
 0x8bd   :  { %v3584_v33 = vpack.c.bf16 %v3578_v53, %v3578_v53 }
 0x8be   :  { %v3577_v41 = vmax.f32 %v3574_v28, 0.0 }
 0x8bf   :  { %v3606_v27 = vsel %vm1521_vm5, %v3584_v33, 0 }
 0x8c0   :  { %v3583_v40 = vpack.c.bf16 %v3577_v41, %v3576_v16 }
 0x8c2   :  { %4807 = vmatprep.subr.bf16.mxu1 %v3583_v40 }
 0x8c3   :  { %4808 = vmatpush3.bf16.msra.mxu1 %v3583_v40 }
 0x8c4   :  { %4848 = vmatprep.subr.msk.bf16.mxu1 %vm1521_vm5, %v3584_v33 }
 0x8c7   :  { %4810 = vmatpush3.bf16.msra.mxu1 %v3606_v27 }
 0x8ca   :  { %4812 = vmatmul.mubr.msk.bf16.vlgmr.msra.gmra.mrb[140].mxu1 %vm1514_vm4, %v5020_v24 }
 0x99d   :  { %v4813_v34 = vpop.f32.mrb[140].mxu1 }
 0x99e   :  { %v3651_v8 = vadd.f32 %v4813_v34, %v3587_v21  ;;  %v3642_v59 = vpop.f32.mrb[141].mxu1 }
 0x99f   :  { %v3643_v39 = vadd.f32 %v3642_v59, %v3585_v56  ;;  %v4814_v7 = vpop.f32.mrb[142].mxu1 }
 0x9a0   :  { %v3654_v13 = vadd.f32 %v4814_v7, %v3588_v26  ;;  %v3645_v19 = vpop.f32.mrb[143].mxu1 }
 0x9a1   :  { %v3646_v23 = vadd.f32 %v3645_v19, %v3586_v46 }
 0x9a2   :  { %v3658_v17 = vpack.c.bf16 %v3654_v13, %v3651_v8 }
 0x9a3   :  { %v3657_v15 = vpack.c.bf16 %v3646_v23, %v3643_v39 }
 0x9a5   :  { %4831 = vmatprep.mubr.bf16.mxu0 %v3657_v15 }
 0x9a6   :  { %4832 = vmatmul.mubr.bf16.vlgmr.msra.gmra.mrb[104].mxu0 %v3658_v17 }
 0xa79   :  { %v4833_v50 = vpop.f32.mrb[104].mxu0 }
 0xa7a   :  { %v3774_v2 = vmul.f32 0.015625, %v4833_v50  ;;  %v3757_v31 = vpop.f32.mrb[105].mxu0 }
 0xa7b   :  { %v3772_v45 = vmul.f32 0.015625, %v3757_v31  ;;  %v4834_v42 = vpop.f32.mrb[106].mxu0 }
 0xa7c   :  { %v3802_v5 = vadd.f32 %v3793_v61, %v3774_v2  ;;  %v3775_v54 = vmul.f32 0.015625, %v4834_v42  ;;  %v3760_v4 = vpop.f32.mrb[107].mxu0 }
 0xa7d   :  { %v3800_v29 = vadd.f32 %v3783_v0, %v3772_v45  ;;  %v3773_v3 = vmul.f32 0.015625, %v3760_v4 }
 0xa7e   :  { %3806 = vst [vmem:[%s6711_s23 + $0x10] sm:$0xff] %v3802_v5  ;;  %v3803_v9 = vadd.f32 %v3798_v11, %v3775_v54 }
 0xa7f   :  { %3804 = vst [vmem:[%s6711_s23] sm:$0xff] %v3800_v29  ;;  %v3801_v62 = vadd.f32 %v3788_v1, %v3773_v3 }
 0xa80   :  { %3807 = vst [vmem:[%s6711_s23 + $0x18] sm:$0xff] %v3803_v9 }
 0xa81   :  { %3805 = vst [vmem:[%s6711_s23 + $0x8] sm:$0xff] %v3801_v62 }

</bundles_post_ra>
